<compile_context>
chip_gen: v5e
topology: v5e:2x2
jax: 0.10.0
libtpu: 0.0.40
codegen_flags: <defaults>
</compile_context>

<pallas_src>
import numpy as np
import jax
import jax.numpy as jnp
from jax.experimental import pallas as pl
from jax.experimental.pallas import tpu as pltpu

HSZ     = 32    # args.hsz
NTOKS   = 50    # args.ntoks
NENT    = 8     # number of entities  (vembs / ents)
NREL    = 6     # number of relations (gembs / rels)
NRPAD   = 8     # relations padded (masked) to 8 rows for sublane alignment
NMEM    = NENT + NRPAD
BATCH   = 2
SEQ     = 8
OUT_PAD = 128   # NTOKS + NENT = 58 padded to a full 128-lane row


def decode_kernel(
    x_ref,        # (T*B, H)      token embeddings, time-major flattened
    mem_e_ref,    # (B, NMEM, H)  [entities(8) ; relations padded(8)]
    mem_m_ref,    # (B, NMEM)     corresponding masks
    w_lstm_ref,   # (3H, 4H)      rows: [W_ih_enc ; W_ih_last ; W_hh]  (transposed)
    w_attn_ref,   # (3H, H)       rows: [WgT ; WeT ; WhT]  (query projections)
    w_out_ref,    # (2H, NTOKS)   rows: [Wout_decout ; Wout_last]  (transposed)
    pvec_ref,     # (4, 128)      packed small vectors (biases, LN params, switch)
    out_ref,      # (T*B, OUT_PAD) log distribution, lane-padded
):
    TB, H = x_ref.shape
    B = mem_e_ref.shape[0]
    T = TB // B
    ntoks = w_out_ref.shape[1]
    ne = NENT

    # ---------------- one-time loads / unpacking (all hoisted) ----------------
    x_all = x_ref[...]                                   # (T*B, H)
    mem_e = mem_e_ref[...]                               # (B, NMEM, H)
    ent_e = mem_e[:, :ne, :]                             # (B, 8, H)
    rel_e = mem_e[:, ne:, :]                             # (B, 8, H)  (2 padded rows)
    mem_m = mem_m_ref[...]                               # (B, NMEM)
    neg_ent = ((mem_m[:, :ne] <= 0.5).astype(jnp.float32) * (-1e9))[:, None, :]
    neg_rel = ((mem_m[:, ne:] <= 0.5).astype(jnp.float32) * (-1e9))[:, None, :]

    w_all = w_lstm_ref[...]
    w_x, w_last, w_h = w_all[:H], w_all[H:2 * H], w_all[2 * H:]
    wq_all = w_attn_ref[...]
    wg, we, wh = wq_all[:H], wq_all[H:2 * H], wq_all[2 * H:]
    wo_all = w_out_ref[...]
    wout_d, wout_l = wo_all[:H], wo_all[H:]

    pvec = pvec_ref[...]                                 # (4, 128)
    b_lstm = pvec[0:1, :]                                # (1, 4H)
    ln_g = jnp.broadcast_to(pvec[1:2, 0 * H:1 * H], (B, H))
    ln_b = jnp.broadcast_to(pvec[1:2, 1 * H:2 * H], (B, H))
    bg   = jnp.broadcast_to(pvec[1:2, 2 * H:3 * H], (B, H))
    be   = jnp.broadcast_to(pvec[1:2, 3 * H:4 * H], (B, H))
    bh   = jnp.broadcast_to(pvec[2:3, 0 * H:1 * H], (B, H))
    wsw  = jnp.broadcast_to(pvec[2:3, 1 * H:2 * H], (TB, H))
    bsw  = jnp.broadcast_to(pvec[2:3, 2 * H:2 * H + 1], (TB, 1))
    bout = jnp.broadcast_to(pvec[3:4, 0:ntoks], (TB, ntoks))

    # Non-recurrent input projection hoisted out of the loop: one MXU matmul
    # over all timesteps (includes the LSTM bias).
    gx = (jnp.dot(x_all, w_x, preferred_element_type=jnp.float32)
          + jnp.broadcast_to(b_lstm, (TB, 4 * H)))       # (T*B, 4H)

    def attend(q, emb, neg):
        # Batched MXU contractions (flash-attention einsum pattern); exact softmax.
        q3 = q.reshape(B, 1, H)
        s = jnp.einsum('bqh,bnh->bqn', q3, emb,
                       preferred_element_type=jnp.float32) + neg      # (B,1,N)
        s = s - jnp.max(s, axis=-1, keepdims=True)
        e = jnp.exp(s)
        p = e / jnp.sum(e, axis=-1, keepdims=True)                    # exact divide
        ctx = jnp.einsum('bqn,bnh->bqh', p, emb,
                         preferred_element_type=jnp.float32)          # (B,1,H)
        return ctx.reshape(B, H), p.reshape(B, -1)

    # ---------------- serial recurrence (state stays in registers) ------------
    h = jnp.zeros((B, H), jnp.float32)
    c = jnp.zeros((B, H), jnp.float32)
    last = jnp.zeros((B, H), jnp.float32)   # h.transpose(0,1) with h == 0

    dec_l, last_l, h_l, we_l = [], [], [], []

    for t in range(T):
        lo = t * B
        # LSTM gates: hoisted input term + two small recurrent dots (no concat).
        gates = (gx[lo:lo + B, :]
                 + jnp.dot(last, w_last, preferred_element_type=jnp.float32)
                 + jnp.dot(h, w_h, preferred_element_type=jnp.float32))   # (B,4H)
        # Two full-vreg EUP passes, then static lane selects (PyTorch order i,f,g,o).
        sig = jax.nn.sigmoid(gates)
        tnh = jnp.tanh(gates)
        c = sig[:, 1 * H:2 * H] * c + sig[:, 0 * H:1 * H] * tnh[:, 2 * H:3 * H]
        h = sig[:, 3 * H:4 * H] * jnp.tanh(c)

        # LayerNorm (eps = 1e-5, biased variance).
        mu = jnp.mean(h, axis=-1, keepdims=True)
        var = jnp.mean((h - mu) ** 2, axis=-1, keepdims=True)
        decout = (h - mu) * jax.lax.rsqrt(var + 1e-5) * ln_g + ln_b

        # Split query projections: three small MXU dots, no fused-slice lane work.
        qg = jnp.dot(decout, wg, preferred_element_type=jnp.float32) + bg
        qe = jnp.dot(decout, we, preferred_element_type=jnp.float32) + be
        qh = jnp.dot(decout, wh, preferred_element_type=jnp.float32) + bh

        ctx_g, _   = attend(qg, rel_e, neg_rel)    # g_attn over relations
        ctx_e, w_e = attend(qe, ent_e, neg_ent)    # e_attn over entities

        # Hierarchical attention over the two contexts (mask is all ones).
        sg = jnp.sum(qh * ctx_g, axis=-1, keepdims=True)
        se = jnp.sum(qh * ctx_e, axis=-1, keepdims=True)
        m = jnp.maximum(sg, se)
        eg = jnp.exp(sg - m)
        ee = jnp.exp(se - m)
        last = (eg * ctx_g + ee * ctx_e) / (eg + ee)

        dec_l.append(decout)
        last_l.append(last)
        h_l.append(h)
        we_l.append(w_e)

    # -------- deferred batched output head (off the recurrence chain) ---------
    D  = jnp.stack(dec_l, axis=0).reshape(TB, H)
    L  = jnp.stack(last_l, axis=0).reshape(TB, H)
    Hs = jnp.stack(h_l, axis=0).reshape(TB, H)
    We = jnp.stack(we_l, axis=0).reshape(TB, ne)

    logits = (jnp.dot(D, wout_d, preferred_element_type=jnp.float32)
              + jnp.dot(L, wout_l, preferred_element_type=jnp.float32) + bout)
    logits = logits - jnp.max(logits, axis=-1, keepdims=True)
    el = jnp.exp(logits)
    probs = el / jnp.sum(el, axis=-1, keepdims=True)     # exact divide (feeds log)

    scal = jax.nn.sigmoid(jnp.sum(Hs * wsw, axis=-1, keepdims=True) + bsw)  # (T*B,1)

    gen  = probs * (1.0 - scal) + 1e-6                   # (T*B, NTOKS)
    copy = We * scal + 1e-6                              # (T*B, NENT)
    pad  = jnp.ones((TB, OUT_PAD - (ntoks + ne)), jnp.float32)   # log(1)=0 padding
    # Single lane-dense store of the whole output.
    out_ref[...] = jnp.log(jnp.concatenate([gen, copy, pad], axis=1))


def decoder_forward_pallas(tokens, ent_emb, ent_mask, rel_emb, rel_mask, p):
    B, T = tokens.shape
    H = HSZ
    ne, nr = ent_emb.shape[1], rel_emb.shape[1]

    # nn.Embedding lookup is a gather -> glue in plain JAX. Time-major flattened.
    x_seq = jnp.transpose(p["emb"][tokens], (1, 0, 2)).reshape(T * B, H)

    # Pack memories: entities first, relations zero-padded to NRPAD masked rows.
    rel_e_pad = jnp.concatenate(
        [rel_emb, jnp.zeros((B, NRPAD - nr, H), jnp.float32)], axis=1)
    rel_m_pad = jnp.concatenate(
        [rel_mask, jnp.zeros((B, NRPAD - nr), jnp.float32)], axis=1)
    mem_emb = jnp.concatenate([ent_emb, rel_e_pad], axis=1)      # (B, NMEM, H)
    mem_mask = jnp.concatenate([ent_mask, rel_m_pad], axis=1)    # (B, NMEM)

    # Row-packed weight matrices (statically row-sliced inside the kernel).
    w_lstm = jnp.concatenate([p["w_ihT"][:H], p["w_ihT"][H:], p["w_hhT"]], axis=0)
    w_attn = jnp.concatenate([p["wgT"], p["weT"], p["whT"]], axis=0)
    w_out = p["woutT"]

    # All small vectors packed into one lane-padded (4, 128) tensor.
    def row(*vs):
        v = jnp.concatenate([jnp.reshape(x, (-1,)) for x in vs])
        return jnp.pad(v, (0, 128 - v.shape[0]))
    pvec = jnp.stack([
        row(p["b_lstm"]),                                   # (4H,)
        row(p["ln_g"], p["ln_b"], p["bg"], p["be"]),        # 4 * H
        row(p["bh"], p["w_sw"], p["b_sw"]),                 # 2H + 1
        row(p["bout"]),                                     # NTOKS
    ], axis=0)

    ins = (x_seq, mem_emb, mem_mask, w_lstm, w_attn, w_out, pvec)

    def full_spec(shape):
        n = len(shape)
        return pl.BlockSpec(shape, lambda i, _n=n: (0,) * _n)

    out = pl.pallas_call(
        decode_kernel,
        out_shape=jax.ShapeDtypeStruct((T * B, OUT_PAD), jnp.float32),
        grid_spec=pltpu.PrefetchScalarGridSpec(
            num_scalar_prefetch=0,
            grid=(1,),                     # single invocation; recurrence is in-kernel
            in_specs=[full_spec(a.shape) for a in ins],
            out_specs=full_spec((T * B, OUT_PAD)),
        ),
        compiler_params=pltpu.CompilerParams(dimension_semantics=("arbitrary",)),
    )(*ins)
    out = out.reshape(T, B, OUT_PAD).transpose(1, 0, 2)      # (B, T, OUT_PAD)
    return out[:, :, : NTOKS + ne]                           # drop lane padding


def decoder_forward_ref(tokens, ent_emb, ent_mask, rel_emb, rel_mask, p):
    """Pure-JAX reference of the same forward pass (for correctness check)."""
    B, T = tokens.shape
    H = HSZ
    hi = jax.lax.Precision.HIGHEST
    x_seq = p["emb"][tokens]
    h = jnp.zeros((B, H), jnp.float32)
    c = jnp.zeros((B, H), jnp.float32)
    last = jnp.zeros((B, H), jnp.float32)
    outs = []
    for i in range(T):
        enc = x_seq[:, i, :]
        x = jnp.concatenate([enc, last], axis=1)
        gates = (jnp.dot(x, p["w_ihT"], precision=hi)
                 + jnp.dot(h, p["w_hhT"], precision=hi) + p["b_lstm"])
        i_g = jax.nn.sigmoid(gates[:, :H]); f_g = jax.nn.sigmoid(gates[:, H:2 * H])
        g_g = jnp.tanh(gates[:, 2 * H:3 * H]); o_g = jax.nn.sigmoid(gates[:, 3 * H:])
        c = f_g * c + i_g * g_g
        h = o_g * jnp.tanh(c)
        mu = jnp.mean(h, -1, keepdims=True)
        var = jnp.mean((h - mu) ** 2, -1, keepdims=True)
        decout = (h - mu) / jnp.sqrt(var + 1e-5) * p["ln_g"] + p["ln_b"]

        def attend(wT, b, emb, mask):
            q = jnp.dot(decout, wT, precision=hi) + b
            s = jnp.einsum('bh,bnh->bn', q, emb, precision=hi)
            s = jnp.where(mask > 0.5, s, -1e9)
            w = jax.nn.softmax(s, axis=-1)
            return jnp.einsum('bn,bnh->bh', w, emb, precision=hi), w

        ctx_g, _ = attend(p["wgT"], p["bg"], rel_emb, rel_mask)
        ctx_e, w_e = attend(p["weT"], p["be"], ent_emb, ent_mask)
        contexts = jnp.stack([ctx_g, ctx_e], axis=1)
        qh = jnp.dot(decout, p["whT"], precision=hi) + p["bh"]
        sh = jnp.einsum('bh,bkh->bk', qh, contexts, precision=hi)
        hw = jax.nn.softmax(sh, axis=-1)
        last = jnp.einsum('bk,bkh->bh', hw, contexts, precision=hi)

        out = jnp.concatenate([decout, last], axis=1)
        logits = jnp.dot(out, p["woutT"], precision=hi) + p["bout"]
        probs = jax.nn.softmax(logits, axis=-1)
        scalar = jax.nn.sigmoid(jnp.sum(h * p["w_sw"], -1, keepdims=True) + p["b_sw"])
        dec = jnp.concatenate([probs * (1 - scalar), w_e * scalar], axis=1) + 1e-6
        outs.append(dec)
    return jnp.log(jnp.stack(outs, axis=1))


def init_params(key):
    ks = jax.random.split(key, 16)
    s = 0.1
    p = {}
    p["emb"]    = jax.random.normal(ks[0], (NTOKS, HSZ), jnp.float32) * s
    p["w_ihT"]  = jax.random.normal(ks[1], (2 * HSZ, 4 * HSZ), jnp.float32) * s
    p["w_hhT"]  = jax.random.normal(ks[2], (HSZ, 4 * HSZ), jnp.float32) * s
    p["b_lstm"] = jax.random.normal(ks[3], (1, 4 * HSZ), jnp.float32) * s
    p["ln_g"]   = 1.0 + jax.random.normal(ks[4], (1, HSZ), jnp.float32) * 0.05
    p["ln_b"]   = jax.random.normal(ks[5], (1, HSZ), jnp.float32) * 0.05
    p["wgT"]    = jax.random.normal(ks[6], (HSZ, HSZ), jnp.float32) * s
    p["bg"]     = jax.random.normal(ks[7], (1, HSZ), jnp.float32) * s
    p["weT"]    = jax.random.normal(ks[8], (HSZ, HSZ), jnp.float32) * s
    p["be"]     = jax.random.normal(ks[9], (1, HSZ), jnp.float32) * s
    p["whT"]    = jax.random.normal(ks[10], (HSZ, HSZ), jnp.float32) * s
    p["bh"]     = jax.random.normal(ks[11], (1, HSZ), jnp.float32) * s
    p["woutT"]  = jax.random.normal(ks[12], (2 * HSZ, NTOKS), jnp.float32) * s
    p["bout"]   = jax.random.normal(ks[13], (1, NTOKS), jnp.float32) * s
    p["w_sw"]   = jax.random.normal(ks[14], (1, HSZ), jnp.float32) * s
    p["b_sw"]   = jax.random.normal(ks[15], (1, 1), jnp.float32) * s
    return p


if __name__ == "__main__":
    key = jax.random.PRNGKey(0)
    kp, kt, ke, kr = jax.random.split(key, 4)
    params = init_params(kp)

    tokens = jax.random.randint(kt, (BATCH, SEQ), 0, NTOKS)               # outp[0]
    # Synthetic encoder outputs (ents, rels); h/c start at zero as in model.forward.
    ent_emb = jax.random.normal(ke, (BATCH, NENT, HSZ), jnp.float32)      # vembs[0]
    ent_mask = jnp.ones((BATCH, NENT), jnp.float32)                       # vembs[1]
    rel_emb = jax.random.normal(kr, (BATCH, NREL, HSZ), jnp.float32)      # gembs[0]
    rel_mask = jnp.ones((BATCH, NREL), jnp.float32)                       # gembs[1]

    out = decoder_forward_pallas(tokens, ent_emb, ent_mask, rel_emb, rel_mask, params)
    out = jax.block_until_ready(out)
    assert out.shape == (BATCH, SEQ, NTOKS + NENT)

    ref = decoder_forward_ref(tokens, ent_emb, ent_mask, rel_emb, rel_mask, params)
    np.testing.assert_allclose(np.asarray(out), np.asarray(ref), rtol=5e-3, atol=5e-3)
    print("KERNEL_OK")
</pallas_src>

<mosaic_0001>
module attributes {stable_mosaic.version = 11 : i64} {
  func.func @decode_kernel(%arg0: i32, %arg1: memref<16x32xf32, #tpu.memory_space<vmem>>, %arg2: memref<2x16x32xf32, #tpu.memory_space<vmem>>, %arg3: memref<2x16xf32, #tpu.memory_space<vmem>>, %arg4: memref<96x128xf32, #tpu.memory_space<vmem>>, %arg5: memref<96x32xf32, #tpu.memory_space<vmem>>, %arg6: memref<64x50xf32, #tpu.memory_space<vmem>>, %arg7: memref<4x128xf32, #tpu.memory_space<vmem>>, %arg8: memref<16x128xf32, #tpu.memory_space<vmem>>) attributes {dimension_semantics = [#tpu.dimension_semantics<arbitrary>], iteration_bounds = array<i64: 1>, scalar_prefetch = 0 : i64, scratch_operands = 0 : i64, tpu.core_type = #tpu.core_type<tc>, window_params = [{pipeline_mode = #tpu.pipeline_mode<synchronous>, transform_indices = @transform_0, window_bounds = array<i64: 16, 32>}, {pipeline_mode = #tpu.pipeline_mode<synchronous>, transform_indices = @transform_1, window_bounds = array<i64: 2, 16, 32>}, {pipeline_mode = #tpu.pipeline_mode<synchronous>, transform_indices = @transform_2, window_bounds = array<i64: 2, 16>}, {pipeline_mode = #tpu.pipeline_mode<synchronous>, transform_indices = @transform_3, window_bounds = array<i64: 96, 128>}, {pipeline_mode = #tpu.pipeline_mode<synchronous>, transform_indices = @transform_4, window_bounds = array<i64: 96, 32>}, {pipeline_mode = #tpu.pipeline_mode<synchronous>, transform_indices = @transform_5, window_bounds = array<i64: 64, 50>}, {pipeline_mode = #tpu.pipeline_mode<synchronous>, transform_indices = @transform_6, window_bounds = array<i64: 4, 128>}, {pipeline_mode = #tpu.pipeline_mode<synchronous>, transform_indices = @transform_7, window_bounds = array<i64: 16, 128>}]} {
    %c0 = arith.constant 0 : index
    %c0_0 = arith.constant 0 : index
    %0 = vector.load %arg1[%c0, %c0_0] : memref<16x32xf32, #tpu.memory_space<vmem>>, vector<16x32xf32>
    %c0_1 = arith.constant 0 : index
    %c0_2 = arith.constant 0 : index
    %c0_3 = arith.constant 0 : index
    %1 = vector.load %arg2[%c0_1, %c0_2, %c0_3] : memref<2x16x32xf32, #tpu.memory_space<vmem>>, vector<2x16x32xf32>
    %2 = vector.extract_strided_slice %1 {offsets = [0, 0, 0], sizes = [2, 8, 32], strides = [1, 1, 1]} : vector<2x16x32xf32> to vector<2x8x32xf32>
    %3 = vector.extract_strided_slice %1 {offsets = [0, 8, 0], sizes = [2, 8, 32], strides = [1, 1, 1]} : vector<2x16x32xf32> to vector<2x8x32xf32>
    %c0_4 = arith.constant 0 : index
    %c0_5 = arith.constant 0 : index
    %4 = vector.load %arg3[%c0_4, %c0_5] : memref<2x16xf32, #tpu.memory_space<vmem>>, vector<2x16xf32>
    %5 = vector.extract_strided_slice %4 {offsets = [0, 0], sizes = [2, 8], strides = [1, 1]} : vector<2x16xf32> to vector<2x8xf32>
    %cst = arith.constant 5.000000e-01 : f32
    %6 = vector.broadcast %cst : f32 to vector<2x8xf32>
    %7 = arith.cmpf ole, %5, %6 : vector<2x8xf32>
    %8 = arith.extui %7 : vector<2x8xi1> to vector<2x8xi32>
    %9 = arith.sitofp %8 : vector<2x8xi32> to vector<2x8xf32>
    %cst_6 = arith.constant -1.000000e+09 : f32
    %10 = vector.broadcast %cst_6 : f32 to vector<2x8xf32>
    %11 = arith.mulf %9, %10 : vector<2x8xf32>
    %12 = vector.shape_cast %11 : vector<2x8xf32> to vector<2x1x8xf32>
    %13 = vector.extract_strided_slice %4 {offsets = [0, 8], sizes = [2, 8], strides = [1, 1]} : vector<2x16xf32> to vector<2x8xf32>
    %cst_7 = arith.constant 5.000000e-01 : f32
    %14 = vector.broadcast %cst_7 : f32 to vector<2x8xf32>
    %15 = arith.cmpf ole, %13, %14 : vector<2x8xf32>
    %16 = arith.extui %15 : vector<2x8xi1> to vector<2x8xi32>
    %17 = arith.sitofp %16 : vector<2x8xi32> to vector<2x8xf32>
    %cst_8 = arith.constant -1.000000e+09 : f32
    %18 = vector.broadcast %cst_8 : f32 to vector<2x8xf32>
    %19 = arith.mulf %17, %18 : vector<2x8xf32>
    %20 = vector.shape_cast %19 : vector<2x8xf32> to vector<2x1x8xf32>
    %c0_9 = arith.constant 0 : index
    %c0_10 = arith.constant 0 : index
    %21 = vector.load %arg4[%c0_9, %c0_10] : memref<96x128xf32, #tpu.memory_space<vmem>>, vector<96x128xf32>
    %22 = vector.extract_strided_slice %21 {offsets = [0, 0], sizes = [32, 128], strides = [1, 1]} : vector<96x128xf32> to vector<32x128xf32>
    %23 = vector.extract_strided_slice %21 {offsets = [32, 0], sizes = [32, 128], strides = [1, 1]} : vector<96x128xf32> to vector<32x128xf32>
    %24 = vector.extract_strided_slice %21 {offsets = [64, 0], sizes = [32, 128], strides = [1, 1]} : vector<96x128xf32> to vector<32x128xf32>
    %c0_11 = arith.constant 0 : index
    %c0_12 = arith.constant 0 : index
    %25 = vector.load %arg5[%c0_11, %c0_12] : memref<96x32xf32, #tpu.memory_space<vmem>>, vector<96x32xf32>
    %26 = vector.extract_strided_slice %25 {offsets = [0, 0], sizes = [32, 32], strides = [1, 1]} : vector<96x32xf32> to vector<32x32xf32>
    %27 = vector.extract_strided_slice %25 {offsets = [32, 0], sizes = [32, 32], strides = [1, 1]} : vector<96x32xf32> to vector<32x32xf32>
    %28 = vector.extract_strided_slice %25 {offsets = [64, 0], sizes = [32, 32], strides = [1, 1]} : vector<96x32xf32> to vector<32x32xf32>
    %c0_13 = arith.constant 0 : index
    %c0_14 = arith.constant 0 : index
    %29 = vector.load %arg6[%c0_13, %c0_14] : memref<64x50xf32, #tpu.memory_space<vmem>>, vector<64x50xf32>
    %30 = vector.extract_strided_slice %29 {offsets = [0, 0], sizes = [32, 50], strides = [1, 1]} : vector<64x50xf32> to vector<32x50xf32>
    %31 = vector.extract_strided_slice %29 {offsets = [32, 0], sizes = [32, 50], strides = [1, 1]} : vector<64x50xf32> to vector<32x50xf32>
    %c0_15 = arith.constant 0 : index
    %c0_16 = arith.constant 0 : index
    %32 = vector.load %arg7[%c0_15, %c0_16] : memref<4x128xf32, #tpu.memory_space<vmem>>, vector<4x128xf32>
    %33 = vector.extract_strided_slice %32 {offsets = [0, 0], sizes = [1, 128], strides = [1, 1]} : vector<4x128xf32> to vector<1x128xf32>
    %34 = vector.extract_strided_slice %32 {offsets = [1, 0], sizes = [1, 32], strides = [1, 1]} : vector<4x128xf32> to vector<1x32xf32>
    %35 = vector.shape_cast %34 : vector<1x32xf32> to vector<1x32xf32>
    %36 = vector.broadcast %35 : vector<1x32xf32> to vector<2x32xf32>
    %37 = vector.extract_strided_slice %32 {offsets = [1, 32], sizes = [1, 32], strides = [1, 1]} : vector<4x128xf32> to vector<1x32xf32>
    %38 = vector.shape_cast %37 : vector<1x32xf32> to vector<1x32xf32>
    %39 = vector.broadcast %38 : vector<1x32xf32> to vector<2x32xf32>
    %40 = vector.extract_strided_slice %32 {offsets = [1, 64], sizes = [1, 32], strides = [1, 1]} : vector<4x128xf32> to vector<1x32xf32>
    %41 = vector.shape_cast %40 : vector<1x32xf32> to vector<1x32xf32>
    %42 = vector.broadcast %41 : vector<1x32xf32> to vector<2x32xf32>
    %43 = vector.extract_strided_slice %32 {offsets = [1, 96], sizes = [1, 32], strides = [1, 1]} : vector<4x128xf32> to vector<1x32xf32>
    %44 = vector.shape_cast %43 : vector<1x32xf32> to vector<1x32xf32>
    %45 = vector.broadcast %44 : vector<1x32xf32> to vector<2x32xf32>
    %46 = vector.extract_strided_slice %32 {offsets = [2, 0], sizes = [1, 32], strides = [1, 1]} : vector<4x128xf32> to vector<1x32xf32>
    %47 = vector.shape_cast %46 : vector<1x32xf32> to vector<1x32xf32>
    %48 = vector.broadcast %47 : vector<1x32xf32> to vector<2x32xf32>
    %49 = vector.extract_strided_slice %32 {offsets = [2, 32], sizes = [1, 32], strides = [1, 1]} : vector<4x128xf32> to vector<1x32xf32>
    %50 = vector.shape_cast %49 : vector<1x32xf32> to vector<1x32xf32>
    %51 = vector.broadcast %50 : vector<1x32xf32> to vector<16x32xf32>
    %52 = vector.extract_strided_slice %32 {offsets = [2, 64], sizes = [1, 1], strides = [1, 1]} : vector<4x128xf32> to vector<1x1xf32>
    %53 = vector.shape_cast %52 : vector<1x1xf32> to vector<1x1xf32>
    %54 = vector.broadcast %53 : vector<1x1xf32> to vector<16x1xf32>
    %55 = vector.extract_strided_slice %32 {offsets = [3, 0], sizes = [1, 50], strides = [1, 1]} : vector<4x128xf32> to vector<1x50xf32>
    %56 = vector.shape_cast %55 : vector<1x50xf32> to vector<1x50xf32>
    %57 = vector.broadcast %56 : vector<1x50xf32> to vector<16x50xf32>
    %cst_17 = arith.constant dense<0.000000e+00> : vector<16x128xf32>
    %58 = tpu.matmul %0, %22, %cst_17 {dimension_numbers = #tpu.dot_dimension_numbers<[1], [0], [0], [1], [0, 0, 1, 1], [], []>} : vector<16x32xf32>, vector<32x128xf32>, vector<16x128xf32> -> vector<16x128xf32>
    %59 = vector.shape_cast %33 : vector<1x128xf32> to vector<1x128xf32>
    %60 = vector.broadcast %59 : vector<1x128xf32> to vector<16x128xf32>
    %61 = arith.addf %58, %60 : vector<16x128xf32>
    %cst_18 = arith.constant 0.000000e+00 : f32
    %62 = vector.broadcast %cst_18 : f32 to vector<2x32xf32>
    %cst_19 = arith.constant 0.000000e+00 : f32
    %63 = vector.broadcast %cst_19 : f32 to vector<2x32xf32>
    %cst_20 = arith.constant 0.000000e+00 : f32
    %64 = vector.broadcast %cst_20 : f32 to vector<2x32xf32>
    %65 = vector.extract_strided_slice %61 {offsets = [0, 0], sizes = [2, 128], strides = [1, 1]} : vector<16x128xf32> to vector<2x128xf32>
    %cst_21 = arith.constant dense<0.000000e+00> : vector<2x128xf32>
    %66 = tpu.matmul %64, %23, %cst_21 {dimension_numbers = #tpu.dot_dimension_numbers<[1], [0], [0], [1], [0, 0, 1, 1], [], []>} : vector<2x32xf32>, vector<32x128xf32>, vector<2x128xf32> -> vector<2x128xf32>
    %67 = arith.addf %65, %66 : vector<2x128xf32>
    %cst_22 = arith.constant dense<0.000000e+00> : vector<2x128xf32>
    %68 = tpu.matmul %62, %24, %cst_22 {dimension_numbers = #tpu.dot_dimension_numbers<[1], [0], [0], [1], [0, 0, 1, 1], [], []>} : vector<2x32xf32>, vector<32x128xf32>, vector<2x128xf32> -> vector<2x128xf32>
    %69 = arith.addf %67, %68 : vector<2x128xf32>
    %70 = arith.negf %69 : vector<2x128xf32>
    %71 = math.exp %70 : vector<2x128xf32>
    %cst_23 = arith.constant 1.000000e+00 : f32
    %72 = vector.broadcast %cst_23 : f32 to vector<2x128xf32>
    %73 = arith.addf %72, %71 : vector<2x128xf32>
    %74 = arith.divf %72, %73 : vector<2x128xf32>
    %75 = math.tanh %69 : vector<2x128xf32>
    %76 = vector.extract_strided_slice %74 {offsets = [0, 32], sizes = [2, 32], strides = [1, 1]} : vector<2x128xf32> to vector<2x32xf32>
    %77 = arith.mulf %76, %63 : vector<2x32xf32>
    %78 = vector.extract_strided_slice %74 {offsets = [0, 0], sizes = [2, 32], strides = [1, 1]} : vector<2x128xf32> to vector<2x32xf32>
    %79 = vector.extract_strided_slice %75 {offsets = [0, 64], sizes = [2, 32], strides = [1, 1]} : vector<2x128xf32> to vector<2x32xf32>
    %80 = arith.mulf %78, %79 : vector<2x32xf32>
    %81 = arith.addf %77, %80 : vector<2x32xf32>
    %82 = vector.extract_strided_slice %74 {offsets = [0, 96], sizes = [2, 32], strides = [1, 1]} : vector<2x128xf32> to vector<2x32xf32>
    %83 = math.tanh %81 : vector<2x32xf32>
    %84 = arith.mulf %82, %83 : vector<2x32xf32>
    %cst_24 = arith.constant dense<0.000000e+00> : vector<2xf32>
    %85 = vector.multi_reduction <add>, %84, %cst_24 [1] : vector<2x32xf32> to vector<2xf32>
    %86 = vector.shape_cast %85 : vector<2xf32> to vector<2x1xf32>
    %cst_25 = arith.constant 3.200000e+01 : f32
    %87 = vector.broadcast %cst_25 : f32 to vector<2x1xf32>
    %88 = arith.divf %86, %87 : vector<2x1xf32>
    %89 = vector.broadcast %88 : vector<2x1xf32> to vector<2x32xf32>
    %90 = arith.subf %84, %89 : vector<2x32xf32>
    %91 = arith.mulf %90, %90 : vector<2x32xf32>
    %cst_26 = arith.constant dense<0.000000e+00> : vector<2xf32>
    %92 = vector.multi_reduction <add>, %91, %cst_26 [1] : vector<2x32xf32> to vector<2xf32>
    %93 = vector.shape_cast %92 : vector<2xf32> to vector<2x1xf32>
    %cst_27 = arith.constant 3.200000e+01 : f32
    %94 = vector.broadcast %cst_27 : f32 to vector<2x1xf32>
    %95 = arith.divf %93, %94 : vector<2x1xf32>
    %96 = vector.broadcast %88 : vector<2x1xf32> to vector<2x32xf32>
    %97 = arith.subf %84, %96 : vector<2x32xf32>
    %cst_28 = arith.constant 9.99999974E-6 : f32
    %98 = vector.broadcast %cst_28 : f32 to vector<2x1xf32>
    %99 = arith.addf %95, %98 : vector<2x1xf32>
    %100 = math.rsqrt %99 : vector<2x1xf32>
    %101 = vector.broadcast %100 : vector<2x1xf32> to vector<2x32xf32>
    %102 = arith.mulf %97, %101 : vector<2x32xf32>
    %103 = arith.mulf %102, %36 : vector<2x32xf32>
    %104 = arith.addf %103, %39 : vector<2x32xf32>
    %cst_29 = arith.constant dense<0.000000e+00> : vector<2x32xf32>
    %105 = tpu.matmul %104, %26, %cst_29 {dimension_numbers = #tpu.dot_dimension_numbers<[1], [0], [0], [1], [0, 0, 1, 1], [], []>} : vector<2x32xf32>, vector<32x32xf32>, vector<2x32xf32> -> vector<2x32xf32>
    %106 = arith.addf %105, %42 : vector<2x32xf32>
    %cst_30 = arith.constant dense<0.000000e+00> : vector<2x32xf32>
    %107 = tpu.matmul %104, %27, %cst_30 {dimension_numbers = #tpu.dot_dimension_numbers<[1], [0], [0], [1], [0, 0, 1, 1], [], []>} : vector<2x32xf32>, vector<32x32xf32>, vector<2x32xf32> -> vector<2x32xf32>
    %108 = arith.addf %107, %45 : vector<2x32xf32>
    %cst_31 = arith.constant dense<0.000000e+00> : vector<2x32xf32>
    %109 = tpu.matmul %104, %28, %cst_31 {dimension_numbers = #tpu.dot_dimension_numbers<[1], [0], [0], [1], [0, 0, 1, 1], [], []>} : vector<2x32xf32>, vector<32x32xf32>, vector<2x32xf32> -> vector<2x32xf32>
    %110 = arith.addf %109, %48 : vector<2x32xf32>
    %111 = vector.shape_cast %106 : vector<2x32xf32> to vector<2x1x32xf32>
    "tpu.trace_start"() <{level = 10 : i32, message = "bqh,bnh->bqn"}> : () -> ()
    %cst_32 = arith.constant dense<0.000000e+00> : vector<2x1x8xf32>
    %112 = tpu.matmul %111, %3, %cst_32 {dimension_numbers = #tpu.dot_dimension_numbers<[2], [2], [1], [1], [0, 0, 0, 1, 1, 1], [0], [0]>} : vector<2x1x32xf32>, vector<2x8x32xf32>, vector<2x1x8xf32> -> vector<2x1x8xf32>
    "tpu.trace_stop"() : () -> ()
    %113 = arith.addf %112, %20 : vector<2x1x8xf32>
    %cst_33 = arith.constant dense<0xFF800000> : vector<2x1xf32>
    %114 = vector.multi_reduction <maximumf>, %113, %cst_33 [2] : vector<2x1x8xf32> to vector<2x1xf32>
    %115 = vector.shape_cast %114 : vector<2x1xf32> to vector<2x1x1xf32>
    %116 = vector.broadcast %115 : vector<2x1x1xf32> to vector<2x1x8xf32>
    %117 = arith.subf %113, %116 : vector<2x1x8xf32>
    %118 = math.exp %117 : vector<2x1x8xf32>
    %cst_34 = arith.constant dense<0.000000e+00> : vector<2x1xf32>
    %119 = vector.multi_reduction <add>, %118, %cst_34 [2] : vector<2x1x8xf32> to vector<2x1xf32>
    %120 = vector.shape_cast %119 : vector<2x1xf32> to vector<2x1x1xf32>
    %121 = vector.broadcast %120 : vector<2x1x1xf32> to vector<2x1x8xf32>
    %122 = arith.divf %118, %121 : vector<2x1x8xf32>
    "tpu.trace_start"() <{level = 10 : i32, message = "bqn,bnh->bqh"}> : () -> ()
    %cst_35 = arith.constant dense<0.000000e+00> : vector<2x1x32xf32>
    %123 = tpu.matmul %122, %3, %cst_35 {dimension_numbers = #tpu.dot_dimension_numbers<[2], [1], [1], [2], [0, 0, 0, 1, 1, 2], [0], [0]>} : vector<2x1x8xf32>, vector<2x8x32xf32>, vector<2x1x32xf32> -> vector<2x1x32xf32>
    "tpu.trace_stop"() : () -> ()
    %124 = vector.shape_cast %123 : vector<2x1x32xf32> to vector<2x32xf32>
    %125 = vector.shape_cast %108 : vector<2x32xf32> to vector<2x1x32xf32>
    "tpu.trace_start"() <{level = 10 : i32, message = "bqh,bnh->bqn"}> : () -> ()
    %cst_36 = arith.constant dense<0.000000e+00> : vector<2x1x8xf32>
    %126 = tpu.matmul %125, %2, %cst_36 {dimension_numbers = #tpu.dot_dimension_numbers<[2], [2], [1], [1], [0, 0, 0, 1, 1, 1], [0], [0]>} : vector<2x1x32xf32>, vector<2x8x32xf32>, vector<2x1x8xf32> -> vector<2x1x8xf32>
    "tpu.trace_stop"() : () -> ()
    %127 = arith.addf %126, %12 : vector<2x1x8xf32>
    %cst_37 = arith.constant dense<0xFF800000> : vector<2x1xf32>
    %128 = vector.multi_reduction <maximumf>, %127, %cst_37 [2] : vector<2x1x8xf32> to vector<2x1xf32>
    %129 = vector.shape_cast %128 : vector<2x1xf32> to vector<2x1x1xf32>
    %130 = vector.broadcast %129 : vector<2x1x1xf32> to vector<2x1x8xf32>
    %131 = arith.subf %127, %130 : vector<2x1x8xf32>
    %132 = math.exp %131 : vector<2x1x8xf32>
    %cst_38 = arith.constant dense<0.000000e+00> : vector<2x1xf32>
    %133 = vector.multi_reduction <add>, %132, %cst_38 [2] : vector<2x1x8xf32> to vector<2x1xf32>
    %134 = vector.shape_cast %133 : vector<2x1xf32> to vector<2x1x1xf32>
    %135 = vector.broadcast %134 : vector<2x1x1xf32> to vector<2x1x8xf32>
    %136 = arith.divf %132, %135 : vector<2x1x8xf32>
    "tpu.trace_start"() <{level = 10 : i32, message = "bqn,bnh->bqh"}> : () -> ()
    %cst_39 = arith.constant dense<0.000000e+00> : vector<2x1x32xf32>
    %137 = tpu.matmul %136, %2, %cst_39 {dimension_numbers = #tpu.dot_dimension_numbers<[2], [1], [1], [2], [0, 0, 0, 1, 1, 2], [0], [0]>} : vector<2x1x8xf32>, vector<2x8x32xf32>, vector<2x1x32xf32> -> vector<2x1x32xf32>
    "tpu.trace_stop"() : () -> ()
    %138 = vector.shape_cast %137 : vector<2x1x32xf32> to vector<2x32xf32>
    %139 = vector.shape_cast %136 : vector<2x1x8xf32> to vector<2x8xf32>
    %140 = arith.mulf %110, %124 : vector<2x32xf32>
    %cst_40 = arith.constant dense<0.000000e+00> : vector<2xf32>
    %141 = vector.multi_reduction <add>, %140, %cst_40 [1] : vector<2x32xf32> to vector<2xf32>
    %142 = vector.shape_cast %141 : vector<2xf32> to vector<2x1xf32>
    %143 = arith.mulf %110, %138 : vector<2x32xf32>
    %cst_41 = arith.constant dense<0.000000e+00> : vector<2xf32>
    %144 = vector.multi_reduction <add>, %143, %cst_41 [1] : vector<2x32xf32> to vector<2xf32>
    %145 = vector.shape_cast %144 : vector<2xf32> to vector<2x1xf32>
    %146 = arith.maximumf %142, %145 : vector<2x1xf32>
    %147 = arith.subf %142, %146 : vector<2x1xf32>
    %148 = math.exp %147 : vector<2x1xf32>
    %149 = arith.subf %145, %146 : vector<2x1xf32>
    %150 = math.exp %149 : vector<2x1xf32>
    %151 = vector.broadcast %148 : vector<2x1xf32> to vector<2x32xf32>
    %152 = arith.mulf %151, %124 : vector<2x32xf32>
    %153 = vector.broadcast %150 : vector<2x1xf32> to vector<2x32xf32>
    %154 = arith.mulf %153, %138 : vector<2x32xf32>
    %155 = arith.addf %152, %154 : vector<2x32xf32>
    %156 = arith.addf %148, %150 : vector<2x1xf32>
    %157 = vector.broadcast %156 : vector<2x1xf32> to vector<2x32xf32>
    %158 = arith.divf %155, %157 : vector<2x32xf32>
    %159 = vector.extract_strided_slice %61 {offsets = [2, 0], sizes = [2, 128], strides = [1, 1]} : vector<16x128xf32> to vector<2x128xf32>
    %cst_42 = arith.constant dense<0.000000e+00> : vector<2x128xf32>
    %160 = tpu.matmul %158, %23, %cst_42 {dimension_numbers = #tpu.dot_dimension_numbers<[1], [0], [0], [1], [0, 0, 1, 1], [], []>} : vector<2x32xf32>, vector<32x128xf32>, vector<2x128xf32> -> vector<2x128xf32>
    %161 = arith.addf %159, %160 : vector<2x128xf32>
    %cst_43 = arith.constant dense<0.000000e+00> : vector<2x128xf32>
    %162 = tpu.matmul %84, %24, %cst_43 {dimension_numbers = #tpu.dot_dimension_numbers<[1], [0], [0], [1], [0, 0, 1, 1], [], []>} : vector<2x32xf32>, vector<32x128xf32>, vector<2x128xf32> -> vector<2x128xf32>
    %163 = arith.addf %161, %162 : vector<2x128xf32>
    %164 = arith.negf %163 : vector<2x128xf32>
    %165 = math.exp %164 : vector<2x128xf32>
    %cst_44 = arith.constant 1.000000e+00 : f32
    %166 = vector.broadcast %cst_44 : f32 to vector<2x128xf32>
    %167 = arith.addf %166, %165 : vector<2x128xf32>
    %168 = arith.divf %166, %167 : vector<2x128xf32>
    %169 = math.tanh %163 : vector<2x128xf32>
    %170 = vector.extract_strided_slice %168 {offsets = [0, 32], sizes = [2, 32], strides = [1, 1]} : vector<2x128xf32> to vector<2x32xf32>
    %171 = arith.mulf %170, %81 : vector<2x32xf32>
    %172 = vector.extract_strided_slice %168 {offsets = [0, 0], sizes = [2, 32], strides = [1, 1]} : vector<2x128xf32> to vector<2x32xf32>
    %173 = vector.extract_strided_slice %169 {offsets = [0, 64], sizes = [2, 32], strides = [1, 1]} : vector<2x128xf32> to vector<2x32xf32>
    %174 = arith.mulf %172, %173 : vector<2x32xf32>
    %175 = arith.addf %171, %174 : vector<2x32xf32>
    %176 = vector.extract_strided_slice %168 {offsets = [0, 96], sizes = [2, 32], strides = [1, 1]} : vector<2x128xf32> to vector<2x32xf32>
    %177 = math.tanh %175 : vector<2x32xf32>
    %178 = arith.mulf %176, %177 : vector<2x32xf32>
    %cst_45 = arith.constant dense<0.000000e+00> : vector<2xf32>
    %179 = vector.multi_reduction <add>, %178, %cst_45 [1] : vector<2x32xf32> to vector<2xf32>
    %180 = vector.shape_cast %179 : vector<2xf32> to vector<2x1xf32>
    %cst_46 = arith.constant 3.200000e+01 : f32
    %181 = vector.broadcast %cst_46 : f32 to vector<2x1xf32>
    %182 = arith.divf %180, %181 : vector<2x1xf32>
    %183 = vector.broadcast %182 : vector<2x1xf32> to vector<2x32xf32>
    %184 = arith.subf %178, %183 : vector<2x32xf32>
    %185 = arith.mulf %184, %184 : vector<2x32xf32>
    %cst_47 = arith.constant dense<0.000000e+00> : vector<2xf32>
    %186 = vector.multi_reduction <add>, %185, %cst_47 [1] : vector<2x32xf32> to vector<2xf32>
    %187 = vector.shape_cast %186 : vector<2xf32> to vector<2x1xf32>
    %cst_48 = arith.constant 3.200000e+01 : f32
    %188 = vector.broadcast %cst_48 : f32 to vector<2x1xf32>
    %189 = arith.divf %187, %188 : vector<2x1xf32>
    %190 = vector.broadcast %182 : vector<2x1xf32> to vector<2x32xf32>
    %191 = arith.subf %178, %190 : vector<2x32xf32>
    %cst_49 = arith.constant 9.99999974E-6 : f32
    %192 = vector.broadcast %cst_49 : f32 to vector<2x1xf32>
    %193 = arith.addf %189, %192 : vector<2x1xf32>
    %194 = math.rsqrt %193 : vector<2x1xf32>
    %195 = vector.broadcast %194 : vector<2x1xf32> to vector<2x32xf32>
    %196 = arith.mulf %191, %195 : vector<2x32xf32>
    %197 = arith.mulf %196, %36 : vector<2x32xf32>
    %198 = arith.addf %197, %39 : vector<2x32xf32>
    %cst_50 = arith.constant dense<0.000000e+00> : vector<2x32xf32>
    %199 = tpu.matmul %198, %26, %cst_50 {dimension_numbers = #tpu.dot_dimension_numbers<[1], [0], [0], [1], [0, 0, 1, 1], [], []>} : vector<2x32xf32>, vector<32x32xf32>, vector<2x32xf32> -> vector<2x32xf32>
    %200 = arith.addf %199, %42 : vector<2x32xf32>
    %cst_51 = arith.constant dense<0.000000e+00> : vector<2x32xf32>
    %201 = tpu.matmul %198, %27, %cst_51 {dimension_numbers = #tpu.dot_dimension_numbers<[1], [0], [0], [1], [0, 0, 1, 1], [], []>} : vector<2x32xf32>, vector<32x32xf32>, vector<2x32xf32> -> vector<2x32xf32>
    %202 = arith.addf %201, %45 : vector<2x32xf32>
    %cst_52 = arith.constant dense<0.000000e+00> : vector<2x32xf32>
    %203 = tpu.matmul %198, %28, %cst_52 {dimension_numbers = #tpu.dot_dimension_numbers<[1], [0], [0], [1], [0, 0, 1, 1], [], []>} : vector<2x32xf32>, vector<32x32xf32>, vector<2x32xf32> -> vector<2x32xf32>
    %204 = arith.addf %203, %48 : vector<2x32xf32>
    %205 = vector.shape_cast %200 : vector<2x32xf32> to vector<2x1x32xf32>
    "tpu.trace_start"() <{level = 10 : i32, message = "bqh,bnh->bqn"}> : () -> ()
    %cst_53 = arith.constant dense<0.000000e+00> : vector<2x1x8xf32>
    %206 = tpu.matmul %205, %3, %cst_53 {dimension_numbers = #tpu.dot_dimension_numbers<[2], [2], [1], [1], [0, 0, 0, 1, 1, 1], [0], [0]>} : vector<2x1x32xf32>, vector<2x8x32xf32>, vector<2x1x8xf32> -> vector<2x1x8xf32>
    "tpu.trace_stop"() : () -> ()
    %207 = arith.addf %206, %20 : vector<2x1x8xf32>
    %cst_54 = arith.constant dense<0xFF800000> : vector<2x1xf32>
    %208 = vector.multi_reduction <maximumf>, %207, %cst_54 [2] : vector<2x1x8xf32> to vector<2x1xf32>
    %209 = vector.shape_cast %208 : vector<2x1xf32> to vector<2x1x1xf32>
    %210 = vector.broadcast %209 : vector<2x1x1xf32> to vector<2x1x8xf32>
    %211 = arith.subf %207, %210 : vector<2x1x8xf32>
    %212 = math.exp %211 : vector<2x1x8xf32>
    %cst_55 = arith.constant dense<0.000000e+00> : vector<2x1xf32>
    %213 = vector.multi_reduction <add>, %212, %cst_55 [2] : vector<2x1x8xf32> to vector<2x1xf32>
    %214 = vector.shape_cast %213 : vector<2x1xf32> to vector<2x1x1xf32>
    %215 = vector.broadcast %214 : vector<2x1x1xf32> to vector<2x1x8xf32>
    %216 = arith.divf %212, %215 : vector<2x1x8xf32>
    "tpu.trace_start"() <{level = 10 : i32, message = "bqn,bnh->bqh"}> : () -> ()
    %cst_56 = arith.constant dense<0.000000e+00> : vector<2x1x32xf32>
    %217 = tpu.matmul %216, %3, %cst_56 {dimension_numbers = #tpu.dot_dimension_numbers<[2], [1], [1], [2], [0, 0, 0, 1, 1, 2], [0], [0]>} : vector<2x1x8xf32>, vector<2x8x32xf32>, vector<2x1x32xf32> -> vector<2x1x32xf32>
    "tpu.trace_stop"() : () -> ()
    %218 = vector.shape_cast %217 : vector<2x1x32xf32> to vector<2x32xf32>
    %219 = vector.shape_cast %202 : vector<2x32xf32> to vector<2x1x32xf32>
    "tpu.trace_start"() <{level = 10 : i32, message = "bqh,bnh->bqn"}> : () -> ()
    %cst_57 = arith.constant dense<0.000000e+00> : vector<2x1x8xf32>
    %220 = tpu.matmul %219, %2, %cst_57 {dimension_numbers = #tpu.dot_dimension_numbers<[2], [2], [1], [1], [0, 0, 0, 1, 1, 1], [0], [0]>} : vector<2x1x32xf32>, vector<2x8x32xf32>, vector<2x1x8xf32> -> vector<2x1x8xf32>
    "tpu.trace_stop"() : () -> ()
    %221 = arith.addf %220, %12 : vector<2x1x8xf32>
    %cst_58 = arith.constant dense<0xFF800000> : vector<2x1xf32>
    %222 = vector.multi_reduction <maximumf>, %221, %cst_58 [2] : vector<2x1x8xf32> to vector<2x1xf32>
    %223 = vector.shape_cast %222 : vector<2x1xf32> to vector<2x1x1xf32>
    %224 = vector.broadcast %223 : vector<2x1x1xf32> to vector<2x1x8xf32>
    %225 = arith.subf %221, %224 : vector<2x1x8xf32>
    %226 = math.exp %225 : vector<2x1x8xf32>
    %cst_59 = arith.constant dense<0.000000e+00> : vector<2x1xf32>
    %227 = vector.multi_reduction <add>, %226, %cst_59 [2] : vector<2x1x8xf32> to vector<2x1xf32>
    %228 = vector.shape_cast %227 : vector<2x1xf32> to vector<2x1x1xf32>
    %229 = vector.broadcast %228 : vector<2x1x1xf32> to vector<2x1x8xf32>
    %230 = arith.divf %226, %229 : vector<2x1x8xf32>
    "tpu.trace_start"() <{level = 10 : i32, message = "bqn,bnh->bqh"}> : () -> ()
    %cst_60 = arith.constant dense<0.000000e+00> : vector<2x1x32xf32>
    %231 = tpu.matmul %230, %2, %cst_60 {dimension_numbers = #tpu.dot_dimension_numbers<[2], [1], [1], [2], [0, 0, 0, 1, 1, 2], [0], [0]>} : vector<2x1x8xf32>, vector<2x8x32xf32>, vector<2x1x32xf32> -> vector<2x1x32xf32>
    "tpu.trace_stop"() : () -> ()
    %232 = vector.shape_cast %231 : vector<2x1x32xf32> to vector<2x32xf32>
    %233 = vector.shape_cast %230 : vector<2x1x8xf32> to vector<2x8xf32>
    %234 = arith.mulf %204, %218 : vector<2x32xf32>
    %cst_61 = arith.constant dense<0.000000e+00> : vector<2xf32>
    %235 = vector.multi_reduction <add>, %234, %cst_61 [1] : vector<2x32xf32> to vector<2xf32>
    %236 = vector.shape_cast %235 : vector<2xf32> to vector<2x1xf32>
    %237 = arith.mulf %204, %232 : vector<2x32xf32>
    %cst_62 = arith.constant dense<0.000000e+00> : vector<2xf32>
    %238 = vector.multi_reduction <add>, %237, %cst_62 [1] : vector<2x32xf32> to vector<2xf32>
    %239 = vector.shape_cast %238 : vector<2xf32> to vector<2x1xf32>
    %240 = arith.maximumf %236, %239 : vector<2x1xf32>
    %241 = arith.subf %236, %240 : vector<2x1xf32>
    %242 = math.exp %241 : vector<2x1xf32>
    %243 = arith.subf %239, %240 : vector<2x1xf32>
    %244 = math.exp %243 : vector<2x1xf32>
    %245 = vector.broadcast %242 : vector<2x1xf32> to vector<2x32xf32>
    %246 = arith.mulf %245, %218 : vector<2x32xf32>
    %247 = vector.broadcast %244 : vector<2x1xf32> to vector<2x32xf32>
    %248 = arith.mulf %247, %232 : vector<2x32xf32>
    %249 = arith.addf %246, %248 : vector<2x32xf32>
    %250 = arith.addf %242, %244 : vector<2x1xf32>
    %251 = vector.broadcast %250 : vector<2x1xf32> to vector<2x32xf32>
    %252 = arith.divf %249, %251 : vector<2x32xf32>
    %253 = vector.extract_strided_slice %61 {offsets = [4, 0], sizes = [2, 128], strides = [1, 1]} : vector<16x128xf32> to vector<2x128xf32>
    %cst_63 = arith.constant dense<0.000000e+00> : vector<2x128xf32>
    %254 = tpu.matmul %252, %23, %cst_63 {dimension_numbers = #tpu.dot_dimension_numbers<[1], [0], [0], [1], [0, 0, 1, 1], [], []>} : vector<2x32xf32>, vector<32x128xf32>, vector<2x128xf32> -> vector<2x128xf32>
    %255 = arith.addf %253, %254 : vector<2x128xf32>
    %cst_64 = arith.constant dense<0.000000e+00> : vector<2x128xf32>
    %256 = tpu.matmul %178, %24, %cst_64 {dimension_numbers = #tpu.dot_dimension_numbers<[1], [0], [0], [1], [0, 0, 1, 1], [], []>} : vector<2x32xf32>, vector<32x128xf32>, vector<2x128xf32> -> vector<2x128xf32>
    %257 = arith.addf %255, %256 : vector<2x128xf32>
    %258 = arith.negf %257 : vector<2x128xf32>
    %259 = math.exp %258 : vector<2x128xf32>
    %cst_65 = arith.constant 1.000000e+00 : f32
    %260 = vector.broadcast %cst_65 : f32 to vector<2x128xf32>
    %261 = arith.addf %260, %259 : vector<2x128xf32>
    %262 = arith.divf %260, %261 : vector<2x128xf32>
    %263 = math.tanh %257 : vector<2x128xf32>
    %264 = vector.extract_strided_slice %262 {offsets = [0, 32], sizes = [2, 32], strides = [1, 1]} : vector<2x128xf32> to vector<2x32xf32>
    %265 = arith.mulf %264, %175 : vector<2x32xf32>
    %266 = vector.extract_strided_slice %262 {offsets = [0, 0], sizes = [2, 32], strides = [1, 1]} : vector<2x128xf32> to vector<2x32xf32>
    %267 = vector.extract_strided_slice %263 {offsets = [0, 64], sizes = [2, 32], strides = [1, 1]} : vector<2x128xf32> to vector<2x32xf32>
    %268 = arith.mulf %266, %267 : vector<2x32xf32>
    %269 = arith.addf %265, %268 : vector<2x32xf32>
    %270 = vector.extract_strided_slice %262 {offsets = [0, 96], sizes = [2, 32], strides = [1, 1]} : vector<2x128xf32> to vector<2x32xf32>
    %271 = math.tanh %269 : vector<2x32xf32>
    %272 = arith.mulf %270, %271 : vector<2x32xf32>
    %cst_66 = arith.constant dense<0.000000e+00> : vector<2xf32>
    %273 = vector.multi_reduction <add>, %272, %cst_66 [1] : vector<2x32xf32> to vector<2xf32>
    %274 = vector.shape_cast %273 : vector<2xf32> to vector<2x1xf32>
    %cst_67 = arith.constant 3.200000e+01 : f32
    %275 = vector.broadcast %cst_67 : f32 to vector<2x1xf32>
    %276 = arith.divf %274, %275 : vector<2x1xf32>
    %277 = vector.broadcast %276 : vector<2x1xf32> to vector<2x32xf32>
    %278 = arith.subf %272, %277 : vector<2x32xf32>
    %279 = arith.mulf %278, %278 : vector<2x32xf32>
    %cst_68 = arith.constant dense<0.000000e+00> : vector<2xf32>
    %280 = vector.multi_reduction <add>, %279, %cst_68 [1] : vector<2x32xf32> to vector<2xf32>
    %281 = vector.shape_cast %280 : vector<2xf32> to vector<2x1xf32>
    %cst_69 = arith.constant 3.200000e+01 : f32
    %282 = vector.broadcast %cst_69 : f32 to vector<2x1xf32>
    %283 = arith.divf %281, %282 : vector<2x1xf32>
    %284 = vector.broadcast %276 : vector<2x1xf32> to vector<2x32xf32>
    %285 = arith.subf %272, %284 : vector<2x32xf32>
    %cst_70 = arith.constant 9.99999974E-6 : f32
    %286 = vector.broadcast %cst_70 : f32 to vector<2x1xf32>
    %287 = arith.addf %283, %286 : vector<2x1xf32>
    %288 = math.rsqrt %287 : vector<2x1xf32>
    %289 = vector.broadcast %288 : vector<2x1xf32> to vector<2x32xf32>
    %290 = arith.mulf %285, %289 : vector<2x32xf32>
    %291 = arith.mulf %290, %36 : vector<2x32xf32>
    %292 = arith.addf %291, %39 : vector<2x32xf32>
    %cst_71 = arith.constant dense<0.000000e+00> : vector<2x32xf32>
    %293 = tpu.matmul %292, %26, %cst_71 {dimension_numbers = #tpu.dot_dimension_numbers<[1], [0], [0], [1], [0, 0, 1, 1], [], []>} : vector<2x32xf32>, vector<32x32xf32>, vector<2x32xf32> -> vector<2x32xf32>
    %294 = arith.addf %293, %42 : vector<2x32xf32>
    %cst_72 = arith.constant dense<0.000000e+00> : vector<2x32xf32>
    %295 = tpu.matmul %292, %27, %cst_72 {dimension_numbers = #tpu.dot_dimension_numbers<[1], [0], [0], [1], [0, 0, 1, 1], [], []>} : vector<2x32xf32>, vector<32x32xf32>, vector<2x32xf32> -> vector<2x32xf32>
    %296 = arith.addf %295, %45 : vector<2x32xf32>
    %cst_73 = arith.constant dense<0.000000e+00> : vector<2x32xf32>
    %297 = tpu.matmul %292, %28, %cst_73 {dimension_numbers = #tpu.dot_dimension_numbers<[1], [0], [0], [1], [0, 0, 1, 1], [], []>} : vector<2x32xf32>, vector<32x32xf32>, vector<2x32xf32> -> vector<2x32xf32>
    %298 = arith.addf %297, %48 : vector<2x32xf32>
    %299 = vector.shape_cast %294 : vector<2x32xf32> to vector<2x1x32xf32>
    "tpu.trace_start"() <{level = 10 : i32, message = "bqh,bnh->bqn"}> : () -> ()
    %cst_74 = arith.constant dense<0.000000e+00> : vector<2x1x8xf32>
    %300 = tpu.matmul %299, %3, %cst_74 {dimension_numbers = #tpu.dot_dimension_numbers<[2], [2], [1], [1], [0, 0, 0, 1, 1, 1], [0], [0]>} : vector<2x1x32xf32>, vector<2x8x32xf32>, vector<2x1x8xf32> -> vector<2x1x8xf32>
    "tpu.trace_stop"() : () -> ()
    %301 = arith.addf %300, %20 : vector<2x1x8xf32>
    %cst_75 = arith.constant dense<0xFF800000> : vector<2x1xf32>
    %302 = vector.multi_reduction <maximumf>, %301, %cst_75 [2] : vector<2x1x8xf32> to vector<2x1xf32>
    %303 = vector.shape_cast %302 : vector<2x1xf32> to vector<2x1x1xf32>
    %304 = vector.broadcast %303 : vector<2x1x1xf32> to vector<2x1x8xf32>
    %305 = arith.subf %301, %304 : vector<2x1x8xf32>
    %306 = math.exp %305 : vector<2x1x8xf32>
    %cst_76 = arith.constant dense<0.000000e+00> : vector<2x1xf32>
    %307 = vector.multi_reduction <add>, %306, %cst_76 [2] : vector<2x1x8xf32> to vector<2x1xf32>
    %308 = vector.shape_cast %307 : vector<2x1xf32> to vector<2x1x1xf32>
    %309 = vector.broadcast %308 : vector<2x1x1xf32> to vector<2x1x8xf32>
    %310 = arith.divf %306, %309 : vector<2x1x8xf32>
    "tpu.trace_start"() <{level = 10 : i32, message = "bqn,bnh->bqh"}> : () -> ()
    %cst_77 = arith.constant dense<0.000000e+00> : vector<2x1x32xf32>
    %311 = tpu.matmul %310, %3, %cst_77 {dimension_numbers = #tpu.dot_dimension_numbers<[2], [1], [1], [2], [0, 0, 0, 1, 1, 2], [0], [0]>} : vector<2x1x8xf32>, vector<2x8x32xf32>, vector<2x1x32xf32> -> vector<2x1x32xf32>
    "tpu.trace_stop"() : () -> ()
    %312 = vector.shape_cast %311 : vector<2x1x32xf32> to vector<2x32xf32>
    %313 = vector.shape_cast %296 : vector<2x32xf32> to vector<2x1x32xf32>
    "tpu.trace_start"() <{level = 10 : i32, message = "bqh,bnh->bqn"}> : () -> ()
    %cst_78 = arith.constant dense<0.000000e+00> : vector<2x1x8xf32>
    %314 = tpu.matmul %313, %2, %cst_78 {dimension_numbers = #tpu.dot_dimension_numbers<[2], [2], [1], [1], [0, 0, 0, 1, 1, 1], [0], [0]>} : vector<2x1x32xf32>, vector<2x8x32xf32>, vector<2x1x8xf32> -> vector<2x1x8xf32>
    "tpu.trace_stop"() : () -> ()
    %315 = arith.addf %314, %12 : vector<2x1x8xf32>
    %cst_79 = arith.constant dense<0xFF800000> : vector<2x1xf32>
    %316 = vector.multi_reduction <maximumf>, %315, %cst_79 [2] : vector<2x1x8xf32> to vector<2x1xf32>
    %317 = vector.shape_cast %316 : vector<2x1xf32> to vector<2x1x1xf32>
    %318 = vector.broadcast %317 : vector<2x1x1xf32> to vector<2x1x8xf32>
    %319 = arith.subf %315, %318 : vector<2x1x8xf32>
    %320 = math.exp %319 : vector<2x1x8xf32>
    %cst_80 = arith.constant dense<0.000000e+00> : vector<2x1xf32>
    %321 = vector.multi_reduction <add>, %320, %cst_80 [2] : vector<2x1x8xf32> to vector<2x1xf32>
    %322 = vector.shape_cast %321 : vector<2x1xf32> to vector<2x1x1xf32>
    %323 = vector.broadcast %322 : vector<2x1x1xf32> to vector<2x1x8xf32>
    %324 = arith.divf %320, %323 : vector<2x1x8xf32>
    "tpu.trace_start"() <{level = 10 : i32, message = "bqn,bnh->bqh"}> : () -> ()
    %cst_81 = arith.constant dense<0.000000e+00> : vector<2x1x32xf32>
    %325 = tpu.matmul %324, %2, %cst_81 {dimension_numbers = #tpu.dot_dimension_numbers<[2], [1], [1], [2], [0, 0, 0, 1, 1, 2], [0], [0]>} : vector<2x1x8xf32>, vector<2x8x32xf32>, vector<2x1x32xf32> -> vector<2x1x32xf32>
    "tpu.trace_stop"() : () -> ()
    %326 = vector.shape_cast %325 : vector<2x1x32xf32> to vector<2x32xf32>
    %327 = vector.shape_cast %324 : vector<2x1x8xf32> to vector<2x8xf32>
    %328 = arith.mulf %298, %312 : vector<2x32xf32>
    %cst_82 = arith.constant dense<0.000000e+00> : vector<2xf32>
    %329 = vector.multi_reduction <add>, %328, %cst_82 [1] : vector<2x32xf32> to vector<2xf32>
    %330 = vector.shape_cast %329 : vector<2xf32> to vector<2x1xf32>
    %331 = arith.mulf %298, %326 : vector<2x32xf32>
    %cst_83 = arith.constant dense<0.000000e+00> : vector<2xf32>
    %332 = vector.multi_reduction <add>, %331, %cst_83 [1] : vector<2x32xf32> to vector<2xf32>
    %333 = vector.shape_cast %332 : vector<2xf32> to vector<2x1xf32>
    %334 = arith.maximumf %330, %333 : vector<2x1xf32>
    %335 = arith.subf %330, %334 : vector<2x1xf32>
    %336 = math.exp %335 : vector<2x1xf32>
    %337 = arith.subf %333, %334 : vector<2x1xf32>
    %338 = math.exp %337 : vector<2x1xf32>
    %339 = vector.broadcast %336 : vector<2x1xf32> to vector<2x32xf32>
    %340 = arith.mulf %339, %312 : vector<2x32xf32>
    %341 = vector.broadcast %338 : vector<2x1xf32> to vector<2x32xf32>
    %342 = arith.mulf %341, %326 : vector<2x32xf32>
    %343 = arith.addf %340, %342 : vector<2x32xf32>
    %344 = arith.addf %336, %338 : vector<2x1xf32>
    %345 = vector.broadcast %344 : vector<2x1xf32> to vector<2x32xf32>
    %346 = arith.divf %343, %345 : vector<2x32xf32>
    %347 = vector.extract_strided_slice %61 {offsets = [6, 0], sizes = [2, 128], strides = [1, 1]} : vector<16x128xf32> to vector<2x128xf32>
    %cst_84 = arith.constant dense<0.000000e+00> : vector<2x128xf32>
    %348 = tpu.matmul %346, %23, %cst_84 {dimension_numbers = #tpu.dot_dimension_numbers<[1], [0], [0], [1], [0, 0, 1, 1], [], []>} : vector<2x32xf32>, vector<32x128xf32>, vector<2x128xf32> -> vector<2x128xf32>
    %349 = arith.addf %347, %348 : vector<2x128xf32>
    %cst_85 = arith.constant dense<0.000000e+00> : vector<2x128xf32>
    %350 = tpu.matmul %272, %24, %cst_85 {dimension_numbers = #tpu.dot_dimension_numbers<[1], [0], [0], [1], [0, 0, 1, 1], [], []>} : vector<2x32xf32>, vector<32x128xf32>, vector<2x128xf32> -> vector<2x128xf32>
    %351 = arith.addf %349, %350 : vector<2x128xf32>
    %352 = arith.negf %351 : vector<2x128xf32>
    %353 = math.exp %352 : vector<2x128xf32>
    %cst_86 = arith.constant 1.000000e+00 : f32
    %354 = vector.broadcast %cst_86 : f32 to vector<2x128xf32>
    %355 = arith.addf %354, %353 : vector<2x128xf32>
    %356 = arith.divf %354, %355 : vector<2x128xf32>
    %357 = math.tanh %351 : vector<2x128xf32>
    %358 = vector.extract_strided_slice %356 {offsets = [0, 32], sizes = [2, 32], strides = [1, 1]} : vector<2x128xf32> to vector<2x32xf32>
    %359 = arith.mulf %358, %269 : vector<2x32xf32>
    %360 = vector.extract_strided_slice %356 {offsets = [0, 0], sizes = [2, 32], strides = [1, 1]} : vector<2x128xf32> to vector<2x32xf32>
    %361 = vector.extract_strided_slice %357 {offsets = [0, 64], sizes = [2, 32], strides = [1, 1]} : vector<2x128xf32> to vector<2x32xf32>
    %362 = arith.mulf %360, %361 : vector<2x32xf32>
    %363 = arith.addf %359, %362 : vector<2x32xf32>
    %364 = vector.extract_strided_slice %356 {offsets = [0, 96], sizes = [2, 32], strides = [1, 1]} : vector<2x128xf32> to vector<2x32xf32>
    %365 = math.tanh %363 : vector<2x32xf32>
    %366 = arith.mulf %364, %365 : vector<2x32xf32>
    %cst_87 = arith.constant dense<0.000000e+00> : vector<2xf32>
    %367 = vector.multi_reduction <add>, %366, %cst_87 [1] : vector<2x32xf32> to vector<2xf32>
    %368 = vector.shape_cast %367 : vector<2xf32> to vector<2x1xf32>
    %cst_88 = arith.constant 3.200000e+01 : f32
    %369 = vector.broadcast %cst_88 : f32 to vector<2x1xf32>
    %370 = arith.divf %368, %369 : vector<2x1xf32>
    %371 = vector.broadcast %370 : vector<2x1xf32> to vector<2x32xf32>
    %372 = arith.subf %366, %371 : vector<2x32xf32>
    %373 = arith.mulf %372, %372 : vector<2x32xf32>
    %cst_89 = arith.constant dense<0.000000e+00> : vector<2xf32>
    %374 = vector.multi_reduction <add>, %373, %cst_89 [1] : vector<2x32xf32> to vector<2xf32>
    %375 = vector.shape_cast %374 : vector<2xf32> to vector<2x1xf32>
    %cst_90 = arith.constant 3.200000e+01 : f32
    %376 = vector.broadcast %cst_90 : f32 to vector<2x1xf32>
    %377 = arith.divf %375, %376 : vector<2x1xf32>
    %378 = vector.broadcast %370 : vector<2x1xf32> to vector<2x32xf32>
    %379 = arith.subf %366, %378 : vector<2x32xf32>
    %cst_91 = arith.constant 9.99999974E-6 : f32
    %380 = vector.broadcast %cst_91 : f32 to vector<2x1xf32>
    %381 = arith.addf %377, %380 : vector<2x1xf32>
    %382 = math.rsqrt %381 : vector<2x1xf32>
    %383 = vector.broadcast %382 : vector<2x1xf32> to vector<2x32xf32>
    %384 = arith.mulf %379, %383 : vector<2x32xf32>
    %385 = arith.mulf %384, %36 : vector<2x32xf32>
    %386 = arith.addf %385, %39 : vector<2x32xf32>
    %cst_92 = arith.constant dense<0.000000e+00> : vector<2x32xf32>
    %387 = tpu.matmul %386, %26, %cst_92 {dimension_numbers = #tpu.dot_dimension_numbers<[1], [0], [0], [1], [0, 0, 1, 1], [], []>} : vector<2x32xf32>, vector<32x32xf32>, vector<2x32xf32> -> vector<2x32xf32>
    %388 = arith.addf %387, %42 : vector<2x32xf32>
    %cst_93 = arith.constant dense<0.000000e+00> : vector<2x32xf32>
    %389 = tpu.matmul %386, %27, %cst_93 {dimension_numbers = #tpu.dot_dimension_numbers<[1], [0], [0], [1], [0, 0, 1, 1], [], []>} : vector<2x32xf32>, vector<32x32xf32>, vector<2x32xf32> -> vector<2x32xf32>
    %390 = arith.addf %389, %45 : vector<2x32xf32>
    %cst_94 = arith.constant dense<0.000000e+00> : vector<2x32xf32>
    %391 = tpu.matmul %386, %28, %cst_94 {dimension_numbers = #tpu.dot_dimension_numbers<[1], [0], [0], [1], [0, 0, 1, 1], [], []>} : vector<2x32xf32>, vector<32x32xf32>, vector<2x32xf32> -> vector<2x32xf32>
    %392 = arith.addf %391, %48 : vector<2x32xf32>
    %393 = vector.shape_cast %388 : vector<2x32xf32> to vector<2x1x32xf32>
    "tpu.trace_start"() <{level = 10 : i32, message = "bqh,bnh->bqn"}> : () -> ()
    %cst_95 = arith.constant dense<0.000000e+00> : vector<2x1x8xf32>
    %394 = tpu.matmul %393, %3, %cst_95 {dimension_numbers = #tpu.dot_dimension_numbers<[2], [2], [1], [1], [0, 0, 0, 1, 1, 1], [0], [0]>} : vector<2x1x32xf32>, vector<2x8x32xf32>, vector<2x1x8xf32> -> vector<2x1x8xf32>
    "tpu.trace_stop"() : () -> ()
    %395 = arith.addf %394, %20 : vector<2x1x8xf32>
    %cst_96 = arith.constant dense<0xFF800000> : vector<2x1xf32>
    %396 = vector.multi_reduction <maximumf>, %395, %cst_96 [2] : vector<2x1x8xf32> to vector<2x1xf32>
    %397 = vector.shape_cast %396 : vector<2x1xf32> to vector<2x1x1xf32>
    %398 = vector.broadcast %397 : vector<2x1x1xf32> to vector<2x1x8xf32>
    %399 = arith.subf %395, %398 : vector<2x1x8xf32>
    %400 = math.exp %399 : vector<2x1x8xf32>
    %cst_97 = arith.constant dense<0.000000e+00> : vector<2x1xf32>
    %401 = vector.multi_reduction <add>, %400, %cst_97 [2] : vector<2x1x8xf32> to vector<2x1xf32>
    %402 = vector.shape_cast %401 : vector<2x1xf32> to vector<2x1x1xf32>
    %403 = vector.broadcast %402 : vector<2x1x1xf32> to vector<2x1x8xf32>
    %404 = arith.divf %400, %403 : vector<2x1x8xf32>
    "tpu.trace_start"() <{level = 10 : i32, message = "bqn,bnh->bqh"}> : () -> ()
    %cst_98 = arith.constant dense<0.000000e+00> : vector<2x1x32xf32>
    %405 = tpu.matmul %404, %3, %cst_98 {dimension_numbers = #tpu.dot_dimension_numbers<[2], [1], [1], [2], [0, 0, 0, 1, 1, 2], [0], [0]>} : vector<2x1x8xf32>, vector<2x8x32xf32>, vector<2x1x32xf32> -> vector<2x1x32xf32>
    "tpu.trace_stop"() : () -> ()
    %406 = vector.shape_cast %405 : vector<2x1x32xf32> to vector<2x32xf32>
    %407 = vector.shape_cast %390 : vector<2x32xf32> to vector<2x1x32xf32>
    "tpu.trace_start"() <{level = 10 : i32, message = "bqh,bnh->bqn"}> : () -> ()
    %cst_99 = arith.constant dense<0.000000e+00> : vector<2x1x8xf32>
    %408 = tpu.matmul %407, %2, %cst_99 {dimension_numbers = #tpu.dot_dimension_numbers<[2], [2], [1], [1], [0, 0, 0, 1, 1, 1], [0], [0]>} : vector<2x1x32xf32>, vector<2x8x32xf32>, vector<2x1x8xf32> -> vector<2x1x8xf32>
    "tpu.trace_stop"() : () -> ()
    %409 = arith.addf %408, %12 : vector<2x1x8xf32>
    %cst_100 = arith.constant dense<0xFF800000> : vector<2x1xf32>
    %410 = vector.multi_reduction <maximumf>, %409, %cst_100 [2] : vector<2x1x8xf32> to vector<2x1xf32>
    %411 = vector.shape_cast %410 : vector<2x1xf32> to vector<2x1x1xf32>
    %412 = vector.broadcast %411 : vector<2x1x1xf32> to vector<2x1x8xf32>
    %413 = arith.subf %409, %412 : vector<2x1x8xf32>
    %414 = math.exp %413 : vector<2x1x8xf32>
    %cst_101 = arith.constant dense<0.000000e+00> : vector<2x1xf32>
    %415 = vector.multi_reduction <add>, %414, %cst_101 [2] : vector<2x1x8xf32> to vector<2x1xf32>
    %416 = vector.shape_cast %415 : vector<2x1xf32> to vector<2x1x1xf32>
    %417 = vector.broadcast %416 : vector<2x1x1xf32> to vector<2x1x8xf32>
    %418 = arith.divf %414, %417 : vector<2x1x8xf32>
    "tpu.trace_start"() <{level = 10 : i32, message = "bqn,bnh->bqh"}> : () -> ()
    %cst_102 = arith.constant dense<0.000000e+00> : vector<2x1x32xf32>
    %419 = tpu.matmul %418, %2, %cst_102 {dimension_numbers = #tpu.dot_dimension_numbers<[2], [1], [1], [2], [0, 0, 0, 1, 1, 2], [0], [0]>} : vector<2x1x8xf32>, vector<2x8x32xf32>, vector<2x1x32xf32> -> vector<2x1x32xf32>
    "tpu.trace_stop"() : () -> ()
    %420 = vector.shape_cast %419 : vector<2x1x32xf32> to vector<2x32xf32>
    %421 = vector.shape_cast %418 : vector<2x1x8xf32> to vector<2x8xf32>
    %422 = arith.mulf %392, %406 : vector<2x32xf32>
    %cst_103 = arith.constant dense<0.000000e+00> : vector<2xf32>
    %423 = vector.multi_reduction <add>, %422, %cst_103 [1] : vector<2x32xf32> to vector<2xf32>
    %424 = vector.shape_cast %423 : vector<2xf32> to vector<2x1xf32>
    %425 = arith.mulf %392, %420 : vector<2x32xf32>
    %cst_104 = arith.constant dense<0.000000e+00> : vector<2xf32>
    %426 = vector.multi_reduction <add>, %425, %cst_104 [1] : vector<2x32xf32> to vector<2xf32>
    %427 = vector.shape_cast %426 : vector<2xf32> to vector<2x1xf32>
    %428 = arith.maximumf %424, %427 : vector<2x1xf32>
    %429 = arith.subf %424, %428 : vector<2x1xf32>
    %430 = math.exp %429 : vector<2x1xf32>
    %431 = arith.subf %427, %428 : vector<2x1xf32>
    %432 = math.exp %431 : vector<2x1xf32>
    %433 = vector.broadcast %430 : vector<2x1xf32> to vector<2x32xf32>
    %434 = arith.mulf %433, %406 : vector<2x32xf32>
    %435 = vector.broadcast %432 : vector<2x1xf32> to vector<2x32xf32>
    %436 = arith.mulf %435, %420 : vector<2x32xf32>
    %437 = arith.addf %434, %436 : vector<2x32xf32>
    %438 = arith.addf %430, %432 : vector<2x1xf32>
    %439 = vector.broadcast %438 : vector<2x1xf32> to vector<2x32xf32>
    %440 = arith.divf %437, %439 : vector<2x32xf32>
    %441 = vector.extract_strided_slice %61 {offsets = [8, 0], sizes = [2, 128], strides = [1, 1]} : vector<16x128xf32> to vector<2x128xf32>
    %cst_105 = arith.constant dense<0.000000e+00> : vector<2x128xf32>
    %442 = tpu.matmul %440, %23, %cst_105 {dimension_numbers = #tpu.dot_dimension_numbers<[1], [0], [0], [1], [0, 0, 1, 1], [], []>} : vector<2x32xf32>, vector<32x128xf32>, vector<2x128xf32> -> vector<2x128xf32>
    %443 = arith.addf %441, %442 : vector<2x128xf32>
    %cst_106 = arith.constant dense<0.000000e+00> : vector<2x128xf32>
    %444 = tpu.matmul %366, %24, %cst_106 {dimension_numbers = #tpu.dot_dimension_numbers<[1], [0], [0], [1], [0, 0, 1, 1], [], []>} : vector<2x32xf32>, vector<32x128xf32>, vector<2x128xf32> -> vector<2x128xf32>
    %445 = arith.addf %443, %444 : vector<2x128xf32>
    %446 = arith.negf %445 : vector<2x128xf32>
    %447 = math.exp %446 : vector<2x128xf32>
    %cst_107 = arith.constant 1.000000e+00 : f32
    %448 = vector.broadcast %cst_107 : f32 to vector<2x128xf32>
    %449 = arith.addf %448, %447 : vector<2x128xf32>
    %450 = arith.divf %448, %449 : vector<2x128xf32>
    %451 = math.tanh %445 : vector<2x128xf32>
    %452 = vector.extract_strided_slice %450 {offsets = [0, 32], sizes = [2, 32], strides = [1, 1]} : vector<2x128xf32> to vector<2x32xf32>
    %453 = arith.mulf %452, %363 : vector<2x32xf32>
    %454 = vector.extract_strided_slice %450 {offsets = [0, 0], sizes = [2, 32], strides = [1, 1]} : vector<2x128xf32> to vector<2x32xf32>
    %455 = vector.extract_strided_slice %451 {offsets = [0, 64], sizes = [2, 32], strides = [1, 1]} : vector<2x128xf32> to vector<2x32xf32>
    %456 = arith.mulf %454, %455 : vector<2x32xf32>
    %457 = arith.addf %453, %456 : vector<2x32xf32>
    %458 = vector.extract_strided_slice %450 {offsets = [0, 96], sizes = [2, 32], strides = [1, 1]} : vector<2x128xf32> to vector<2x32xf32>
    %459 = math.tanh %457 : vector<2x32xf32>
    %460 = arith.mulf %458, %459 : vector<2x32xf32>
    %cst_108 = arith.constant dense<0.000000e+00> : vector<2xf32>
    %461 = vector.multi_reduction <add>, %460, %cst_108 [1] : vector<2x32xf32> to vector<2xf32>
    %462 = vector.shape_cast %461 : vector<2xf32> to vector<2x1xf32>
    %cst_109 = arith.constant 3.200000e+01 : f32
    %463 = vector.broadcast %cst_109 : f32 to vector<2x1xf32>
    %464 = arith.divf %462, %463 : vector<2x1xf32>
    %465 = vector.broadcast %464 : vector<2x1xf32> to vector<2x32xf32>
    %466 = arith.subf %460, %465 : vector<2x32xf32>
    %467 = arith.mulf %466, %466 : vector<2x32xf32>
    %cst_110 = arith.constant dense<0.000000e+00> : vector<2xf32>
    %468 = vector.multi_reduction <add>, %467, %cst_110 [1] : vector<2x32xf32> to vector<2xf32>
    %469 = vector.shape_cast %468 : vector<2xf32> to vector<2x1xf32>
    %cst_111 = arith.constant 3.200000e+01 : f32
    %470 = vector.broadcast %cst_111 : f32 to vector<2x1xf32>
    %471 = arith.divf %469, %470 : vector<2x1xf32>
    %472 = vector.broadcast %464 : vector<2x1xf32> to vector<2x32xf32>
    %473 = arith.subf %460, %472 : vector<2x32xf32>
    %cst_112 = arith.constant 9.99999974E-6 : f32
    %474 = vector.broadcast %cst_112 : f32 to vector<2x1xf32>
    %475 = arith.addf %471, %474 : vector<2x1xf32>
    %476 = math.rsqrt %475 : vector<2x1xf32>
    %477 = vector.broadcast %476 : vector<2x1xf32> to vector<2x32xf32>
    %478 = arith.mulf %473, %477 : vector<2x32xf32>
    %479 = arith.mulf %478, %36 : vector<2x32xf32>
    %480 = arith.addf %479, %39 : vector<2x32xf32>
    %cst_113 = arith.constant dense<0.000000e+00> : vector<2x32xf32>
    %481 = tpu.matmul %480, %26, %cst_113 {dimension_numbers = #tpu.dot_dimension_numbers<[1], [0], [0], [1], [0, 0, 1, 1], [], []>} : vector<2x32xf32>, vector<32x32xf32>, vector<2x32xf32> -> vector<2x32xf32>
    %482 = arith.addf %481, %42 : vector<2x32xf32>
    %cst_114 = arith.constant dense<0.000000e+00> : vector<2x32xf32>
    %483 = tpu.matmul %480, %27, %cst_114 {dimension_numbers = #tpu.dot_dimension_numbers<[1], [0], [0], [1], [0, 0, 1, 1], [], []>} : vector<2x32xf32>, vector<32x32xf32>, vector<2x32xf32> -> vector<2x32xf32>
    %484 = arith.addf %483, %45 : vector<2x32xf32>
    %cst_115 = arith.constant dense<0.000000e+00> : vector<2x32xf32>
    %485 = tpu.matmul %480, %28, %cst_115 {dimension_numbers = #tpu.dot_dimension_numbers<[1], [0], [0], [1], [0, 0, 1, 1], [], []>} : vector<2x32xf32>, vector<32x32xf32>, vector<2x32xf32> -> vector<2x32xf32>
    %486 = arith.addf %485, %48 : vector<2x32xf32>
    %487 = vector.shape_cast %482 : vector<2x32xf32> to vector<2x1x32xf32>
    "tpu.trace_start"() <{level = 10 : i32, message = "bqh,bnh->bqn"}> : () -> ()
    %cst_116 = arith.constant dense<0.000000e+00> : vector<2x1x8xf32>
    %488 = tpu.matmul %487, %3, %cst_116 {dimension_numbers = #tpu.dot_dimension_numbers<[2], [2], [1], [1], [0, 0, 0, 1, 1, 1], [0], [0]>} : vector<2x1x32xf32>, vector<2x8x32xf32>, vector<2x1x8xf32> -> vector<2x1x8xf32>
    "tpu.trace_stop"() : () -> ()
    %489 = arith.addf %488, %20 : vector<2x1x8xf32>
    %cst_117 = arith.constant dense<0xFF800000> : vector<2x1xf32>
    %490 = vector.multi_reduction <maximumf>, %489, %cst_117 [2] : vector<2x1x8xf32> to vector<2x1xf32>
    %491 = vector.shape_cast %490 : vector<2x1xf32> to vector<2x1x1xf32>
    %492 = vector.broadcast %491 : vector<2x1x1xf32> to vector<2x1x8xf32>
    %493 = arith.subf %489, %492 : vector<2x1x8xf32>
    %494 = math.exp %493 : vector<2x1x8xf32>
    %cst_118 = arith.constant dense<0.000000e+00> : vector<2x1xf32>
    %495 = vector.multi_reduction <add>, %494, %cst_118 [2] : vector<2x1x8xf32> to vector<2x1xf32>
    %496 = vector.shape_cast %495 : vector<2x1xf32> to vector<2x1x1xf32>
    %497 = vector.broadcast %496 : vector<2x1x1xf32> to vector<2x1x8xf32>
    %498 = arith.divf %494, %497 : vector<2x1x8xf32>
    "tpu.trace_start"() <{level = 10 : i32, message = "bqn,bnh->bqh"}> : () -> ()
    %cst_119 = arith.constant dense<0.000000e+00> : vector<2x1x32xf32>
    %499 = tpu.matmul %498, %3, %cst_119 {dimension_numbers = #tpu.dot_dimension_numbers<[2], [1], [1], [2], [0, 0, 0, 1, 1, 2], [0], [0]>} : vector<2x1x8xf32>, vector<2x8x32xf32>, vector<2x1x32xf32> -> vector<2x1x32xf32>
    "tpu.trace_stop"() : () -> ()
    %500 = vector.shape_cast %499 : vector<2x1x32xf32> to vector<2x32xf32>
    %501 = vector.shape_cast %484 : vector<2x32xf32> to vector<2x1x32xf32>
    "tpu.trace_start"() <{level = 10 : i32, message = "bqh,bnh->bqn"}> : () -> ()
    %cst_120 = arith.constant dense<0.000000e+00> : vector<2x1x8xf32>
    %502 = tpu.matmul %501, %2, %cst_120 {dimension_numbers = #tpu.dot_dimension_numbers<[2], [2], [1], [1], [0, 0, 0, 1, 1, 1], [0], [0]>} : vector<2x1x32xf32>, vector<2x8x32xf32>, vector<2x1x8xf32> -> vector<2x1x8xf32>
    "tpu.trace_stop"() : () -> ()
    %503 = arith.addf %502, %12 : vector<2x1x8xf32>
    %cst_121 = arith.constant dense<0xFF800000> : vector<2x1xf32>
    %504 = vector.multi_reduction <maximumf>, %503, %cst_121 [2] : vector<2x1x8xf32> to vector<2x1xf32>
    %505 = vector.shape_cast %504 : vector<2x1xf32> to vector<2x1x1xf32>
    %506 = vector.broadcast %505 : vector<2x1x1xf32> to vector<2x1x8xf32>
    %507 = arith.subf %503, %506 : vector<2x1x8xf32>
    %508 = math.exp %507 : vector<2x1x8xf32>
    %cst_122 = arith.constant dense<0.000000e+00> : vector<2x1xf32>
    %509 = vector.multi_reduction <add>, %508, %cst_122 [2] : vector<2x1x8xf32> to vector<2x1xf32>
    %510 = vector.shape_cast %509 : vector<2x1xf32> to vector<2x1x1xf32>
    %511 = vector.broadcast %510 : vector<2x1x1xf32> to vector<2x1x8xf32>
    %512 = arith.divf %508, %511 : vector<2x1x8xf32>
    "tpu.trace_start"() <{level = 10 : i32, message = "bqn,bnh->bqh"}> : () -> ()
    %cst_123 = arith.constant dense<0.000000e+00> : vector<2x1x32xf32>
    %513 = tpu.matmul %512, %2, %cst_123 {dimension_numbers = #tpu.dot_dimension_numbers<[2], [1], [1], [2], [0, 0, 0, 1, 1, 2], [0], [0]>} : vector<2x1x8xf32>, vector<2x8x32xf32>, vector<2x1x32xf32> -> vector<2x1x32xf32>
    "tpu.trace_stop"() : () -> ()
    %514 = vector.shape_cast %513 : vector<2x1x32xf32> to vector<2x32xf32>
    %515 = vector.shape_cast %512 : vector<2x1x8xf32> to vector<2x8xf32>
    %516 = arith.mulf %486, %500 : vector<2x32xf32>
    %cst_124 = arith.constant dense<0.000000e+00> : vector<2xf32>
    %517 = vector.multi_reduction <add>, %516, %cst_124 [1] : vector<2x32xf32> to vector<2xf32>
    %518 = vector.shape_cast %517 : vector<2xf32> to vector<2x1xf32>
    %519 = arith.mulf %486, %514 : vector<2x32xf32>
    %cst_125 = arith.constant dense<0.000000e+00> : vector<2xf32>
    %520 = vector.multi_reduction <add>, %519, %cst_125 [1] : vector<2x32xf32> to vector<2xf32>
    %521 = vector.shape_cast %520 : vector<2xf32> to vector<2x1xf32>
    %522 = arith.maximumf %518, %521 : vector<2x1xf32>
    %523 = arith.subf %518, %522 : vector<2x1xf32>
    %524 = math.exp %523 : vector<2x1xf32>
    %525 = arith.subf %521, %522 : vector<2x1xf32>
    %526 = math.exp %525 : vector<2x1xf32>
    %527 = vector.broadcast %524 : vector<2x1xf32> to vector<2x32xf32>
    %528 = arith.mulf %527, %500 : vector<2x32xf32>
    %529 = vector.broadcast %526 : vector<2x1xf32> to vector<2x32xf32>
    %530 = arith.mulf %529, %514 : vector<2x32xf32>
    %531 = arith.addf %528, %530 : vector<2x32xf32>
    %532 = arith.addf %524, %526 : vector<2x1xf32>
    %533 = vector.broadcast %532 : vector<2x1xf32> to vector<2x32xf32>
    %534 = arith.divf %531, %533 : vector<2x32xf32>
    %535 = vector.extract_strided_slice %61 {offsets = [10, 0], sizes = [2, 128], strides = [1, 1]} : vector<16x128xf32> to vector<2x128xf32>
    %cst_126 = arith.constant dense<0.000000e+00> : vector<2x128xf32>
    %536 = tpu.matmul %534, %23, %cst_126 {dimension_numbers = #tpu.dot_dimension_numbers<[1], [0], [0], [1], [0, 0, 1, 1], [], []>} : vector<2x32xf32>, vector<32x128xf32>, vector<2x128xf32> -> vector<2x128xf32>
    %537 = arith.addf %535, %536 : vector<2x128xf32>
    %cst_127 = arith.constant dense<0.000000e+00> : vector<2x128xf32>
    %538 = tpu.matmul %460, %24, %cst_127 {dimension_numbers = #tpu.dot_dimension_numbers<[1], [0], [0], [1], [0, 0, 1, 1], [], []>} : vector<2x32xf32>, vector<32x128xf32>, vector<2x128xf32> -> vector<2x128xf32>
    %539 = arith.addf %537, %538 : vector<2x128xf32>
    %540 = arith.negf %539 : vector<2x128xf32>
    %541 = math.exp %540 : vector<2x128xf32>
    %cst_128 = arith.constant 1.000000e+00 : f32
    %542 = vector.broadcast %cst_128 : f32 to vector<2x128xf32>
    %543 = arith.addf %542, %541 : vector<2x128xf32>
    %544 = arith.divf %542, %543 : vector<2x128xf32>
    %545 = math.tanh %539 : vector<2x128xf32>
    %546 = vector.extract_strided_slice %544 {offsets = [0, 32], sizes = [2, 32], strides = [1, 1]} : vector<2x128xf32> to vector<2x32xf32>
    %547 = arith.mulf %546, %457 : vector<2x32xf32>
    %548 = vector.extract_strided_slice %544 {offsets = [0, 0], sizes = [2, 32], strides = [1, 1]} : vector<2x128xf32> to vector<2x32xf32>
    %549 = vector.extract_strided_slice %545 {offsets = [0, 64], sizes = [2, 32], strides = [1, 1]} : vector<2x128xf32> to vector<2x32xf32>
    %550 = arith.mulf %548, %549 : vector<2x32xf32>
    %551 = arith.addf %547, %550 : vector<2x32xf32>
    %552 = vector.extract_strided_slice %544 {offsets = [0, 96], sizes = [2, 32], strides = [1, 1]} : vector<2x128xf32> to vector<2x32xf32>
    %553 = math.tanh %551 : vector<2x32xf32>
    %554 = arith.mulf %552, %553 : vector<2x32xf32>
    %cst_129 = arith.constant dense<0.000000e+00> : vector<2xf32>
    %555 = vector.multi_reduction <add>, %554, %cst_129 [1] : vector<2x32xf32> to vector<2xf32>
    %556 = vector.shape_cast %555 : vector<2xf32> to vector<2x1xf32>
    %cst_130 = arith.constant 3.200000e+01 : f32
    %557 = vector.broadcast %cst_130 : f32 to vector<2x1xf32>
    %558 = arith.divf %556, %557 : vector<2x1xf32>
    %559 = vector.broadcast %558 : vector<2x1xf32> to vector<2x32xf32>
    %560 = arith.subf %554, %559 : vector<2x32xf32>
    %561 = arith.mulf %560, %560 : vector<2x32xf32>
    %cst_131 = arith.constant dense<0.000000e+00> : vector<2xf32>
    %562 = vector.multi_reduction <add>, %561, %cst_131 [1] : vector<2x32xf32> to vector<2xf32>
    %563 = vector.shape_cast %562 : vector<2xf32> to vector<2x1xf32>
    %cst_132 = arith.constant 3.200000e+01 : f32
    %564 = vector.broadcast %cst_132 : f32 to vector<2x1xf32>
    %565 = arith.divf %563, %564 : vector<2x1xf32>
    %566 = vector.broadcast %558 : vector<2x1xf32> to vector<2x32xf32>
    %567 = arith.subf %554, %566 : vector<2x32xf32>
    %cst_133 = arith.constant 9.99999974E-6 : f32
    %568 = vector.broadcast %cst_133 : f32 to vector<2x1xf32>
    %569 = arith.addf %565, %568 : vector<2x1xf32>
    %570 = math.rsqrt %569 : vector<2x1xf32>
    %571 = vector.broadcast %570 : vector<2x1xf32> to vector<2x32xf32>
    %572 = arith.mulf %567, %571 : vector<2x32xf32>
    %573 = arith.mulf %572, %36 : vector<2x32xf32>
    %574 = arith.addf %573, %39 : vector<2x32xf32>
    %cst_134 = arith.constant dense<0.000000e+00> : vector<2x32xf32>
    %575 = tpu.matmul %574, %26, %cst_134 {dimension_numbers = #tpu.dot_dimension_numbers<[1], [0], [0], [1], [0, 0, 1, 1], [], []>} : vector<2x32xf32>, vector<32x32xf32>, vector<2x32xf32> -> vector<2x32xf32>
    %576 = arith.addf %575, %42 : vector<2x32xf32>
    %cst_135 = arith.constant dense<0.000000e+00> : vector<2x32xf32>
    %577 = tpu.matmul %574, %27, %cst_135 {dimension_numbers = #tpu.dot_dimension_numbers<[1], [0], [0], [1], [0, 0, 1, 1], [], []>} : vector<2x32xf32>, vector<32x32xf32>, vector<2x32xf32> -> vector<2x32xf32>
    %578 = arith.addf %577, %45 : vector<2x32xf32>
    %cst_136 = arith.constant dense<0.000000e+00> : vector<2x32xf32>
    %579 = tpu.matmul %574, %28, %cst_136 {dimension_numbers = #tpu.dot_dimension_numbers<[1], [0], [0], [1], [0, 0, 1, 1], [], []>} : vector<2x32xf32>, vector<32x32xf32>, vector<2x32xf32> -> vector<2x32xf32>
    %580 = arith.addf %579, %48 : vector<2x32xf32>
    %581 = vector.shape_cast %576 : vector<2x32xf32> to vector<2x1x32xf32>
    "tpu.trace_start"() <{level = 10 : i32, message = "bqh,bnh->bqn"}> : () -> ()
    %cst_137 = arith.constant dense<0.000000e+00> : vector<2x1x8xf32>
    %582 = tpu.matmul %581, %3, %cst_137 {dimension_numbers = #tpu.dot_dimension_numbers<[2], [2], [1], [1], [0, 0, 0, 1, 1, 1], [0], [0]>} : vector<2x1x32xf32>, vector<2x8x32xf32>, vector<2x1x8xf32> -> vector<2x1x8xf32>
    "tpu.trace_stop"() : () -> ()
    %583 = arith.addf %582, %20 : vector<2x1x8xf32>
    %cst_138 = arith.constant dense<0xFF800000> : vector<2x1xf32>
    %584 = vector.multi_reduction <maximumf>, %583, %cst_138 [2] : vector<2x1x8xf32> to vector<2x1xf32>
    %585 = vector.shape_cast %584 : vector<2x1xf32> to vector<2x1x1xf32>
    %586 = vector.broadcast %585 : vector<2x1x1xf32> to vector<2x1x8xf32>
    %587 = arith.subf %583, %586 : vector<2x1x8xf32>
    %588 = math.exp %587 : vector<2x1x8xf32>
    %cst_139 = arith.constant dense<0.000000e+00> : vector<2x1xf32>
    %589 = vector.multi_reduction <add>, %588, %cst_139 [2] : vector<2x1x8xf32> to vector<2x1xf32>
    %590 = vector.shape_cast %589 : vector<2x1xf32> to vector<2x1x1xf32>
    %591 = vector.broadcast %590 : vector<2x1x1xf32> to vector<2x1x8xf32>
    %592 = arith.divf %588, %591 : vector<2x1x8xf32>
    "tpu.trace_start"() <{level = 10 : i32, message = "bqn,bnh->bqh"}> : () -> ()
    %cst_140 = arith.constant dense<0.000000e+00> : vector<2x1x32xf32>
    %593 = tpu.matmul %592, %3, %cst_140 {dimension_numbers = #tpu.dot_dimension_numbers<[2], [1], [1], [2], [0, 0, 0, 1, 1, 2], [0], [0]>} : vector<2x1x8xf32>, vector<2x8x32xf32>, vector<2x1x32xf32> -> vector<2x1x32xf32>
    "tpu.trace_stop"() : () -> ()
    %594 = vector.shape_cast %593 : vector<2x1x32xf32> to vector<2x32xf32>
    %595 = vector.shape_cast %578 : vector<2x32xf32> to vector<2x1x32xf32>
    "tpu.trace_start"() <{level = 10 : i32, message = "bqh,bnh->bqn"}> : () -> ()
    %cst_141 = arith.constant dense<0.000000e+00> : vector<2x1x8xf32>
    %596 = tpu.matmul %595, %2, %cst_141 {dimension_numbers = #tpu.dot_dimension_numbers<[2], [2], [1], [1], [0, 0, 0, 1, 1, 1], [0], [0]>} : vector<2x1x32xf32>, vector<2x8x32xf32>, vector<2x1x8xf32> -> vector<2x1x8xf32>
    "tpu.trace_stop"() : () -> ()
    %597 = arith.addf %596, %12 : vector<2x1x8xf32>
    %cst_142 = arith.constant dense<0xFF800000> : vector<2x1xf32>
    %598 = vector.multi_reduction <maximumf>, %597, %cst_142 [2] : vector<2x1x8xf32> to vector<2x1xf32>
    %599 = vector.shape_cast %598 : vector<2x1xf32> to vector<2x1x1xf32>
    %600 = vector.broadcast %599 : vector<2x1x1xf32> to vector<2x1x8xf32>
    %601 = arith.subf %597, %600 : vector<2x1x8xf32>
    %602 = math.exp %601 : vector<2x1x8xf32>
    %cst_143 = arith.constant dense<0.000000e+00> : vector<2x1xf32>
    %603 = vector.multi_reduction <add>, %602, %cst_143 [2] : vector<2x1x8xf32> to vector<2x1xf32>
    %604 = vector.shape_cast %603 : vector<2x1xf32> to vector<2x1x1xf32>
    %605 = vector.broadcast %604 : vector<2x1x1xf32> to vector<2x1x8xf32>
    %606 = arith.divf %602, %605 : vector<2x1x8xf32>
    "tpu.trace_start"() <{level = 10 : i32, message = "bqn,bnh->bqh"}> : () -> ()
    %cst_144 = arith.constant dense<0.000000e+00> : vector<2x1x32xf32>
    %607 = tpu.matmul %606, %2, %cst_144 {dimension_numbers = #tpu.dot_dimension_numbers<[2], [1], [1], [2], [0, 0, 0, 1, 1, 2], [0], [0]>} : vector<2x1x8xf32>, vector<2x8x32xf32>, vector<2x1x32xf32> -> vector<2x1x32xf32>
    "tpu.trace_stop"() : () -> ()
    %608 = vector.shape_cast %607 : vector<2x1x32xf32> to vector<2x32xf32>
    %609 = vector.shape_cast %606 : vector<2x1x8xf32> to vector<2x8xf32>
    %610 = arith.mulf %580, %594 : vector<2x32xf32>
    %cst_145 = arith.constant dense<0.000000e+00> : vector<2xf32>
    %611 = vector.multi_reduction <add>, %610, %cst_145 [1] : vector<2x32xf32> to vector<2xf32>
    %612 = vector.shape_cast %611 : vector<2xf32> to vector<2x1xf32>
    %613 = arith.mulf %580, %608 : vector<2x32xf32>
    %cst_146 = arith.constant dense<0.000000e+00> : vector<2xf32>
    %614 = vector.multi_reduction <add>, %613, %cst_146 [1] : vector<2x32xf32> to vector<2xf32>
    %615 = vector.shape_cast %614 : vector<2xf32> to vector<2x1xf32>
    %616 = arith.maximumf %612, %615 : vector<2x1xf32>
    %617 = arith.subf %612, %616 : vector<2x1xf32>
    %618 = math.exp %617 : vector<2x1xf32>
    %619 = arith.subf %615, %616 : vector<2x1xf32>
    %620 = math.exp %619 : vector<2x1xf32>
    %621 = vector.broadcast %618 : vector<2x1xf32> to vector<2x32xf32>
    %622 = arith.mulf %621, %594 : vector<2x32xf32>
    %623 = vector.broadcast %620 : vector<2x1xf32> to vector<2x32xf32>
    %624 = arith.mulf %623, %608 : vector<2x32xf32>
    %625 = arith.addf %622, %624 : vector<2x32xf32>
    %626 = arith.addf %618, %620 : vector<2x1xf32>
    %627 = vector.broadcast %626 : vector<2x1xf32> to vector<2x32xf32>
    %628 = arith.divf %625, %627 : vector<2x32xf32>
    %629 = vector.extract_strided_slice %61 {offsets = [12, 0], sizes = [2, 128], strides = [1, 1]} : vector<16x128xf32> to vector<2x128xf32>
    %cst_147 = arith.constant dense<0.000000e+00> : vector<2x128xf32>
    %630 = tpu.matmul %628, %23, %cst_147 {dimension_numbers = #tpu.dot_dimension_numbers<[1], [0], [0], [1], [0, 0, 1, 1], [], []>} : vector<2x32xf32>, vector<32x128xf32>, vector<2x128xf32> -> vector<2x128xf32>
    %631 = arith.addf %629, %630 : vector<2x128xf32>
    %cst_148 = arith.constant dense<0.000000e+00> : vector<2x128xf32>
    %632 = tpu.matmul %554, %24, %cst_148 {dimension_numbers = #tpu.dot_dimension_numbers<[1], [0], [0], [1], [0, 0, 1, 1], [], []>} : vector<2x32xf32>, vector<32x128xf32>, vector<2x128xf32> -> vector<2x128xf32>
    %633 = arith.addf %631, %632 : vector<2x128xf32>
    %634 = arith.negf %633 : vector<2x128xf32>
    %635 = math.exp %634 : vector<2x128xf32>
    %cst_149 = arith.constant 1.000000e+00 : f32
    %636 = vector.broadcast %cst_149 : f32 to vector<2x128xf32>
    %637 = arith.addf %636, %635 : vector<2x128xf32>
    %638 = arith.divf %636, %637 : vector<2x128xf32>
    %639 = math.tanh %633 : vector<2x128xf32>
    %640 = vector.extract_strided_slice %638 {offsets = [0, 32], sizes = [2, 32], strides = [1, 1]} : vector<2x128xf32> to vector<2x32xf32>
    %641 = arith.mulf %640, %551 : vector<2x32xf32>
    %642 = vector.extract_strided_slice %638 {offsets = [0, 0], sizes = [2, 32], strides = [1, 1]} : vector<2x128xf32> to vector<2x32xf32>
    %643 = vector.extract_strided_slice %639 {offsets = [0, 64], sizes = [2, 32], strides = [1, 1]} : vector<2x128xf32> to vector<2x32xf32>
    %644 = arith.mulf %642, %643 : vector<2x32xf32>
    %645 = arith.addf %641, %644 : vector<2x32xf32>
    %646 = vector.extract_strided_slice %638 {offsets = [0, 96], sizes = [2, 32], strides = [1, 1]} : vector<2x128xf32> to vector<2x32xf32>
    %647 = math.tanh %645 : vector<2x32xf32>
    %648 = arith.mulf %646, %647 : vector<2x32xf32>
    %cst_150 = arith.constant dense<0.000000e+00> : vector<2xf32>
    %649 = vector.multi_reduction <add>, %648, %cst_150 [1] : vector<2x32xf32> to vector<2xf32>
    %650 = vector.shape_cast %649 : vector<2xf32> to vector<2x1xf32>
    %cst_151 = arith.constant 3.200000e+01 : f32
    %651 = vector.broadcast %cst_151 : f32 to vector<2x1xf32>
    %652 = arith.divf %650, %651 : vector<2x1xf32>
    %653 = vector.broadcast %652 : vector<2x1xf32> to vector<2x32xf32>
    %654 = arith.subf %648, %653 : vector<2x32xf32>
    %655 = arith.mulf %654, %654 : vector<2x32xf32>
    %cst_152 = arith.constant dense<0.000000e+00> : vector<2xf32>
    %656 = vector.multi_reduction <add>, %655, %cst_152 [1] : vector<2x32xf32> to vector<2xf32>
    %657 = vector.shape_cast %656 : vector<2xf32> to vector<2x1xf32>
    %cst_153 = arith.constant 3.200000e+01 : f32
    %658 = vector.broadcast %cst_153 : f32 to vector<2x1xf32>
    %659 = arith.divf %657, %658 : vector<2x1xf32>
    %660 = vector.broadcast %652 : vector<2x1xf32> to vector<2x32xf32>
    %661 = arith.subf %648, %660 : vector<2x32xf32>
    %cst_154 = arith.constant 9.99999974E-6 : f32
    %662 = vector.broadcast %cst_154 : f32 to vector<2x1xf32>
    %663 = arith.addf %659, %662 : vector<2x1xf32>
    %664 = math.rsqrt %663 : vector<2x1xf32>
    %665 = vector.broadcast %664 : vector<2x1xf32> to vector<2x32xf32>
    %666 = arith.mulf %661, %665 : vector<2x32xf32>
    %667 = arith.mulf %666, %36 : vector<2x32xf32>
    %668 = arith.addf %667, %39 : vector<2x32xf32>
    %cst_155 = arith.constant dense<0.000000e+00> : vector<2x32xf32>
    %669 = tpu.matmul %668, %26, %cst_155 {dimension_numbers = #tpu.dot_dimension_numbers<[1], [0], [0], [1], [0, 0, 1, 1], [], []>} : vector<2x32xf32>, vector<32x32xf32>, vector<2x32xf32> -> vector<2x32xf32>
    %670 = arith.addf %669, %42 : vector<2x32xf32>
    %cst_156 = arith.constant dense<0.000000e+00> : vector<2x32xf32>
    %671 = tpu.matmul %668, %27, %cst_156 {dimension_numbers = #tpu.dot_dimension_numbers<[1], [0], [0], [1], [0, 0, 1, 1], [], []>} : vector<2x32xf32>, vector<32x32xf32>, vector<2x32xf32> -> vector<2x32xf32>
    %672 = arith.addf %671, %45 : vector<2x32xf32>
    %cst_157 = arith.constant dense<0.000000e+00> : vector<2x32xf32>
    %673 = tpu.matmul %668, %28, %cst_157 {dimension_numbers = #tpu.dot_dimension_numbers<[1], [0], [0], [1], [0, 0, 1, 1], [], []>} : vector<2x32xf32>, vector<32x32xf32>, vector<2x32xf32> -> vector<2x32xf32>
    %674 = arith.addf %673, %48 : vector<2x32xf32>
    %675 = vector.shape_cast %670 : vector<2x32xf32> to vector<2x1x32xf32>
    "tpu.trace_start"() <{level = 10 : i32, message = "bqh,bnh->bqn"}> : () -> ()
    %cst_158 = arith.constant dense<0.000000e+00> : vector<2x1x8xf32>
    %676 = tpu.matmul %675, %3, %cst_158 {dimension_numbers = #tpu.dot_dimension_numbers<[2], [2], [1], [1], [0, 0, 0, 1, 1, 1], [0], [0]>} : vector<2x1x32xf32>, vector<2x8x32xf32>, vector<2x1x8xf32> -> vector<2x1x8xf32>
    "tpu.trace_stop"() : () -> ()
    %677 = arith.addf %676, %20 : vector<2x1x8xf32>
    %cst_159 = arith.constant dense<0xFF800000> : vector<2x1xf32>
    %678 = vector.multi_reduction <maximumf>, %677, %cst_159 [2] : vector<2x1x8xf32> to vector<2x1xf32>
    %679 = vector.shape_cast %678 : vector<2x1xf32> to vector<2x1x1xf32>
    %680 = vector.broadcast %679 : vector<2x1x1xf32> to vector<2x1x8xf32>
    %681 = arith.subf %677, %680 : vector<2x1x8xf32>
    %682 = math.exp %681 : vector<2x1x8xf32>
    %cst_160 = arith.constant dense<0.000000e+00> : vector<2x1xf32>
    %683 = vector.multi_reduction <add>, %682, %cst_160 [2] : vector<2x1x8xf32> to vector<2x1xf32>
    %684 = vector.shape_cast %683 : vector<2x1xf32> to vector<2x1x1xf32>
    %685 = vector.broadcast %684 : vector<2x1x1xf32> to vector<2x1x8xf32>
    %686 = arith.divf %682, %685 : vector<2x1x8xf32>
    "tpu.trace_start"() <{level = 10 : i32, message = "bqn,bnh->bqh"}> : () -> ()
    %cst_161 = arith.constant dense<0.000000e+00> : vector<2x1x32xf32>
    %687 = tpu.matmul %686, %3, %cst_161 {dimension_numbers = #tpu.dot_dimension_numbers<[2], [1], [1], [2], [0, 0, 0, 1, 1, 2], [0], [0]>} : vector<2x1x8xf32>, vector<2x8x32xf32>, vector<2x1x32xf32> -> vector<2x1x32xf32>
    "tpu.trace_stop"() : () -> ()
    %688 = vector.shape_cast %687 : vector<2x1x32xf32> to vector<2x32xf32>
    %689 = vector.shape_cast %672 : vector<2x32xf32> to vector<2x1x32xf32>
    "tpu.trace_start"() <{level = 10 : i32, message = "bqh,bnh->bqn"}> : () -> ()
    %cst_162 = arith.constant dense<0.000000e+00> : vector<2x1x8xf32>
    %690 = tpu.matmul %689, %2, %cst_162 {dimension_numbers = #tpu.dot_dimension_numbers<[2], [2], [1], [1], [0, 0, 0, 1, 1, 1], [0], [0]>} : vector<2x1x32xf32>, vector<2x8x32xf32>, vector<2x1x8xf32> -> vector<2x1x8xf32>
    "tpu.trace_stop"() : () -> ()
    %691 = arith.addf %690, %12 : vector<2x1x8xf32>
    %cst_163 = arith.constant dense<0xFF800000> : vector<2x1xf32>
    %692 = vector.multi_reduction <maximumf>, %691, %cst_163 [2] : vector<2x1x8xf32> to vector<2x1xf32>
    %693 = vector.shape_cast %692 : vector<2x1xf32> to vector<2x1x1xf32>
    %694 = vector.broadcast %693 : vector<2x1x1xf32> to vector<2x1x8xf32>
    %695 = arith.subf %691, %694 : vector<2x1x8xf32>
    %696 = math.exp %695 : vector<2x1x8xf32>
    %cst_164 = arith.constant dense<0.000000e+00> : vector<2x1xf32>
    %697 = vector.multi_reduction <add>, %696, %cst_164 [2] : vector<2x1x8xf32> to vector<2x1xf32>
    %698 = vector.shape_cast %697 : vector<2x1xf32> to vector<2x1x1xf32>
    %699 = vector.broadcast %698 : vector<2x1x1xf32> to vector<2x1x8xf32>
    %700 = arith.divf %696, %699 : vector<2x1x8xf32>
    "tpu.trace_start"() <{level = 10 : i32, message = "bqn,bnh->bqh"}> : () -> ()
    %cst_165 = arith.constant dense<0.000000e+00> : vector<2x1x32xf32>
    %701 = tpu.matmul %700, %2, %cst_165 {dimension_numbers = #tpu.dot_dimension_numbers<[2], [1], [1], [2], [0, 0, 0, 1, 1, 2], [0], [0]>} : vector<2x1x8xf32>, vector<2x8x32xf32>, vector<2x1x32xf32> -> vector<2x1x32xf32>
    "tpu.trace_stop"() : () -> ()
    %702 = vector.shape_cast %701 : vector<2x1x32xf32> to vector<2x32xf32>
    %703 = vector.shape_cast %700 : vector<2x1x8xf32> to vector<2x8xf32>
    %704 = arith.mulf %674, %688 : vector<2x32xf32>
    %cst_166 = arith.constant dense<0.000000e+00> : vector<2xf32>
    %705 = vector.multi_reduction <add>, %704, %cst_166 [1] : vector<2x32xf32> to vector<2xf32>
    %706 = vector.shape_cast %705 : vector<2xf32> to vector<2x1xf32>
    %707 = arith.mulf %674, %702 : vector<2x32xf32>
    %cst_167 = arith.constant dense<0.000000e+00> : vector<2xf32>
    %708 = vector.multi_reduction <add>, %707, %cst_167 [1] : vector<2x32xf32> to vector<2xf32>
    %709 = vector.shape_cast %708 : vector<2xf32> to vector<2x1xf32>
    %710 = arith.maximumf %706, %709 : vector<2x1xf32>
    %711 = arith.subf %706, %710 : vector<2x1xf32>
    %712 = math.exp %711 : vector<2x1xf32>
    %713 = arith.subf %709, %710 : vector<2x1xf32>
    %714 = math.exp %713 : vector<2x1xf32>
    %715 = vector.broadcast %712 : vector<2x1xf32> to vector<2x32xf32>
    %716 = arith.mulf %715, %688 : vector<2x32xf32>
    %717 = vector.broadcast %714 : vector<2x1xf32> to vector<2x32xf32>
    %718 = arith.mulf %717, %702 : vector<2x32xf32>
    %719 = arith.addf %716, %718 : vector<2x32xf32>
    %720 = arith.addf %712, %714 : vector<2x1xf32>
    %721 = vector.broadcast %720 : vector<2x1xf32> to vector<2x32xf32>
    %722 = arith.divf %719, %721 : vector<2x32xf32>
    %723 = vector.extract_strided_slice %61 {offsets = [14, 0], sizes = [2, 128], strides = [1, 1]} : vector<16x128xf32> to vector<2x128xf32>
    %cst_168 = arith.constant dense<0.000000e+00> : vector<2x128xf32>
    %724 = tpu.matmul %722, %23, %cst_168 {dimension_numbers = #tpu.dot_dimension_numbers<[1], [0], [0], [1], [0, 0, 1, 1], [], []>} : vector<2x32xf32>, vector<32x128xf32>, vector<2x128xf32> -> vector<2x128xf32>
    %725 = arith.addf %723, %724 : vector<2x128xf32>
    %cst_169 = arith.constant dense<0.000000e+00> : vector<2x128xf32>
    %726 = tpu.matmul %648, %24, %cst_169 {dimension_numbers = #tpu.dot_dimension_numbers<[1], [0], [0], [1], [0, 0, 1, 1], [], []>} : vector<2x32xf32>, vector<32x128xf32>, vector<2x128xf32> -> vector<2x128xf32>
    %727 = arith.addf %725, %726 : vector<2x128xf32>
    %728 = arith.negf %727 : vector<2x128xf32>
    %729 = math.exp %728 : vector<2x128xf32>
    %cst_170 = arith.constant 1.000000e+00 : f32
    %730 = vector.broadcast %cst_170 : f32 to vector<2x128xf32>
    %731 = arith.addf %730, %729 : vector<2x128xf32>
    %732 = arith.divf %730, %731 : vector<2x128xf32>
    %733 = math.tanh %727 : vector<2x128xf32>
    %734 = vector.extract_strided_slice %732 {offsets = [0, 32], sizes = [2, 32], strides = [1, 1]} : vector<2x128xf32> to vector<2x32xf32>
    %735 = arith.mulf %734, %645 : vector<2x32xf32>
    %736 = vector.extract_strided_slice %732 {offsets = [0, 0], sizes = [2, 32], strides = [1, 1]} : vector<2x128xf32> to vector<2x32xf32>
    %737 = vector.extract_strided_slice %733 {offsets = [0, 64], sizes = [2, 32], strides = [1, 1]} : vector<2x128xf32> to vector<2x32xf32>
    %738 = arith.mulf %736, %737 : vector<2x32xf32>
    %739 = arith.addf %735, %738 : vector<2x32xf32>
    %740 = vector.extract_strided_slice %732 {offsets = [0, 96], sizes = [2, 32], strides = [1, 1]} : vector<2x128xf32> to vector<2x32xf32>
    %741 = math.tanh %739 : vector<2x32xf32>
    %742 = arith.mulf %740, %741 : vector<2x32xf32>
    %cst_171 = arith.constant dense<0.000000e+00> : vector<2xf32>
    %743 = vector.multi_reduction <add>, %742, %cst_171 [1] : vector<2x32xf32> to vector<2xf32>
    %744 = vector.shape_cast %743 : vector<2xf32> to vector<2x1xf32>
    %cst_172 = arith.constant 3.200000e+01 : f32
    %745 = vector.broadcast %cst_172 : f32 to vector<2x1xf32>
    %746 = arith.divf %744, %745 : vector<2x1xf32>
    %747 = vector.broadcast %746 : vector<2x1xf32> to vector<2x32xf32>
    %748 = arith.subf %742, %747 : vector<2x32xf32>
    %749 = arith.mulf %748, %748 : vector<2x32xf32>
    %cst_173 = arith.constant dense<0.000000e+00> : vector<2xf32>
    %750 = vector.multi_reduction <add>, %749, %cst_173 [1] : vector<2x32xf32> to vector<2xf32>
    %751 = vector.shape_cast %750 : vector<2xf32> to vector<2x1xf32>
    %cst_174 = arith.constant 3.200000e+01 : f32
    %752 = vector.broadcast %cst_174 : f32 to vector<2x1xf32>
    %753 = arith.divf %751, %752 : vector<2x1xf32>
    %754 = vector.broadcast %746 : vector<2x1xf32> to vector<2x32xf32>
    %755 = arith.subf %742, %754 : vector<2x32xf32>
    %cst_175 = arith.constant 9.99999974E-6 : f32
    %756 = vector.broadcast %cst_175 : f32 to vector<2x1xf32>
    %757 = arith.addf %753, %756 : vector<2x1xf32>
    %758 = math.rsqrt %757 : vector<2x1xf32>
    %759 = vector.broadcast %758 : vector<2x1xf32> to vector<2x32xf32>
    %760 = arith.mulf %755, %759 : vector<2x32xf32>
    %761 = arith.mulf %760, %36 : vector<2x32xf32>
    %762 = arith.addf %761, %39 : vector<2x32xf32>
    %cst_176 = arith.constant dense<0.000000e+00> : vector<2x32xf32>
    %763 = tpu.matmul %762, %26, %cst_176 {dimension_numbers = #tpu.dot_dimension_numbers<[1], [0], [0], [1], [0, 0, 1, 1], [], []>} : vector<2x32xf32>, vector<32x32xf32>, vector<2x32xf32> -> vector<2x32xf32>
    %764 = arith.addf %763, %42 : vector<2x32xf32>
    %cst_177 = arith.constant dense<0.000000e+00> : vector<2x32xf32>
    %765 = tpu.matmul %762, %27, %cst_177 {dimension_numbers = #tpu.dot_dimension_numbers<[1], [0], [0], [1], [0, 0, 1, 1], [], []>} : vector<2x32xf32>, vector<32x32xf32>, vector<2x32xf32> -> vector<2x32xf32>
    %766 = arith.addf %765, %45 : vector<2x32xf32>
    %cst_178 = arith.constant dense<0.000000e+00> : vector<2x32xf32>
    %767 = tpu.matmul %762, %28, %cst_178 {dimension_numbers = #tpu.dot_dimension_numbers<[1], [0], [0], [1], [0, 0, 1, 1], [], []>} : vector<2x32xf32>, vector<32x32xf32>, vector<2x32xf32> -> vector<2x32xf32>
    %768 = arith.addf %767, %48 : vector<2x32xf32>
    %769 = vector.shape_cast %764 : vector<2x32xf32> to vector<2x1x32xf32>
    "tpu.trace_start"() <{level = 10 : i32, message = "bqh,bnh->bqn"}> : () -> ()
    %cst_179 = arith.constant dense<0.000000e+00> : vector<2x1x8xf32>
    %770 = tpu.matmul %769, %3, %cst_179 {dimension_numbers = #tpu.dot_dimension_numbers<[2], [2], [1], [1], [0, 0, 0, 1, 1, 1], [0], [0]>} : vector<2x1x32xf32>, vector<2x8x32xf32>, vector<2x1x8xf32> -> vector<2x1x8xf32>
    "tpu.trace_stop"() : () -> ()
    %771 = arith.addf %770, %20 : vector<2x1x8xf32>
    %cst_180 = arith.constant dense<0xFF800000> : vector<2x1xf32>
    %772 = vector.multi_reduction <maximumf>, %771, %cst_180 [2] : vector<2x1x8xf32> to vector<2x1xf32>
    %773 = vector.shape_cast %772 : vector<2x1xf32> to vector<2x1x1xf32>
    %774 = vector.broadcast %773 : vector<2x1x1xf32> to vector<2x1x8xf32>
    %775 = arith.subf %771, %774 : vector<2x1x8xf32>
    %776 = math.exp %775 : vector<2x1x8xf32>
    %cst_181 = arith.constant dense<0.000000e+00> : vector<2x1xf32>
    %777 = vector.multi_reduction <add>, %776, %cst_181 [2] : vector<2x1x8xf32> to vector<2x1xf32>
    %778 = vector.shape_cast %777 : vector<2x1xf32> to vector<2x1x1xf32>
    %779 = vector.broadcast %778 : vector<2x1x1xf32> to vector<2x1x8xf32>
    %780 = arith.divf %776, %779 : vector<2x1x8xf32>
    "tpu.trace_start"() <{level = 10 : i32, message = "bqn,bnh->bqh"}> : () -> ()
    %cst_182 = arith.constant dense<0.000000e+00> : vector<2x1x32xf32>
    %781 = tpu.matmul %780, %3, %cst_182 {dimension_numbers = #tpu.dot_dimension_numbers<[2], [1], [1], [2], [0, 0, 0, 1, 1, 2], [0], [0]>} : vector<2x1x8xf32>, vector<2x8x32xf32>, vector<2x1x32xf32> -> vector<2x1x32xf32>
    "tpu.trace_stop"() : () -> ()
    %782 = vector.shape_cast %781 : vector<2x1x32xf32> to vector<2x32xf32>
    %783 = vector.shape_cast %766 : vector<2x32xf32> to vector<2x1x32xf32>
    "tpu.trace_start"() <{level = 10 : i32, message = "bqh,bnh->bqn"}> : () -> ()
    %cst_183 = arith.constant dense<0.000000e+00> : vector<2x1x8xf32>
    %784 = tpu.matmul %783, %2, %cst_183 {dimension_numbers = #tpu.dot_dimension_numbers<[2], [2], [1], [1], [0, 0, 0, 1, 1, 1], [0], [0]>} : vector<2x1x32xf32>, vector<2x8x32xf32>, vector<2x1x8xf32> -> vector<2x1x8xf32>
    "tpu.trace_stop"() : () -> ()
    %785 = arith.addf %784, %12 : vector<2x1x8xf32>
    %cst_184 = arith.constant dense<0xFF800000> : vector<2x1xf32>
    %786 = vector.multi_reduction <maximumf>, %785, %cst_184 [2] : vector<2x1x8xf32> to vector<2x1xf32>
    %787 = vector.shape_cast %786 : vector<2x1xf32> to vector<2x1x1xf32>
    %788 = vector.broadcast %787 : vector<2x1x1xf32> to vector<2x1x8xf32>
    %789 = arith.subf %785, %788 : vector<2x1x8xf32>
    %790 = math.exp %789 : vector<2x1x8xf32>
    %cst_185 = arith.constant dense<0.000000e+00> : vector<2x1xf32>
    %791 = vector.multi_reduction <add>, %790, %cst_185 [2] : vector<2x1x8xf32> to vector<2x1xf32>
    %792 = vector.shape_cast %791 : vector<2x1xf32> to vector<2x1x1xf32>
    %793 = vector.broadcast %792 : vector<2x1x1xf32> to vector<2x1x8xf32>
    %794 = arith.divf %790, %793 : vector<2x1x8xf32>
    "tpu.trace_start"() <{level = 10 : i32, message = "bqn,bnh->bqh"}> : () -> ()
    %cst_186 = arith.constant dense<0.000000e+00> : vector<2x1x32xf32>
    %795 = tpu.matmul %794, %2, %cst_186 {dimension_numbers = #tpu.dot_dimension_numbers<[2], [1], [1], [2], [0, 0, 0, 1, 1, 2], [0], [0]>} : vector<2x1x8xf32>, vector<2x8x32xf32>, vector<2x1x32xf32> -> vector<2x1x32xf32>
    "tpu.trace_stop"() : () -> ()
    %796 = vector.shape_cast %795 : vector<2x1x32xf32> to vector<2x32xf32>
    %797 = vector.shape_cast %794 : vector<2x1x8xf32> to vector<2x8xf32>
    %798 = arith.mulf %768, %782 : vector<2x32xf32>
    %cst_187 = arith.constant dense<0.000000e+00> : vector<2xf32>
    %799 = vector.multi_reduction <add>, %798, %cst_187 [1] : vector<2x32xf32> to vector<2xf32>
    %800 = vector.shape_cast %799 : vector<2xf32> to vector<2x1xf32>
    %801 = arith.mulf %768, %796 : vector<2x32xf32>
    %cst_188 = arith.constant dense<0.000000e+00> : vector<2xf32>
    %802 = vector.multi_reduction <add>, %801, %cst_188 [1] : vector<2x32xf32> to vector<2xf32>
    %803 = vector.shape_cast %802 : vector<2xf32> to vector<2x1xf32>
    %804 = arith.maximumf %800, %803 : vector<2x1xf32>
    %805 = arith.subf %800, %804 : vector<2x1xf32>
    %806 = math.exp %805 : vector<2x1xf32>
    %807 = arith.subf %803, %804 : vector<2x1xf32>
    %808 = math.exp %807 : vector<2x1xf32>
    %809 = vector.broadcast %806 : vector<2x1xf32> to vector<2x32xf32>
    %810 = arith.mulf %809, %782 : vector<2x32xf32>
    %811 = vector.broadcast %808 : vector<2x1xf32> to vector<2x32xf32>
    %812 = arith.mulf %811, %796 : vector<2x32xf32>
    %813 = arith.addf %810, %812 : vector<2x32xf32>
    %814 = arith.addf %806, %808 : vector<2x1xf32>
    %815 = vector.broadcast %814 : vector<2x1xf32> to vector<2x32xf32>
    %816 = arith.divf %813, %815 : vector<2x32xf32>
    %817 = vector.shape_cast %104 : vector<2x32xf32> to vector<1x2x32xf32>
    %818 = vector.shape_cast %198 : vector<2x32xf32> to vector<1x2x32xf32>
    %819 = vector.shape_cast %292 : vector<2x32xf32> to vector<1x2x32xf32>
    %820 = vector.shape_cast %386 : vector<2x32xf32> to vector<1x2x32xf32>
    %821 = vector.shape_cast %480 : vector<2x32xf32> to vector<1x2x32xf32>
    %822 = vector.shape_cast %574 : vector<2x32xf32> to vector<1x2x32xf32>
    %823 = vector.shape_cast %668 : vector<2x32xf32> to vector<1x2x32xf32>
    %824 = vector.shape_cast %762 : vector<2x32xf32> to vector<1x2x32xf32>
    %825 = tpu.concatenate %817, %818, %819, %820, %821, %822, %823, %824 in 0 : vector<1x2x32xf32>, vector<1x2x32xf32>, vector<1x2x32xf32>, vector<1x2x32xf32>, vector<1x2x32xf32>, vector<1x2x32xf32>, vector<1x2x32xf32>, vector<1x2x32xf32> -> vector<8x2x32xf32>
    %826 = vector.shape_cast %825 : vector<8x2x32xf32> to vector<16x32xf32>
    %827 = vector.shape_cast %158 : vector<2x32xf32> to vector<1x2x32xf32>
    %828 = vector.shape_cast %252 : vector<2x32xf32> to vector<1x2x32xf32>
    %829 = vector.shape_cast %346 : vector<2x32xf32> to vector<1x2x32xf32>
    %830 = vector.shape_cast %440 : vector<2x32xf32> to vector<1x2x32xf32>
    %831 = vector.shape_cast %534 : vector<2x32xf32> to vector<1x2x32xf32>
    %832 = vector.shape_cast %628 : vector<2x32xf32> to vector<1x2x32xf32>
    %833 = vector.shape_cast %722 : vector<2x32xf32> to vector<1x2x32xf32>
    %834 = vector.shape_cast %816 : vector<2x32xf32> to vector<1x2x32xf32>
    %835 = tpu.concatenate %827, %828, %829, %830, %831, %832, %833, %834 in 0 : vector<1x2x32xf32>, vector<1x2x32xf32>, vector<1x2x32xf32>, vector<1x2x32xf32>, vector<1x2x32xf32>, vector<1x2x32xf32>, vector<1x2x32xf32>, vector<1x2x32xf32> -> vector<8x2x32xf32>
    %836 = vector.shape_cast %835 : vector<8x2x32xf32> to vector<16x32xf32>
    %837 = vector.shape_cast %84 : vector<2x32xf32> to vector<1x2x32xf32>
    %838 = vector.shape_cast %178 : vector<2x32xf32> to vector<1x2x32xf32>
    %839 = vector.shape_cast %272 : vector<2x32xf32> to vector<1x2x32xf32>
    %840 = vector.shape_cast %366 : vector<2x32xf32> to vector<1x2x32xf32>
    %841 = vector.shape_cast %460 : vector<2x32xf32> to vector<1x2x32xf32>
    %842 = vector.shape_cast %554 : vector<2x32xf32> to vector<1x2x32xf32>
    %843 = vector.shape_cast %648 : vector<2x32xf32> to vector<1x2x32xf32>
    %844 = vector.shape_cast %742 : vector<2x32xf32> to vector<1x2x32xf32>
    %845 = tpu.concatenate %837, %838, %839, %840, %841, %842, %843, %844 in 0 : vector<1x2x32xf32>, vector<1x2x32xf32>, vector<1x2x32xf32>, vector<1x2x32xf32>, vector<1x2x32xf32>, vector<1x2x32xf32>, vector<1x2x32xf32>, vector<1x2x32xf32> -> vector<8x2x32xf32>
    %846 = vector.shape_cast %845 : vector<8x2x32xf32> to vector<16x32xf32>
    %847 = vector.shape_cast %139 : vector<2x8xf32> to vector<1x2x8xf32>
    %848 = vector.shape_cast %233 : vector<2x8xf32> to vector<1x2x8xf32>
    %849 = vector.shape_cast %327 : vector<2x8xf32> to vector<1x2x8xf32>
    %850 = vector.shape_cast %421 : vector<2x8xf32> to vector<1x2x8xf32>
    %851 = vector.shape_cast %515 : vector<2x8xf32> to vector<1x2x8xf32>
    %852 = vector.shape_cast %609 : vector<2x8xf32> to vector<1x2x8xf32>
    %853 = vector.shape_cast %703 : vector<2x8xf32> to vector<1x2x8xf32>
    %854 = vector.shape_cast %797 : vector<2x8xf32> to vector<1x2x8xf32>
    %855 = tpu.concatenate %847, %848, %849, %850, %851, %852, %853, %854 in 0 : vector<1x2x8xf32>, vector<1x2x8xf32>, vector<1x2x8xf32>, vector<1x2x8xf32>, vector<1x2x8xf32>, vector<1x2x8xf32>, vector<1x2x8xf32>, vector<1x2x8xf32> -> vector<8x2x8xf32>
    %856 = vector.shape_cast %855 : vector<8x2x8xf32> to vector<16x8xf32>
    %cst_189 = arith.constant dense<0.000000e+00> : vector<16x50xf32>
    %857 = tpu.matmul %826, %30, %cst_189 {dimension_numbers = #tpu.dot_dimension_numbers<[1], [0], [0], [1], [0, 0, 1, 1], [], []>} : vector<16x32xf32>, vector<32x50xf32>, vector<16x50xf32> -> vector<16x50xf32>
    %cst_190 = arith.constant dense<0.000000e+00> : vector<16x50xf32>
    %858 = tpu.matmul %836, %31, %cst_190 {dimension_numbers = #tpu.dot_dimension_numbers<[1], [0], [0], [1], [0, 0, 1, 1], [], []>} : vector<16x32xf32>, vector<32x50xf32>, vector<16x50xf32> -> vector<16x50xf32>
    %859 = arith.addf %857, %858 : vector<16x50xf32>
    %860 = arith.addf %859, %57 : vector<16x50xf32>
    %cst_191 = arith.constant dense<0xFF800000> : vector<16xf32>
    %861 = vector.multi_reduction <maximumf>, %860, %cst_191 [1] : vector<16x50xf32> to vector<16xf32>
    %862 = vector.shape_cast %861 : vector<16xf32> to vector<16x1xf32>
    %863 = vector.broadcast %862 : vector<16x1xf32> to vector<16x50xf32>
    %864 = arith.subf %860, %863 : vector<16x50xf32>
    %865 = math.exp %864 : vector<16x50xf32>
    %cst_192 = arith.constant dense<0.000000e+00> : vector<16xf32>
    %866 = vector.multi_reduction <add>, %865, %cst_192 [1] : vector<16x50xf32> to vector<16xf32>
    %867 = vector.shape_cast %866 : vector<16xf32> to vector<16x1xf32>
    %868 = vector.broadcast %867 : vector<16x1xf32> to vector<16x50xf32>
    %869 = arith.divf %865, %868 : vector<16x50xf32>
    %870 = arith.mulf %846, %51 : vector<16x32xf32>
    %cst_193 = arith.constant dense<0.000000e+00> : vector<16xf32>
    %871 = vector.multi_reduction <add>, %870, %cst_193 [1] : vector<16x32xf32> to vector<16xf32>
    %872 = vector.shape_cast %871 : vector<16xf32> to vector<16x1xf32>
    %873 = arith.addf %872, %54 : vector<16x1xf32>
    %874 = arith.negf %873 : vector<16x1xf32>
    %875 = math.exp %874 : vector<16x1xf32>
    %cst_194 = arith.constant 1.000000e+00 : f32
    %876 = vector.broadcast %cst_194 : f32 to vector<16x1xf32>
    %877 = arith.addf %876, %875 : vector<16x1xf32>
    %878 = arith.divf %876, %877 : vector<16x1xf32>
    %cst_195 = arith.constant 1.000000e+00 : f32
    %879 = vector.broadcast %cst_195 : f32 to vector<16x1xf32>
    %880 = arith.subf %879, %878 : vector<16x1xf32>
    %881 = vector.broadcast %880 : vector<16x1xf32> to vector<16x50xf32>
    %882 = arith.mulf %869, %881 : vector<16x50xf32>
    %cst_196 = arith.constant 9.99999997E-7 : f32
    %883 = vector.broadcast %cst_196 : f32 to vector<16x50xf32>
    %884 = arith.addf %882, %883 : vector<16x50xf32>
    %885 = vector.broadcast %878 : vector<16x1xf32> to vector<16x8xf32>
    %886 = arith.mulf %856, %885 : vector<16x8xf32>
    %cst_197 = arith.constant 9.99999997E-7 : f32
    %887 = vector.broadcast %cst_197 : f32 to vector<16x8xf32>
    %888 = arith.addf %886, %887 : vector<16x8xf32>
    %cst_198 = arith.constant 1.000000e+00 : f32
    %889 = vector.broadcast %cst_198 : f32 to vector<16x70xf32>
    %890 = tpu.concatenate %884, %888, %889 in 1 : vector<16x50xf32>, vector<16x8xf32>, vector<16x70xf32> -> vector<16x128xf32>
    %891 = math.log %890 : vector<16x128xf32>
    %c0_199 = arith.constant 0 : index
    %c0_200 = arith.constant 0 : index
    %892 = vector.load %arg8[%c0_199, %c0_200] : memref<16x128xf32, #tpu.memory_space<vmem>>, vector<16x128xf32>
    tpu.vector_store %arg8[%c0_199, %c0_200], %891 {strides = array<i32>} : memref<16x128xf32, #tpu.memory_space<vmem>>, vector<16x128xf32>,
    return
  }
  func.func @transform_0(%arg0: i32) -> (i32, i32) {
    %c0_i32 = arith.constant 0 : i32
    %c0_i32_0 = arith.constant 0 : i32
    %c0_i32_1 = arith.constant 0 : i32
    return %c0_i32, %c0_i32_0 : i32, i32
  }
  func.func @transform_1(%arg0: i32) -> (i32, i32, i32) {
    %c0_i32 = arith.constant 0 : i32
    %c0_i32_0 = arith.constant 0 : i32
    %c0_i32_1 = arith.constant 0 : i32
    %c0_i32_2 = arith.constant 0 : i32
    return %c0_i32, %c0_i32_0, %c0_i32_1 : i32, i32, i32
  }
  func.func @transform_2(%arg0: i32) -> (i32, i32) {
    %c0_i32 = arith.constant 0 : i32
    %c0_i32_0 = arith.constant 0 : i32
    %c0_i32_1 = arith.constant 0 : i32
    return %c0_i32, %c0_i32_0 : i32, i32
  }
  func.func @transform_3(%arg0: i32) -> (i32, i32) {
    %c0_i32 = arith.constant 0 : i32
    %c0_i32_0 = arith.constant 0 : i32
    %c0_i32_1 = arith.constant 0 : i32
    return %c0_i32, %c0_i32_0 : i32, i32
  }
  func.func @transform_4(%arg0: i32) -> (i32, i32) {
    %c0_i32 = arith.constant 0 : i32
    %c0_i32_0 = arith.constant 0 : i32
    %c0_i32_1 = arith.constant 0 : i32
    return %c0_i32, %c0_i32_0 : i32, i32
  }
  func.func @transform_5(%arg0: i32) -> (i32, i32) {
    %c0_i32 = arith.constant 0 : i32
    %c0_i32_0 = arith.constant 0 : i32
    %c0_i32_1 = arith.constant 0 : i32
    return %c0_i32, %c0_i32_0 : i32, i32
  }
  func.func @transform_6(%arg0: i32) -> (i32, i32) {
    %c0_i32 = arith.constant 0 : i32
    %c0_i32_0 = arith.constant 0 : i32
    %c0_i32_1 = arith.constant 0 : i32
    return %c0_i32, %c0_i32_0 : i32, i32
  }
  func.func @transform_7(%arg0: i32) -> (i32, i32) {
    %c0_i32 = arith.constant 0 : i32
    %c0_i32_0 = arith.constant 0 : i32
    %c0_i32_1 = arith.constant 0 : i32
    return %c0_i32, %c0_i32_0 : i32, i32
  }
}

</mosaic_0001>

<bundles_post_ra>
// kernel: tpu_custom_call.1
= control target key start
LH: loop header
LB: loop body
LE: loop exit
PB: predicated region body
PF: predicated region fallthrough
CT: control target
= control target key end

     0   :  { %vm78_vm0 = vcmask 261120   ;;  %s6798_s0 = inlined_call_operand.vmem [shape: f32[16,32], index: 0, kind: input, shape index: {}]   ;;  %s6799_s1 = inlined_call_operand.vmem [shape: f32[2,16,32], index: 1, kind: input, shape index: {}]   ;;  %s6800_s2 = inlined_call_operand.vmem [shape: f32[2,16], index: 2, kind: input, shape index: {}]   ;;  %s6801_s3 = inlined_call_operand.vmem [shape: f32[96,128], index: 3, kind: input, shape index: {}]   ;;  %s6802_s4 = inlined_call_operand.vmem [shape: f32[96,32], index: 4, kind: input, shape index: {}]   ;;  %s6803_s5 = inlined_call_operand.vmem [shape: f32[64,50], index: 5, kind: input, shape index: {}]   ;;  %s6804_s6 = inlined_call_operand.vmem [shape: f32[4,128], index: 6, kind: input, shape index: {}]   ;;  %s6805_s7 = inlined_call_operand.hbm [shape: f32[16,128], index: 7, kind: output, shape index: {}]  }
   0x1   :  { %v5287_v0 = vld [vmem:[%s6801_s3 + $0x58] sm:$0xff]  ;;  %v5295_v2 = vld [vmem:[%s6801_s3 + $0x50] sm:$0xff]  ;;  %v5310_v5 = vld [vmem:[%s6801_s3 + $0x48] sm:$0xff] }
   0x2   :  { %v44_v1 = vld [vmem:[%s6801_s3 + $0x18] sm:$0xff]  ;;  %144 = vmatpush.msra.mxu2 %v5287_v0  ;;  %v43_v3 = vld [vmem:[%s6801_s3 + $0x10] sm:$0xff]  ;;  %v42_v6 = vld [vmem:[%s6801_s3 + $0x8] sm:$0xff] }
   0x3   :  { %97 = vmatpush.msra.mxu0 %v44_v1  ;;  %v5304_v4 = vld [vmem:[%s6801_s3 + $0x38] sm:$0xff]  ;;  %v5318_v7 = vld [vmem:[%s6801_s3 + $0x30] sm:$0xff]  ;;  %v5324_v8 = vld [vmem:[%s6801_s3 + $0x28] sm:$0xff] }
   0x4   :  { %123 = vmatpush.msra.mxu1 %v5304_v4  ;;  %145 = vmatpush.msra.mxu2 %v5295_v2  ;;  %v5330_v9 = vld [vmem:[%s6801_s3 + $0x40] sm:$0xff] }
   0x5   :  { %98 = vmatpush.msra.mxu0 %v43_v3  ;;  %v41_v10 = vld [vmem:[%s6801_s3] sm:$0xff] }
   0x6   :  { %124 = vmatpush.msra.mxu1 %v5318_v7  ;;  %146 = vmatpush.msra.mxu2 %v5310_v5  ;;  %v27_v11 = vld [vmem:[%s6798_s0] sm:$0xff] }
   0x7   :  { %99 = vmatpush.msra.mxu0 %v42_v6 }
   0x8   :  { %12 = vsyncpa [#allocation3], 0  ;;  %125 = vmatpush.msra.mxu1 %v5324_v8  ;;  %v5343_v12 = vld [vmem:[%s6801_s3 + $0x20] sm:$0xff]  ;;  %147 = vmatpush.msra.mxu2 %v5330_v9  ;;  %v5233_v13 = vmov 0.0   ;;  %s5234_s29 = smov 64   ;;  %s5235_s30 = smov 32  }
   0x9   :  { %100 = vmatpush.msra.mxu0 %v41_v10  ;;  %148 = vmatmul.f32.vlgmr.msra.gmra.mxu2 %v5233_v13  ;;  %v5353_v14 = vld [vmem:[%s6804_s6] sm:$0xf]  ;;  %vm194_vm5 = vcmask 254976   ;;  %v5236_v46 = vmov 32.0   ;;  %s5237_s8 = smov 96   ;;  %v5387_v60 = vld [vmem:[%s6802_s4 + $0x18] sm:$0xff] }
   0xa   :  { %4692 = vmatmul.msk.f32.vlgmr.msra.gmra.mxu0 %vm78_vm0, %v27_v11  ;;  %126 = vmatpush.msra.mxu1 %v5343_v12  ;;  %v6806_v15 = vperm.slane %v5353_v14, 0  ;;  %v74_v57 = vperm.slane %v5353_v14, 1  ;;  %v5392_v61 = vld [vmem:[%s6802_s4 + $0x38] sm:$0xff]  ;;  %v5404_v63 = vld [vmem:[%s6802_s4 + $0x10] sm:$0xff]  ;;  %v5420_v6 = vld [vmem:[%s6802_s4 + $0x8] sm:$0xff]  ;;  %vm365_vm11 = vcmask 57344  }
   0xb   :  { %127 = vmatmul.f32.vlgmr.msra.gmra.mxu1 %v5233_v13  ;;  %v5397_v62 = vld [vmem:[%s6802_s4 + $0x58] sm:$0xff]  ;;  %254 = vmatpush.msra.mxu3 %v5387_v60  ;;  %v5409_v1 = vld [vmem:[%s6802_s4 + $0x30] sm:$0xff]  ;;  %v5425_v10 = vld [vmem:[%s6802_s4 + $0x28] sm:$0xff]  ;;  %s5242_s22 = smov 128  }
   0xc   :  { %277 = vmatpush.msrb.mxu1 %v5392_v61  ;;  %v5414_v3 = vld [vmem:[%s6802_s4 + $0x50] sm:$0xff]  ;;  %297 = vmatpush.msrb.mxu2 %v5397_v62 }
   0xd   :  { %255 = vmatpush.msra.mxu3 %v5404_v63 }
   0xe   :  { %278 = vmatpush.msrb.mxu1 %v5409_v1  ;;  %298 = vmatpush.msrb.mxu2 %v5414_v3 }
   0xf   :  { %256 = vmatpush.msra.mxu3 %v5420_v6 }
  0x10   :  { %279 = vmatpush.msrb.mxu1 %v5425_v10 }
  0x87   :  { %v102_v16 = vpop.f32.mrf.mxu0 }
  0x88   :  { %v5358_v17 = vadd.f32 %v102_v16, %v6806_v15  ;;  %v128_v18 = vpop.f32.mrf.mxu1  ;;  %v5432_v16 = vld [vmem:[%s6802_s4 + $0x48] sm:$0xff] }
  0x89   :  { %299 = vmatpush.msrb.mxu2 %v5432_v16 }
  0x8a   :  { %v131_v19 = vadd.f32 %v128_v18, %v5358_v17 }
  0x8c   :  { %v149_v20 = vpop.f32.mrf.mxu2 }
  0x8d   :  { %v152_v21 = vadd.f32 %v149_v20, %v131_v19  ;;  %v5439_v19 = vld [vmem:[%s6802_s4] sm:$0xff] }
  0x8e   :  { %v5444_v20 = vld [vmem:[%s6802_s4 + $0x20] sm:$0xff]  ;;  %257 = vmatpush.msra.mxu3 %v5439_v19 }
  0x8f   :  { %4856 = vtanh.f32 %v152_v21  ;;  %v4694_v23 = vmul.f32 -1.442695, %v152_v21  ;;  %v5451_v21 = vld [vmem:[%s6802_s4 + $0x40] sm:$0xff]  ;;  %280 = vmatpush.msrb.mxu1 %v5444_v20 }
  0x90   :  { %300 = vmatpush.msrb.mxu2 %v5451_v21 }
  0x91   :  { %4858 = vpow2.f32 %v4694_v23 }
  0x95   :  { %v4857_v22 = vpop.eup %4856 }
  0x96   :  { %175 = vrot.lane.b32.xlu0 %v4857_v22, %s5234_s29 }
  0x97   :  { %v4859_v24 = vpop.eup %4858 }
  0x98   :  { %v156_v25 = vadd.f32 1.0, %v4859_v24 }
  0x9a   :  { %4860 = vrcp.f32 %v156_v25  ;;  %v168_v31 = vand.u32 2147483648, %v156_v25  ;;  %vm162_vm2 = vweird.f32 %v156_v25  ;;  %v166_v32 = vand.u32 2147483647, %v156_v25 }
  0x9c   :  { %v169_v34 = vor.u32 1.1754944e-38, %v168_v31  ;;  %vm167_vm4 = vcmp.eq.f32.partialorder %v166_v32, 8.507059e+37 }
  0xa0   :  { %v4861_v26 = vpop.eup %4860 }
  0xa1   :  { %v158_v27 = vmul.f32 %v4861_v26, %v156_v25  ;;  %vm163_vm1 = vweird.f32 %v4861_v26 }
  0xa2   :  { %vm164_vm3 = vmor %vm162_vm2, %vm163_vm1  ;;  %vm414_vm1 = vcmask 64512  }
  0xa3   :  { %v159_v28 = vsub.f32 1.0, %v158_v27 }
  0xa5   :  { %v160_v29 = vmul.f32 %v4861_v26, %v159_v28 }
  0xa7   :  { %v161_v30 = vadd.f32 %v4861_v26, %v160_v29 }
  0xa9   :  { %v165_v33 = vsel %vm164_vm3, %v4861_v26, %v161_v30 }
  0xaa   :  { %v170_v36 = vsel %vm167_vm4, %v169_v34, %v165_v33 }
  0xab   :  { %v173_v38 = vmul.f32 0.0, %v170_v36 }
 0x108   :  { %v176_v35 = vpop.permute.xlu0 %175 }
 0x109   :  { %v178_v37 = vmul.f32 %v176_v35, %v170_v36  ;;  %v5470_v35 = vld [vmem:[%s6799_s1 + $0x18] sm:$0xff] }
 0x10a   :  { %4700 = vmatpush.xpose.msk.msrb.mxu0 %vm78_vm0, %v5470_v35  ;;  %456 = vmatpush.msra.mxu2 %v5470_v35 }
 0x10b   :  { %180 = vrot.lane.b32.xlu0 %v178_v37, %s5235_s30  ;;  %v28_v37 = vld [vmem:[%s6798_s0 + $0x8] sm:$0xff]  ;;  %s4679_s0 = sshll.u32 %s6805_s7, 4  ;;  %s4680_s0 = int_to_ptr.hbm [resolvable:$true] %s4679_s0 }
 0x10c   :  { %4693 = vmatmul.msk.f32.gmra.mxu0 %vm78_vm0, %v28_v37 }
 0x17d   :  { %v181_v39 = vpop.permute.xlu0 %180 }
 0x17e   :  { %v5363_v40 = vadd.f32 %v181_v39, %v173_v38  ;;  %v5484_v38 = vld [vmem:[%s6799_s1 + $0x8] sm:$0xff]  ;;  %v33_v39 = vld [vmem:[%s6800_s2] sm:$0x3]  ;;  %s5238_s2 = smov 120  }
 0x17f   :  { %4698 = vmatpush.xpose.msk.msrb.mxu3 %vm78_vm0, %v5484_v38  ;;  %433 = vmatpush.msra.mxu1 %v5484_v38  ;;  %vm34_vm10 = vcmp.le.f32.partialorder %v33_v39, 0.5 }
 0x180   :  { %4862 = vtanh.f32 %v5363_v40 }
 0x181   :  { %4864 = vrcp.f32 %v5236_v46 }
 0x186   :  { %v4863_v41 = vpop.eup %4862 }
 0x187   :  { %186 = vrot.lane.b32.xlu1 %v4863_v41, %s5234_s29  ;;  %v4865_v47 = vpop.eup %4864  ;;  %v5496_v41 = vld [vmem:[%s6799_s1 + $0x10] sm:$0xff] }
 0x188   :  { %v199_v48 = vmul.f32 32.0, %v4865_v47  ;;  %vm203_vm6 = vweird.f32 %v4865_v47  ;;  %4706 = vmatpush.xpose.msk.msra.mxu0 %vm78_vm0, %v5496_v41 }
 0x18a   :  { %v200_v49 = vsub.f32 1.0, %v199_v48 }
 0x18c   :  { %v201_v50 = vmul.f32 %v4865_v47, %v200_v49 }
 0x18e   :  { %v202_v51 = vadd.f32 %v4865_v47, %v201_v50 }
 0x190   :  { %v5375_v52 = vsel %vm203_vm6, %v4865_v47, %v202_v51 }
 0x1f9   :  { %v187_v42 = vpop.permute.xlu1 %186 }
 0x1fa   :  { %v5367_v43 = vmul.f32 %v187_v42, %v170_v36  ;;  %v5501_v42 = vld [vmem:[%s6799_s1] sm:$0xff] }
 0x1fc   :  { %6821 = vst [vmem:[#allocation5_spill] sm:$0xff] %v5367_v43  ;;  %191 = vrot.lane.b32.xlu1 %v5367_v43, %s5235_s30 }
 0x204   :  { %229 = vrot.lane.b32.xlu1 %v74_v57, %s5237_s8 }
 0x20c   :  { %233 = vrot.lane.b32.xlu1 %v74_v57, %s5234_s29 }
 0x26e   :  { %v5371_v44 = vpop.permute.xlu1 %191 }
 0x26f   :  { %v195_v45 = vsel %vm194_vm5, %v5371_v44, 0.0 }
 0x270   :  { %196 = vadd.xlane.f32.xlu2 %v195_v45  ;;  %v4691_v45 = vsel %vm34_vm10, 1.0, %v5233_v13 }
 0x271   :  { %v5510_v46 = vmul.f32 -1e+09, %v4691_v45 }
 0x273   :  { %v5513_v47 = vrot.slane %v5510_v46, 1  ;;  %v307_v13 = vperm.slane %v5510_v46, 0 }
 0x275   :  { %v336_v48 = vperm.slane %v5513_v47, 0 }
 0x276   :  { %v5457_v26 = vpop.permute.xlu1 %229 }
 0x27e   :  { %v5459_v32 = vpop.permute.xlu1 %233 }
 0x2e3   :  { %v197_v53 = vpop.xlane.xlu2 %196 }
 0x2e4   :  { %v205_v54 = vmul.f32 %v5375_v52, %v197_v53 }
 0x2e6   :  { %v206_v55 = vsub.f32 %v5367_v43, %v205_v54 }
 0x2e8   :  { %v207_v56 = vmul.f32 %v206_v55, %v206_v55 }
 0x2ea   :  { %209 = vrot.lane.b32.xlu2 %v207_v56, %s5235_s30 }
 0x2f2   :  { %262 = vrot.lane.b32.xlu2 %v74_v57, %s5235_s30  ;;  %v5543_v57 = vpop.f32.mrf.mxu0 }
 0x2fa   :  { %308 = vrot.lane.b32.xlu2 %v307_v13, %s5238_s2 }
 0x344   :  { %v210_v58 = vpop.permute.xlu2 %209 }
 0x345   :  { %v212_v59 = vsel %vm194_vm5, %v210_v58, 0.0 }
 0x346   :  { %213 = vadd.xlane.f32.xlu0 %v212_v59 }
 0x34c   :  { %v5519_v53 = vpop.permute.xlu2 %262 }
 0x3b9   :  { %v214_v11 = vpop.xlane.xlu0 %213 }
 0x3ba   :  { %v215_v18 = vmul.f32 %v214_v11, %v5375_v52 }
 0x3bc   :  { %v216_v22 = vadd.f32 1e-05, %v215_v18  ;;  %v5548_v18 = vpop.permute.xlu2 %308 }
 0x3be   :  { %4866 = vrsqrt.f32 %v216_v22  ;;  %vm223_vm8 = vweird.f32 %v216_v22 }
 0x3c4   :  { %v4867_v23 = vpop.eup %4866 }
 0x3c5   :  { %v218_v24 = vmul.f32 %v4867_v23, %v216_v22  ;;  %vm224_vm7 = vweird.f32 %v4867_v23 }
 0x3c6   :  { %vm225_vm9 = vmor %vm223_vm8, %vm224_vm7 }
 0x3c7   :  { %v219_v25 = vmul.f32 %v4867_v23, %v218_v24 }
 0x3c9   :  { %v220_v27 = vmul.f32 0.5, %v219_v25 }
 0x3cb   :  { %v221_v28 = vsub.f32 1.5, %v220_v27 }
 0x3cd   :  { %v222_v29 = vmul.f32 %v4867_v23, %v221_v28 }
 0x3cf   :  { %v226_v30 = vsel %vm225_vm9, %v4867_v23, %v222_v29 }
 0x3d0   :  { %v227_v31 = vmul.f32 %v226_v30, %v206_v55 }
 0x3d2   :  { %v232_v33 = vmul.f32 %v5457_v26, %v227_v31 }
 0x3d4   :  { %v5463_v34 = vadd.f32 %v5459_v32, %v232_v33 }
 0x3d6   :  { %238 = vrot.lane.b32.xlu1 %v5463_v34, %s5235_s30 }
 0x3de   :  { %337 = vrot.lane.b32.xlu1 %v336_v48, %s5238_s2  ;;  %s5243_s2 = smov 8  }
 0x448   :  { %v239_v36 = vpop.permute.xlu1 %238 }
 0x449   :  { %4695 = vmatmul.msk.f32.vlgmr.msra.gmra.mxu3 %vm78_vm0, %v239_v36  ;;  %4696 = vmatmul.msk.f32.vlgmr.msrb.gmra.mxu1 %vm78_vm0, %v239_v36 }
 0x44a   :  { %4697 = vmatmul.msk.f32.vlgmr.msrb.gmra.mxu2 %vm78_vm0, %v239_v36  ;;  %4704 = vmatpush.xpose.msk.msra.mxu3 %vm78_vm0, %v5501_v42 }
 0x44b   :  { %602 = vmatpush.msrb.mxu2 %v5496_v41  ;;  %579 = vmatpush.msrb.mxu1 %v5501_v42 }
 0x450   :  { %v5545_v58 = vpop.permute.xlu1 %337 }
 0x4c6   :  { %v282_v54 = vpop.f32.mrf.mxu1 }
 0x4c7   :  { %v283_v55 = vadd.f32 %v282_v54, %v5519_v53 }
 0x4c9   :  { %v462_v56 = vrot.slane %v283_v55, 1 }
 0x4cc   :  { %v259_v49 = vpop.f32.mrf.mxu3 }
 0x4cd   :  { %v260_v50 = vadd.f32 %v259_v49, %v5459_v32 }
 0x4cf   :  { %v306_v51 = vrot.slane %v260_v50, 1  ;;  %4699 = vmatmul.msk.f32.vlgmr.msrb.gmra.mxu3 %vm78_vm0, %v260_v50 }
 0x4d0   :  { %667 = vmatpush.msrb.mxu3 %v5304_v4 }
 0x4d1   :  { %4701 = vmatmul.msk.f32.vlgmr.msrb.gmra.mxu0 %vm78_vm0, %v306_v51 }
 0x4d2   :  { %693 = vmatpush.msrb.mxu0 %v5287_v0  ;;  %668 = vmatpush.msrb.mxu3 %v5318_v7 }
 0x4d4   :  { %694 = vmatpush.msrb.mxu0 %v5295_v2  ;;  %669 = vmatpush.msrb.mxu3 %v5324_v8 }
 0x4d6   :  { %695 = vmatpush.msrb.mxu0 %v5310_v5  ;;  %670 = vmatpush.msrb.mxu3 %v5343_v12 }
 0x4d7   :  { %4705 = vmatmul.msk.f32.vlgmr.msra.gmra.mxu3 %vm78_vm0, %v283_v55 }
 0x4d8   :  { %696 = vmatpush.msrb.mxu0 %v5330_v9  ;;  %836 = vmatpush.msra.mxu3 %v5397_v62 }
 0x4d9   :  { %4707 = vmatmul.msk.f32.vlgmr.msra.gmra.mxu0 %vm78_vm0, %v462_v56 }
 0x4da   :  { %837 = vmatpush.msra.mxu3 %v5414_v3  ;;  %4716 = vmatpush.xpose.msk.msra.mxu0 %vm78_vm0, %v5484_v38 }
 0x4dc   :  { %838 = vmatpush.msra.mxu3 %v5432_v16 }
 0x4de   :  { %839 = vmatpush.msra.mxu3 %v5451_v21 }
 0x4e1   :  { %4711 = vmatmul.msk.f32.vlgmr.msrb.gmra.mxu0 %vm78_vm0, %v5371_v44 }
 0x4e2   :  { %4722 = vmatpush.xpose.msk.msrb.mxu0 %vm78_vm0, %v5501_v42 }
 0x54e   :  { %v362_v59 = vpop.f32.mrf.mxu0 }
 0x54f   :  { %v363_v11 = vadd.f32 %v362_v59, %v5545_v58 }
 0x551   :  { %v369_v22 = vsel %vm365_vm11, %v363_v11, -inf }
 0x552   :  { %v333_v23 = vpop.f32.mrf.mxu3  ;;  %370 = vmax.xlane.f32.xlu1 %v369_v22 }
 0x553   :  { %v334_v24 = vadd.f32 %v333_v23, %v5548_v18 }
 0x555   :  { %v366_v44 = vsel %vm365_vm11, %v334_v24, -inf }
 0x556   :  { %367 = vmax.xlane.f32.xlu2 %v366_v44  ;;  %v510_v25 = vpop.f32.mrf.mxu0 }
 0x557   :  { %v511_v27 = vadd.f32 %v510_v25, %v5513_v47 }
 0x559   :  { %v516_v28 = vsel %vm365_vm11, %v511_v27, -inf }
 0x55a   :  { %v485_v29 = vpop.f32.mrf.mxu3  ;;  %517 = vmax.xlane.f32.xlu0 %v516_v28 }
 0x55b   :  { %v486_v30 = vadd.f32 %v485_v29, %v5510_v46 }
 0x55d   :  { %v513_v31 = vsel %vm365_vm11, %v486_v30, -inf }
 0x562   :  { %514 = vmax.xlane.f32.xlu0 %v513_v31 }
 0x5c5   :  { %v371_v33 = vpop.xlane.xlu1 %370 }
 0x5c6   :  { %v373_v36 = vsub.f32 %v363_v11, %v371_v33 }
 0x5c8   :  { %v376_v37 = vmul.f32 1.442695, %v373_v36 }
 0x5c9   :  { %v368_v39 = vpop.xlane.xlu2 %367 }
 0x5ca   :  { %4868 = vpow2.f32 %v376_v37  ;;  %v372_v45 = vsub.f32 %v334_v24, %v368_v39 }
 0x5cc   :  { %v374_v48 = vmul.f32 1.442695, %v372_v45 }
 0x5cd   :  { %v518_v13 = vpop.xlane.xlu0 %517 }
 0x5ce   :  { %v520_v49 = vsub.f32 %v511_v27, %v518_v13  ;;  %4870 = vpow2.f32 %v374_v48 }
 0x5d0   :  { %v4869_v50 = vpop.eup %4868  ;;  %v523_v51 = vmul.f32 1.442695, %v520_v49 }
 0x5d1   :  { %v381_v54 = vsel %vm365_vm11, %v4869_v50, 0.0 }
 0x5d2   :  { %4872 = vpow2.f32 %v523_v51  ;;  %382 = vadd.xlane.f32.xlu0 %v381_v54 }
 0x5d4   :  { %v5558_v56 = vpop.eup %4870 }
 0x5d5   :  { %v515_v55 = vpop.xlane.xlu0 %514  ;;  %v378_v24 = vsel %vm365_vm11, %v5558_v56, 0.0 }
 0x5d6   :  { %v519_v59 = vsub.f32 %v486_v30, %v515_v55 }
 0x5d8   :  { %v5560_v22 = vpop.eup %4872  ;;  %v521_v11 = vmul.f32 1.442695, %v519_v59 }
 0x5d9   :  { %v528_v23 = vsel %vm365_vm11, %v5560_v22, 0.0 }
 0x5da   :  { %4874 = vpow2.f32 %v521_v11  ;;  %529 = vadd.xlane.f32.xlu2 %v528_v23  ;;  %379 = vadd.xlane.f32.xlu0 %v378_v24 }
 0x5e0   :  { %v5566_v44 = vpop.eup %4874 }
 0x5e1   :  { %v525_v25 = vsel %vm365_vm11, %v5566_v44, 0.0 }
 0x5e2   :  { %526 = vadd.xlane.f32.xlu0 %v525_v25 }
 0x645   :  { %v383_v27 = vpop.xlane.xlu0 %382 }
 0x646   :  { %4876 = vrcp.f32 %v383_v27  ;;  %v410_v37 = vand.u32 2147483648, %v383_v27  ;;  %v408_v39 = vand.u32 2147483647, %v383_v27  ;;  %vm404_vm13 = vweird.f32 %v383_v27 }
 0x648   :  { %v411_v51 = vor.u32 1.1754944e-38, %v410_v37  ;;  %vm409_vm15 = vcmp.eq.f32.partialorder %v408_v39, 8.507059e+37 }
 0x64c   :  { %v4877_v28 = vpop.eup %4876 }
 0x64d   :  { %v400_v29 = vmul.f32 %v4877_v28, %v383_v27  ;;  %v530_v30 = vpop.xlane.xlu2 %529  ;;  %v380_v31 = vpop.xlane.xlu0 %379  ;;  %vm405_vm12 = vweird.f32 %v4877_v28 }
 0x64e   :  { %4878 = vrcp.f32 %v530_v30  ;;  %vm406_vm14 = vmor %vm404_vm13, %vm405_vm12  ;;  %v557_v24 = vand.u32 2147483648, %v530_v30  ;;  %v395_v27 = vand.u32 2147483648, %v380_v31  ;;  %v393_v43 = vand.u32 2147483647, %v380_v31 }
 0x64f   :  { %v401_v33 = vsub.f32 1.0, %v400_v29  ;;  %4880 = vrcp.f32 %v380_v31  ;;  %vm551_vm4 = vweird.f32 %v530_v30  ;;  %vm389_vm7 = vweird.f32 %v380_v31 }
 0x650   :  { %v558_v39 = vor.u32 1.1754944e-38, %v557_v24  ;;  %vm394_vm10 = vcmp.eq.f32.partialorder %v393_v43, 8.507059e+37 }
 0x651   :  { %v402_v36 = vmul.f32 %v4877_v28, %v401_v33 }
 0x653   :  { %v403_v45 = vadd.f32 %v4877_v28, %v402_v36  ;;  %v555_v36 = vand.u32 2147483647, %v530_v30 }
 0x654   :  { %v4879_v48 = vpop.eup %4878 }
 0x655   :  { %v4881_v13 = vpop.eup %4880  ;;  %v407_v49 = vsel %vm406_vm14, %v4877_v28, %v403_v45  ;;  %v547_v54 = vmul.f32 %v4879_v48, %v530_v30  ;;  %v527_v55 = vpop.xlane.xlu0 %526  ;;  %vm552_vm2 = vweird.f32 %v4879_v48  ;;  %vm556_vm8 = vcmp.eq.f32.partialorder %v555_v36, 8.507059e+37 }
 0x656   :  { %v385_v59 = vmul.f32 %v4881_v13, %v380_v31  ;;  %4882 = vrcp.f32 %v527_v55  ;;  %v412_v23 = vsel %vm409_vm15, %v411_v51, %v407_v49  ;;  %vm390_vm3 = vweird.f32 %v4881_v13  ;;  %vm553_vm6 = vmor %vm551_vm4, %vm552_vm2 }
 0x657   :  { %v548_v11 = vsub.f32 1.0, %v547_v54  ;;  %v413_v29 = vmul.f32 %v4869_v50, %v412_v23  ;;  %vm391_vm9 = vmor %vm389_vm7, %vm390_vm3  ;;  %v396_v50 = vor.u32 1.1754944e-38, %v395_v27  ;;  %v542_v24 = vand.u32 2147483648, %v527_v55 }
 0x658   :  { %v386_v25 = vsub.f32 1.0, %v385_v59  ;;  %vm536_vm13 = vweird.f32 %v527_v55  ;;  %vm610_vm2 = vcmask 1041409  }
 0x659   :  { %v549_v33 = vmul.f32 %v4879_v48, %v548_v11  ;;  %4703 = vmatmul.msk.f32.vlgmr.msra.gmra.mxu2 %vm414_vm1, %v413_v29  ;;  %v5595_v29 = vperm.slane %v5353_v14, 2 }
 0x65a   :  { %v387_v15 = vmul.f32 %v4881_v13, %v386_v25  ;;  %816 = vmatpush.msra.mxu2 %v5392_v61 }
 0x65b   :  { %v550_v28 = vadd.f32 %v4879_v48, %v549_v33 }
 0x65c   :  { %v4883_v37 = vpop.eup %4882  ;;  %v388_v45 = vadd.f32 %v4881_v13, %v387_v15  ;;  %817 = vmatpush.msra.mxu2 %v5409_v1 }
 0x65d   :  { %v554_v49 = vsel %vm553_vm6, %v4879_v48, %v550_v28  ;;  %v532_v51 = vmul.f32 %v4883_v37, %v527_v55  ;;  %vm537_vm12 = vweird.f32 %v4883_v37  ;;  %v540_v48 = vand.u32 2147483647, %v527_v55  ;;  %v302_v55 = vpop.f32.mrf.mxu2 }
 0x65e   :  { %v392_v54 = vsel %vm391_vm9, %v4881_v13, %v388_v45  ;;  %v559_v59 = vsel %vm556_vm8, %v558_v39, %v554_v49  ;;  %818 = vmatpush.msra.mxu2 %v5425_v10  ;;  %vm538_vm14 = vmor %vm536_vm13, %vm537_vm12  ;;  %vm749_vm13 = vcmask 257026  }
 0x65f   :  { %v533_v11 = vsub.f32 1.0, %v532_v51  ;;  %v397_v23 = vsel %vm394_vm10, %v396_v50, %v392_v54  ;;  %v5574_v30 = vmul.f32 %v5560_v22, %v559_v59  ;;  %v543_v22 = vor.u32 1.1754944e-38, %v542_v24 }
 0x660   :  { %v398_v15 = vmul.f32 %v5558_v56, %v397_v23  ;;  %819 = vmatpush.msra.mxu2 %v5444_v20  ;;  %vm541_vm15 = vcmp.eq.f32.partialorder %v540_v48, 8.507059e+37 }
 0x661   :  { %6822 = vst [vmem:[#allocation6_spill] sm:$0xff] %v5574_v30  ;;  %v534_v31 = vmul.f32 %v4883_v37, %v533_v11  ;;  %4709 = vmatmul.msk.f32.vlgmr.msrb.gmra.mxu2 %vm414_vm1, %v5574_v30 }
 0x662   :  { %4702 = vmatmul.msk.f32.vlgmr.msra.gmra.mxu1 %vm414_vm1, %v398_v15  ;;  %956 = vmatpush.msrb.mxu2 %v5484_v38 }
 0x663   :  { %v535_v43 = vadd.f32 %v4883_v37, %v534_v31  ;;  %796 = vmatpush.msra.mxu1 %v5387_v60 }
 0x665   :  { %v539_v13 = vsel %vm538_vm14, %v4883_v37, %v535_v43  ;;  %797 = vmatpush.msra.mxu1 %v5404_v63 }
 0x666   :  { %v544_v56 = vsel %vm541_vm15, %v543_v22, %v539_v13 }
 0x667   :  { %v5586_v25 = vmul.f32 %v5566_v44, %v544_v56  ;;  %798 = vmatpush.msra.mxu1 %v5420_v6  ;;  %v303_v44 = vadd.f32 %v302_v55, %v5595_v29 }
 0x669   :  { %799 = vmatpush.msra.mxu1 %v5439_v19 }
 0x66a   :  { %4708 = vmatmul.msk.f32.vlgmr.msrb.gmra.mxu1 %vm414_vm1, %v5586_v25 }
 0x66b   :  { %4718 = vmatpush.xpose.msk.msrb.mxu1 %vm78_vm0, %v5470_v35 }
 0x6dc   :  { %v458_v33 = vpop.f32.mrf.mxu2 }
 0x6dd   :  { %v609_v36 = vrot.slane %v458_v33, 7 }
 0x6df   :  { %v435_v27 = vpop.f32.mrf.mxu1 }
 0x6e0   :  { %v611_v28 = vsel %vm610_vm2, %v609_v36, %v435_v27 }
 0x6e1   :  { %v613_v37 = vmul.f32 %v611_v28, %v303_v44 }
 0x6e3   :  { %v614_v39 = vsel %vm194_vm5, %v613_v37, 0.0 }
 0x6e4   :  { %615 = vadd.xlane.f32.xlu1 %v614_v39  ;;  %v604_v45 = vpop.f32.mrf.mxu2 }
 0x6e5   :  { %v619_v49 = vrot.slane %v604_v45, 7 }
 0x6e7   :  { %v581_v50 = vpop.f32.mrf.mxu1 }
 0x6e8   :  { %v620_v51 = vsel %vm610_vm2, %v619_v49, %v581_v50 }
 0x6e9   :  { %v622_v54 = vmul.f32 %v620_v51, %v303_v44 }
 0x6eb   :  { %v623_v59 = vsel %vm194_vm5, %v622_v54, 0.0 }
 0x6ec   :  { %624 = vadd.xlane.f32.xlu2 %v623_v59 }
 0x757   :  { %v616_v11 = vpop.xlane.xlu1 %615 }
 0x75f   :  { %v625_v23 = vpop.xlane.xlu2 %624 }
 0x760   :  { %v626_v24 = vmax.f32 %v616_v11, %v625_v23 }
 0x762   :  { %v627_v15 = vsub.f32 %v616_v11, %v626_v24  ;;  %v630_v31 = vsub.f32 %v625_v23, %v626_v24 }
 0x764   :  { %v628_v48 = vmul.f32 1.442695, %v627_v15  ;;  %v631_v43 = vmul.f32 1.442695, %v630_v31 }
 0x766   :  { %4884 = vpow2.f32 %v628_v48 }
 0x767   :  { %4886 = vpow2.f32 %v631_v43 }
 0x76c   :  { %v4885_v22 = vpop.eup %4884 }
 0x76d   :  { %v4887_v13 = vpop.eup %4886  ;;  %v633_v44 = vmul.f32 %v4885_v22, %v611_v28  ;;  %v698_v28 = vpop.f32.mrf.mxu0 }
 0x76e   :  { %v636_v56 = vadd.f32 %v4887_v13, %v4885_v22  ;;  %v634_v37 = vmul.f32 %v4887_v13, %v620_v51  ;;  %v702_v15 = vrot.slane %v698_v28, 6 }
 0x770   :  { %4888 = vrcp.f32 %v636_v56  ;;  %v648_v27 = vand.u32 2147483648, %v636_v56  ;;  %v646_v45 = vand.u32 2147483647, %v636_v56  ;;  %vm642_vm4 = vweird.f32 %v636_v56 }
 0x771   :  { %v635_v54 = vadd.f32 %v634_v37, %v633_v44 }
 0x772   :  { %v649_v50 = vor.u32 1.1754944e-38, %v648_v27  ;;  %vm647_vm7 = vcmp.eq.f32.partialorder %v646_v45, 8.507059e+37 }
 0x776   :  { %v4889_v55 = vpop.eup %4888 }
 0x777   :  { %v638_v33 = vmul.f32 %v4889_v55, %v636_v56  ;;  %vm643_vm3 = vweird.f32 %v4889_v55 }
 0x778   :  { %vm644_vm6 = vmor %vm642_vm4, %vm643_vm3 }
 0x779   :  { %v639_v36 = vsub.f32 1.0, %v638_v33 }
 0x77b   :  { %v640_v39 = vmul.f32 %v4889_v55, %v639_v36 }
 0x77d   :  { %v641_v49 = vadd.f32 %v4889_v55, %v640_v39 }
 0x77f   :  { %v645_v59 = vsel %vm644_vm6, %v4889_v55, %v641_v49 }
 0x780   :  { %v650_v11 = vsel %vm647_vm7, %v649_v50, %v645_v59 }
 0x781   :  { %v651_v23 = vmul.f32 %v650_v11, %v635_v54  ;;  %v726_v11 = vrot.slane %v5363_v40, 6 }
 0x783   :  { %4710 = vmatmul.msk.f32.vlgmr.msrb.gmra.mxu3 %vm78_vm0, %v651_v23  ;;  %4276 = vst [vmem:[#allocation1] ss:$4 sm:$0xff] %v651_v23 }
 0x784   :  { %979 = vmatpush.msrb.mxu3 %v5470_v35 }
 0x806   :  { %v672_v24 = vpop.f32.mrf.mxu3 }
 0x807   :  { %v676_v51 = vrot.slane %v672_v24, 6 }
 0x809   :  { %v678_v31 = vadd.f32 %v676_v51, %v5358_v17 }
 0x80b   :  { %v704_v48 = vadd.f32 %v702_v15, %v678_v31 }
 0x80d   :  { %4890 = vtanh.f32 %v704_v48  ;;  %v4712_v22 = vmul.f32 -1.442695, %v704_v48 }
 0x80f   :  { %4892 = vpow2.f32 %v4712_v22 }
 0x813   :  { %v4891_v43 = vpop.eup %4890 }
 0x814   :  { %730 = vrot.lane.b32.xlu0 %v4891_v43, %s5234_s29 }
 0x815   :  { %v4893_v13 = vpop.eup %4892 }
 0x816   :  { %v708_v56 = vadd.f32 1.0, %v4893_v13 }
 0x818   :  { %4894 = vrcp.f32 %v708_v56  ;;  %v720_v37 = vand.u32 2147483648, %v708_v56  ;;  %vm714_vm9 = vweird.f32 %v708_v56  ;;  %v718_v39 = vand.u32 2147483647, %v708_v56 }
 0x81a   :  { %v721_v49 = vor.u32 1.1754944e-38, %v720_v37  ;;  %vm719_vm12 = vcmp.eq.f32.partialorder %v718_v39, 8.507059e+37 }
 0x81e   :  { %v4895_v55 = vpop.eup %4894 }
 0x81f   :  { %v710_v33 = vmul.f32 %v4895_v55, %v708_v56  ;;  %vm715_vm8 = vweird.f32 %v4895_v55 }
 0x820   :  { %vm716_vm10 = vmor %vm714_vm9, %vm715_vm8 }
 0x821   :  { %v711_v36 = vsub.f32 1.0, %v710_v33 }
 0x823   :  { %v712_v44 = vmul.f32 %v4895_v55, %v711_v36 }
 0x825   :  { %v713_v27 = vadd.f32 %v4895_v55, %v712_v44 }
 0x827   :  { %v717_v45 = vsel %vm716_vm10, %v4895_v55, %v713_v27 }
 0x828   :  { %v722_v54 = vsel %vm719_vm12, %v721_v49, %v717_v45 }
 0x829   :  { %v728_v23 = vmul.f32 %v726_v11, %v722_v54 }
 0x886   :  { %v731_v50 = vpop.permute.xlu0 %730 }
 0x887   :  { %v733_v59 = vmul.f32 %v731_v50, %v722_v54 }
 0x889   :  { %735 = vrot.lane.b32.xlu1 %v733_v59, %s5235_s30 }
 0x8fb   :  { %v736_v28 = vpop.permute.xlu1 %735 }
 0x8fc   :  { %v5608_v24 = vadd.f32 %v736_v28, %v728_v23 }
 0x8fe   :  { %4896 = vtanh.f32 %v5608_v24 }
 0x904   :  { %v4897_v51 = vpop.eup %4896 }
 0x905   :  { %741 = vrot.lane.b32.xlu2 %v4897_v51, %s5234_s29 }
 0x95f   :  { %v742_v15 = vpop.permute.xlu2 %741 }
 0x960   :  { %v5612_v31 = vmul.f32 %v742_v15, %v722_v54 }
 0x962   :  { %746 = vrot.lane.b32.xlu0 %v5612_v31, %s5235_s30 }
 0x9d4   :  { %v747_v48 = vpop.permute.xlu0 %746 }
 0x9d5   :  { %v750_v43 = vsel %vm749_vm13, %v747_v48, 0.0 }
 0x9d6   :  { %751 = vadd.xlane.f32.xlu1 %v750_v43 }
 0xa49   :  { %v752_v40 = vpop.xlane.xlu1 %751 }
 0xa4a   :  { %v753_v22 = vmul.f32 %v752_v40, %v5375_v52 }
 0xa4c   :  { %v754_v13 = vsub.f32 %v5612_v31, %v753_v22 }
 0xa4e   :  { %v755_v56 = vmul.f32 %v754_v13, %v754_v13 }
 0xa50   :  { %757 = vrot.lane.b32.xlu0 %v755_v56, %s5235_s30 }
 0xac2   :  { %v758_v55 = vpop.permute.xlu0 %757 }
 0xac3   :  { %v760_v33 = vsel %vm749_vm13, %v758_v55, 0.0 }
 0xac4   :  { %761 = vadd.xlane.f32.xlu2 %v760_v33 }
 0xb37   :  { %v762_v36 = vpop.xlane.xlu2 %761 }
 0xb38   :  { %v763_v44 = vmul.f32 %v762_v36, %v5375_v52 }
 0xb3a   :  { %v764_v27 = vadd.f32 1e-05, %v763_v44 }
 0xb3c   :  { %4898 = vrsqrt.f32 %v764_v27  ;;  %vm771_vm15 = vweird.f32 %v764_v27 }
 0xb42   :  { %v4899_v37 = vpop.eup %4898 }
 0xb43   :  { %v766_v39 = vmul.f32 %v4899_v37, %v764_v27  ;;  %vm772_vm14 = vweird.f32 %v4899_v37 }
 0xb44   :  { %vm773_vm3 = vmor %vm771_vm15, %vm772_vm14 }
 0xb45   :  { %v767_v45 = vmul.f32 %v4899_v37, %v766_v39 }
 0xb47   :  { %v768_v49 = vmul.f32 0.5, %v767_v45 }
 0xb49   :  { %v769_v50 = vsub.f32 1.5, %v768_v49 }
 0xb4b   :  { %v770_v54 = vmul.f32 %v4899_v37, %v769_v50 }
 0xb4d   :  { %v774_v59 = vsel %vm773_vm3, %v4899_v37, %v770_v54 }
 0xb4e   :  { %v775_v11 = vmul.f32 %v774_v59, %v754_v13 }
 0xb50   :  { %v776_v23 = vmul.f32 %v775_v11, %v5457_v26 }
 0xb52   :  { %v5624_v28 = vadd.f32 %v776_v23, %v5459_v32 }
 0xb54   :  { %v6811_v51 = vrot.slane %v5624_v28, 2 }
 0xb56   :  { %780 = vrot.lane.b32.xlu0 %v6811_v51, %s5235_s30 }
 0xbc8   :  { %v781_v15 = vpop.permute.xlu0 %780 }
 0xbc9   :  { %4713 = vmatmul.msk.f32.vlgmr.msra.gmra.mxu1 %vm78_vm0, %v781_v15  ;;  %4714 = vmatmul.msk.f32.vlgmr.msra.gmra.mxu2 %vm78_vm0, %v781_v15 }
 0xbca   :  { %4715 = vmatmul.msk.f32.vlgmr.msra.gmra.mxu3 %vm78_vm0, %v781_v15  ;;  %4724 = vmatpush.xpose.msk.msra.mxu1 %vm78_vm0, %v5496_v41 }
 0xbcb   :  { %1119 = vmatpush.msra.mxu3 %v5496_v41  ;;  %1096 = vmatpush.msra.mxu2 %v5501_v42 }
 0xc46   :  { %v801_v48 = vpop.f32.mrf.mxu1 }
 0xc47   :  { %v802_v43 = vadd.f32 %v801_v48, %v5459_v32 }
 0xc49   :  { %v845_v40 = vrot.slane %v802_v43, 1  ;;  %4717 = vmatmul.msk.f32.vlgmr.msra.gmra.mxu0 %vm78_vm0, %v802_v43 }
 0xc4a   :  { %1183 = vmatpush.msra.mxu0 %v5304_v4 }
 0xc4b   :  { %4719 = vmatmul.msk.f32.vlgmr.msrb.gmra.mxu1 %vm78_vm0, %v845_v40 }
 0xc4c   :  { %v821_v22 = vpop.f32.mrf.mxu2  ;;  %1212 = vmatpush.msrb.mxu1 %v5287_v0  ;;  %1184 = vmatpush.msra.mxu0 %v5318_v7 }
 0xc4d   :  { %v822_v13 = vadd.f32 %v821_v22, %v5519_v53 }
 0xc4e   :  { %1213 = vmatpush.msrb.mxu1 %v5295_v2  ;;  %1185 = vmatpush.msra.mxu0 %v5324_v8 }
 0xc4f   :  { %v985_v41 = vrot.slane %v822_v13, 1 }
 0xc50   :  { %1214 = vmatpush.msrb.mxu1 %v5310_v5  ;;  %1186 = vmatpush.msra.mxu0 %v5343_v12 }
 0xc51   :  { %4723 = vmatmul.msk.f32.vlgmr.msrb.gmra.mxu0 %vm78_vm0, %v822_v13  ;;  %v6809_v13 = vrot.slane %v5612_v31, 2 }
 0xc52   :  { %1215 = vmatpush.msrb.mxu1 %v5330_v9  ;;  %1355 = vmatpush.msrb.mxu0 %v5397_v62 }
 0xc53   :  { %4725 = vmatmul.msk.f32.vlgmr.msra.gmra.mxu1 %vm78_vm0, %v985_v41 }
 0xc54   :  { %1356 = vmatpush.msrb.mxu0 %v5414_v3  ;;  %4734 = vmatpush.xpose.msk.msra.mxu1 %vm78_vm0, %v5484_v38 }
 0xc56   :  { %1357 = vmatpush.msrb.mxu0 %v5432_v16 }
 0xc58   :  { %1358 = vmatpush.msrb.mxu0 %v5451_v21 }
 0xcc6   :  { %v865_v0 = vpop.f32.mrf.mxu0 }
 0xcc7   :  { %v866_v2 = vadd.f32 %v865_v0, %v5548_v18 }
 0xcc8   :  { %v887_v4 = vpop.f32.mrf.mxu1 }
 0xcc9   :  { %v888_v5 = vadd.f32 %v887_v4, %v5545_v58  ;;  %v890_v7 = vsel %vm365_vm11, %v866_v2, -inf }
 0xcca   :  { %891 = vmax.xlane.f32.xlu1 %v890_v7 }
 0xccb   :  { %v893_v8 = vsel %vm365_vm11, %v888_v5, -inf }
 0xccc   :  { %894 = vmax.xlane.f32.xlu0 %v893_v8 }
 0xcce   :  { %v1005_v9 = vpop.f32.mrf.mxu0 }
 0xccf   :  { %v1006_v12 = vadd.f32 %v1005_v9, %v5510_v46 }
 0xcd0   :  { %v1027_v62 = vpop.f32.mrf.mxu1 }
 0xcd1   :  { %v1028_v3 = vadd.f32 %v1027_v62, %v5513_v47  ;;  %v1030_v16 = vsel %vm365_vm11, %v1006_v12, -inf }
 0xcd2   :  { %1031 = vmax.xlane.f32.xlu1 %v1030_v16 }
 0xcd3   :  { %v1033_v21 = vsel %vm365_vm11, %v1028_v3, -inf }
 0xcd4   :  { %1034 = vmax.xlane.f32.xlu2 %v1033_v21 }
 0xd3d   :  { %v892_v56 = vpop.xlane.xlu1 %891 }
 0xd3e   :  { %v896_v55 = vsub.f32 %v866_v2, %v892_v56 }
 0xd3f   :  { %v895_v33 = vpop.xlane.xlu0 %894 }
 0xd40   :  { %v898_v36 = vmul.f32 1.442695, %v896_v55  ;;  %v897_v44 = vsub.f32 %v888_v5, %v895_v33 }
 0xd42   :  { %4900 = vpow2.f32 %v898_v36  ;;  %v900_v27 = vmul.f32 1.442695, %v897_v44 }
 0xd44   :  { %4902 = vpow2.f32 %v900_v27 }
 0xd45   :  { %v1032_v37 = vpop.xlane.xlu1 %1031 }
 0xd46   :  { %v1036_v39 = vsub.f32 %v1006_v12, %v1032_v37 }
 0xd47   :  { %v1035_v45 = vpop.xlane.xlu2 %1034 }
 0xd48   :  { %v4901_v49 = vpop.eup %4900  ;;  %v1038_v50 = vmul.f32 1.442695, %v1036_v39  ;;  %v1037_v54 = vsub.f32 %v1028_v3, %v1035_v45 }
 0xd49   :  { %v902_v59 = vsel %vm365_vm11, %v4901_v49, 0.0 }
 0xd4a   :  { %v4903_v11 = vpop.eup %4902  ;;  %4904 = vpow2.f32 %v1038_v50  ;;  %v1040_v23 = vmul.f32 1.442695, %v1037_v54  ;;  %903 = vadd.xlane.f32.xlu1 %v902_v59 }
 0xd4b   :  { %v905_v15 = vsel %vm365_vm11, %v4903_v11, 0.0 }
 0xd4c   :  { %4906 = vpow2.f32 %v1040_v23  ;;  %906 = vadd.xlane.f32.xlu2 %v905_v15 }
 0xd50   :  { %v5667_v48 = vpop.eup %4904 }
 0xd51   :  { %v1042_v22 = vsel %vm365_vm11, %v5667_v48, 0.0 }
 0xd52   :  { %v5669_v43 = vpop.eup %4906 }
 0xd53   :  { %v1045_v40 = vsel %vm365_vm11, %v5669_v43, 0.0 }
 0xd54   :  { %1046 = vadd.xlane.f32.xlu0 %v1045_v40  ;;  %1043 = vadd.xlane.f32.xlu2 %v1042_v22 }
 0xd6c   :  { %1196 = vrot.lane.b32.xlu2 %v6809_v13, %s5235_s30 }
 0xdbd   :  { %v904_v41 = vpop.xlane.xlu1 %903 }
 0xdbe   :  { %4908 = vrcp.f32 %v904_v41  ;;  %v917_v62 = vand.u32 2147483647, %v904_v41  ;;  %v919_v3 = vand.u32 2147483648, %v904_v41  ;;  %vm913_vm6 = vweird.f32 %v904_v41 }
 0xdbf   :  { %v907_v0 = vpop.xlane.xlu2 %906 }
 0xdc0   :  { %4910 = vrcp.f32 %v907_v0  ;;  %v934_v56 = vand.u32 2147483648, %v907_v0  ;;  %v932_v36 = vand.u32 2147483647, %v907_v0  ;;  %v920_v44 = vor.u32 1.1754944e-38, %v919_v3 }
 0xdc1   :  { %vm918_vm9 = vcmp.eq.f32.partialorder %v917_v62, 8.507059e+37  ;;  %vm928_vm10 = vweird.f32 %v907_v0 }
 0xdc2   :  { %v935_v50 = vor.u32 1.1754944e-38, %v934_v56  ;;  %vm933_vm14 = vcmp.eq.f32.partialorder %v932_v36, 8.507059e+37 }
 0xdc4   :  { %v4909_v2 = vpop.eup %4908 }
 0xdc5   :  { %v909_v4 = vmul.f32 %v4909_v2, %v904_v41  ;;  %vm914_vm4 = vweird.f32 %v4909_v2 }
 0xdc6   :  { %v4911_v5 = vpop.eup %4910  ;;  %vm915_vm8 = vmor %vm913_vm6, %vm914_vm4 }
 0xdc7   :  { %v910_v7 = vsub.f32 1.0, %v909_v4  ;;  %v924_v8 = vmul.f32 %v4911_v5, %v907_v0  ;;  %v1044_v9 = vpop.xlane.xlu2 %1043  ;;  %v5679_v12 = vpop.xlane.xlu0 %1046  ;;  %vm929_vm7 = vweird.f32 %v4911_v5 }
 0xdc8   :  { %4912 = vrcp.f32 %v1044_v9  ;;  %vm930_vm12 = vmor %vm928_vm10, %vm929_vm7  ;;  %v1059_v0 = vand.u32 2147483648, %v1044_v9  ;;  %v1072_v3 = vand.u32 2147483647, %v5679_v12  ;;  %vm1053_vm4 = vweird.f32 %v1044_v9 }
 0xdc9   :  { %v911_v16 = vmul.f32 %v4909_v2, %v910_v7  ;;  %v925_v21 = vsub.f32 1.0, %v924_v8  ;;  %4914 = vrcp.f32 %v5679_v12  ;;  %v1057_v8 = vand.u32 2147483647, %v1044_v9 }
 0xdca   :  { %vm1068_vm7 = vweird.f32 %v5679_v12  ;;  %vm1073_vm10 = vcmp.eq.f32.partialorder %v1072_v3, 8.507059e+37 }
 0xdcb   :  { %v912_v55 = vadd.f32 %v4909_v2, %v911_v16  ;;  %v926_v33 = vmul.f32 %v4911_v5, %v925_v21 }
 0xdcd   :  { %v916_v27 = vsel %vm915_vm8, %v4909_v2, %v912_v55  ;;  %v927_v37 = vadd.f32 %v4911_v5, %v926_v33  ;;  %vm1058_vm8 = vcmp.eq.f32.partialorder %v1057_v8, 8.507059e+37 }
 0xdce   :  { %v4913_v39 = vpop.eup %4912  ;;  %v921_v45 = vsel %vm918_vm9, %v920_v44, %v916_v27 }
 0xdcf   :  { %v4915_v54 = vpop.eup %4914  ;;  %v931_v59 = vsel %vm930_vm12, %v4911_v5, %v927_v37  ;;  %v1049_v23 = vmul.f32 %v4913_v39, %v1044_v9  ;;  %v1197_v15 = vpop.permute.xlu2 %1196  ;;  %v922_v40 = vmul.f32 %v4901_v49, %v921_v45  ;;  %vm1054_vm15 = vweird.f32 %v4913_v39 }
 0xdd0   :  { %v936_v22 = vsel %vm933_vm14, %v935_v50, %v931_v59  ;;  %v1064_v41 = vmul.f32 %v4915_v54, %v5679_v12  ;;  %4729 = vmatmul.msk.f32.vlgmr.msrb.gmra.mxu1 %vm78_vm0, %v1197_v15  ;;  %v1074_v49 = vand.u32 2147483648, %v5679_v12  ;;  %vm1069_vm3 = vweird.f32 %v4915_v54  ;;  %vm1055_vm6 = vmor %vm1053_vm4, %vm1054_vm15 }
 0xdd1   :  { %v1050_v4 = vsub.f32 1.0, %v1049_v23  ;;  %4720 = vmatmul.msk.f32.vlgmr.msrb.gmra.mxu2 %vm414_vm1, %v922_v40  ;;  %v937_v2 = vmul.f32 %v4903_v11, %v936_v22  ;;  %4740 = vmatpush.xpose.msk.msrb.mxu1 %vm78_vm0, %v5501_v42  ;;  %v1060_v11 = vor.u32 1.1754944e-38, %v1059_v0  ;;  %vm1070_vm9 = vmor %vm1068_vm7, %vm1069_vm3 }
 0xdd2   :  { %v1065_v7 = vsub.f32 1.0, %v1064_v41  ;;  %1315 = vmatpush.msrb.mxu2 %v5387_v60  ;;  %v1075_v21 = vor.u32 1.1754944e-38, %v1074_v49 }
 0xdd3   :  { %v1051_v5 = vmul.f32 %v4913_v39, %v1050_v4  ;;  %4721 = vmatmul.msk.f32.vlgmr.msrb.gmra.mxu3 %vm414_vm1, %v937_v2 }
 0xdd4   :  { %v1066_v62 = vmul.f32 %v4915_v54, %v1065_v7  ;;  %1335 = vmatpush.msrb.mxu3 %v5392_v61  ;;  %1316 = vmatpush.msrb.mxu2 %v5404_v63 }
 0xdd5   :  { %v1052_v42 = vadd.f32 %v4913_v39, %v1051_v5 }
 0xdd6   :  { %v1067_v60 = vadd.f32 %v4915_v54, %v1066_v62  ;;  %1336 = vmatpush.msrb.mxu3 %v5409_v1  ;;  %1317 = vmatpush.msrb.mxu2 %v5420_v6  ;;  %v841_v1 = vpop.f32.mrf.mxu3 }
 0xdd7   :  { %v1056_v16 = vsel %vm1055_vm6, %v4913_v39, %v1052_v42 }
 0xdd8   :  { %v1061_v56 = vsel %vm1058_vm8, %v1060_v11, %v1056_v16  ;;  %v1071_v55 = vsel %vm1070_vm9, %v4915_v54, %v1067_v60  ;;  %1337 = vmatpush.msrb.mxu3 %v5425_v10  ;;  %1318 = vmatpush.msrb.mxu2 %v5439_v19  ;;  %v842_v19 = vadd.f32 %v841_v1, %v5595_v29  ;;  %vm1268_vm9 = vcmask 259076  }
 0xdd9   :  { %v1076_v61 = vsel %vm1073_vm10, %v1075_v21, %v1071_v55  ;;  %v5699_v63 = vmul.f32 %v5667_v48, %v1061_v56  ;;  %v5721_v21 = vld [vmem:[%s6799_s1 + $0x18] sm:$0xff] }
 0xdda   :  { %v5702_v9 = vmul.f32 %v5669_v43, %v1076_v61  ;;  %1338 = vmatpush.msrb.mxu3 %v5444_v20 }
 0xddb   :  { %6823 = vst [vmem:[#allocation7_spill] sm:$0xff] %v5699_v63  ;;  %4726 = vmatmul.msk.f32.vlgmr.msra.gmra.mxu2 %vm414_vm1, %v5699_v63 }
 0xddc   :  { %6824 = vst [vmem:[#allocation8_spill] sm:$0xff] %v5702_v9  ;;  %4727 = vmatmul.msk.f32.vlgmr.msra.gmra.mxu3 %vm414_vm1, %v5702_v9  ;;  %4736 = vmatpush.xpose.msk.msra.mxu2 %vm78_vm0, %v5470_v35 }
 0xddd   :  { %1475 = vmatpush.msra.mxu3 %v5484_v38 }
 0xe4d   :  { %v1217_v56 = vpop.f32.mrf.mxu1 }
 0xe4e   :  { %v1221_v1 = vrot.slane %v1217_v56, 4 }
 0xe54   :  { %v958_v48 = vpop.f32.mrf.mxu2 }
 0xe56   :  { %v981_v6 = vpop.f32.mrf.mxu3 }
 0xe57   :  { %v1126_v10 = vrot.slane %v981_v6, 7 }
 0xe59   :  { %v1127_v43 = vsel %vm610_vm2, %v1126_v10, %v958_v48 }
 0xe5a   :  { %v1129_v20 = vmul.f32 %v1127_v43, %v842_v19 }
 0xe5c   :  { %v1130_v12 = vsel %vm194_vm5, %v1129_v20, 0.0 }
 0xe5d   :  { %1131 = vadd.xlane.f32.xlu1 %v1130_v12 }
 0xe5e   :  { %v1098_v44 = vpop.f32.mrf.mxu2 }
 0xe5f   :  { %v1121_v33 = vpop.f32.mrf.mxu3 }
 0xe60   :  { %v1135_v36 = vrot.slane %v1121_v33, 7 }
 0xe62   :  { %v1136_v27 = vsel %vm610_vm2, %v1135_v36, %v1098_v44 }
 0xe63   :  { %v1138_v35 = vmul.f32 %v1136_v27, %v842_v19 }
 0xe65   :  { %v1139_v38 = vsel %vm194_vm5, %v1138_v35, 0.0 }
 0xe66   :  { %1140 = vadd.xlane.f32.xlu0 %v1139_v38 }
 0xed0   :  { %v1132_v37 = vpop.xlane.xlu1 %1131 }
 0xed9   :  { %v1141_v39 = vpop.xlane.xlu0 %1140 }
 0xeda   :  { %v1142_v45 = vmax.f32 %v1132_v37, %v1141_v39 }
 0xedc   :  { %v1143_v50 = vsub.f32 %v1132_v37, %v1142_v45  ;;  %v1146_v54 = vsub.f32 %v1141_v39, %v1142_v45 }
 0xede   :  { %v1144_v59 = vmul.f32 1.442695, %v1143_v50  ;;  %v1147_v23 = vmul.f32 1.442695, %v1146_v54 }
 0xee0   :  { %4916 = vpow2.f32 %v1144_v59  ;;  %v1245_v59 = vrot.slane %v5608_v24, 6 }
 0xee1   :  { %4918 = vpow2.f32 %v1147_v23 }
 0xee6   :  { %v4917_v15 = vpop.eup %4916 }
 0xee7   :  { %v4919_v40 = vpop.eup %4918  ;;  %v1149_v0 = vmul.f32 %v4917_v15, %v1127_v43 }
 0xee8   :  { %v1152_v22 = vadd.f32 %v4919_v40, %v4917_v15  ;;  %v1150_v5 = vmul.f32 %v4919_v40, %v1136_v27 }
 0xeea   :  { %4920 = vrcp.f32 %v1152_v22  ;;  %v1164_v7 = vand.u32 2147483648, %v1152_v22  ;;  %v1162_v49 = vand.u32 2147483647, %v1152_v22  ;;  %vm1158_vm14 = vweird.f32 %v1152_v22 }
 0xeeb   :  { %v1151_v42 = vadd.f32 %v1150_v5, %v1149_v0 }
 0xeec   :  { %v1165_v3 = vor.u32 1.1754944e-38, %v1164_v7  ;;  %vm1163_vm3 = vcmp.eq.f32.partialorder %v1162_v49, 8.507059e+37 }
 0xef0   :  { %v4921_v41 = vpop.eup %4920 }
 0xef1   :  { %v1154_v4 = vmul.f32 %v4921_v41, %v1152_v22  ;;  %vm1159_vm12 = vweird.f32 %v4921_v41 }
 0xef2   :  { %vm1160_vm15 = vmor %vm1158_vm14, %vm1159_vm12 }
 0xef3   :  { %v1155_v2 = vsub.f32 1.0, %v1154_v4 }
 0xef5   :  { %v1156_v8 = vmul.f32 %v4921_v41, %v1155_v2 }
 0xef7   :  { %v1157_v62 = vadd.f32 %v4921_v41, %v1156_v8 }
 0xef9   :  { %v1161_v11 = vsel %vm1160_vm15, %v4921_v41, %v1157_v62 }
 0xefa   :  { %v1166_v60 = vsel %vm1163_vm3, %v1165_v3, %v1161_v11 }
 0xefb   :  { %v1167_v16 = vmul.f32 %v1166_v60, %v1151_v42 }
 0xefd   :  { %4728 = vmatmul.msk.f32.vlgmr.msra.gmra.mxu0 %vm78_vm0, %v1167_v16  ;;  %4278 = vst [vmem:[#allocation1 + $0x1] ss:$4 sm:$0xff] %v1167_v16 }
 0xefe   :  { %1498 = vmatpush.msra.mxu0 %v5721_v21 }
 0xf7a   :  { %v1188_v55 = vpop.f32.mrf.mxu0 }
 0xf7b   :  { %v1192_v61 = vrot.slane %v1188_v55, 4 }
 0xf7d   :  { %v1194_v6 = vadd.f32 %v1192_v61, %v5358_v17 }
 0xf7f   :  { %v1223_v10 = vadd.f32 %v1221_v1, %v1194_v6 }
 0xf81   :  { %4922 = vtanh.f32 %v1223_v10  ;;  %v4730_v48 = vmul.f32 -1.442695, %v1223_v10 }
 0xf83   :  { %4924 = vpow2.f32 %v4730_v48 }
 0xf87   :  { %v4923_v19 = vpop.eup %4922 }
 0xf88   :  { %1249 = vrot.lane.b32.xlu1 %v4923_v19, %s5234_s29 }
 0xf89   :  { %v4925_v43 = vpop.eup %4924 }
 0xf8a   :  { %v1227_v20 = vadd.f32 1.0, %v4925_v43 }
 0xf8c   :  { %4926 = vrcp.f32 %v1227_v20  ;;  %v1239_v35 = vand.u32 2147483648, %v1227_v20  ;;  %vm1233_vm6 = vweird.f32 %v1227_v20  ;;  %v1237_v38 = vand.u32 2147483647, %v1227_v20 }
 0xf8e   :  { %v1240_v39 = vor.u32 1.1754944e-38, %v1239_v35  ;;  %vm1238_vm8 = vcmp.eq.f32.partialorder %v1237_v38, 8.507059e+37  ;;  %v5772_v38 = vld [vmem:[%s6801_s3 + $0x38] sm:$0xff] }
 0xf92   :  { %v4927_v12 = vpop.eup %4926 }
 0xf93   :  { %v1229_v33 = vmul.f32 %v4927_v12, %v1227_v20  ;;  %vm1234_vm4 = vweird.f32 %v4927_v12 }
 0xf94   :  { %vm1235_vm7 = vmor %vm1233_vm6, %vm1234_vm4 }
 0xf95   :  { %v1230_v36 = vsub.f32 1.0, %v1229_v33  ;;  %v5763_v33 = vld [vmem:[%s6799_s1] sm:$0xff] }
 0xf97   :  { %v1231_v44 = vmul.f32 %v4927_v12, %v1230_v36 }
 0xf99   :  { %v1232_v27 = vadd.f32 %v4927_v12, %v1231_v44 }
 0xf9b   :  { %v1236_v37 = vsel %vm1235_vm7, %v4927_v12, %v1232_v27  ;;  %v5756_v12 = vld [vmem:[%s6799_s1 + $0x10] sm:$0xff] }
 0xf9c   :  { %v1241_v50 = vsel %vm1238_vm8, %v1240_v39, %v1236_v37  ;;  %v5779_v37 = vld [vmem:[%s6801_s3 + $0x58] sm:$0xff]  ;;  %v5785_v39 = vld [vmem:[%s6801_s3 + $0x30] sm:$0xff] }
 0xf9d   :  { %v1247_v23 = vmul.f32 %v1245_v59, %v1241_v50  ;;  %v5804_v59 = vld [vmem:[%s6801_s3 + $0x48] sm:$0xff] }
 0xffa   :  { %v1250_v45 = vpop.permute.xlu1 %1249 }
 0xffb   :  { %v1252_v54 = vmul.f32 %v1250_v45, %v1241_v50 }
 0xffd   :  { %1254 = vrot.lane.b32.xlu0 %v1252_v54, %s5235_s30  ;;  %v5798_v54 = vld [vmem:[%s6801_s3 + $0x28] sm:$0xff] }
0x106f   :  { %v1255_v15 = vpop.permute.xlu0 %1254 }
0x1070   :  { %v5728_v40 = vadd.f32 %v1255_v15, %v1247_v23  ;;  %v5810_v23 = vld [vmem:[%s6801_s3 + $0x20] sm:$0xff] }
0x1072   :  { %4928 = vtanh.f32 %v5728_v40 }
0x1078   :  { %v4929_v22 = vpop.eup %4928 }
0x1079   :  { %1260 = vrot.lane.b32.xlu2 %v4929_v22, %s5234_s29  ;;  %v5817_v22 = vld [vmem:[%s6801_s3 + $0x40] sm:$0xff] }
0x10d3   :  { %v1261_v41 = vpop.permute.xlu2 %1260 }
0x10d4   :  { %v5732_v4 = vmul.f32 %v1261_v41, %v1241_v50  ;;  %v5792_v50 = vld [vmem:[%s6801_s3 + $0x50] sm:$0xff]  ;;  %v5823_v41 = vld [vmem:[%s6802_s4 + $0x58] sm:$0xff] }
0x10d6   :  { %1265 = vrot.lane.b32.xlu0 %v5732_v4, %s5235_s30 }
0x1148   :  { %v1266_v2 = vpop.permute.xlu0 %1265 }
0x1149   :  { %v1269_v0 = vsel %vm1268_vm9, %v1266_v2, 0.0  ;;  %v5830_v2 = vld [vmem:[%s6802_s4 + $0x50] sm:$0xff] }
0x114a   :  { %1270 = vadd.xlane.f32.xlu1 %v1269_v0  ;;  %v5836_v0 = vld [vmem:[%s6799_s1 + $0x8] sm:$0xff] }
0x11bd   :  { %v1271_v24 = vpop.xlane.xlu1 %1270 }
0x11be   :  { %v1272_v7 = vmul.f32 %v1271_v24, %v5375_v52  ;;  %v5843_v24 = vld [vmem:[%s6802_s4 + $0x48] sm:$0xff] }
0x11c0   :  { %v1273_v5 = vsub.f32 %v5732_v4, %v1272_v7  ;;  %v5849_v7 = vld [vmem:[%s6802_s4 + $0x40] sm:$0xff] }
0x11c2   :  { %v1274_v8 = vmul.f32 %v1273_v5, %v1273_v5 }
0x11c4   :  { %1276 = vrot.lane.b32.xlu2 %v1274_v8, %s5235_s30 }
0x121e   :  { %v1277_v49 = vpop.permute.xlu2 %1276 }
0x121f   :  { %v1279_v62 = vsel %vm1268_vm9, %v1277_v49, 0.0 }
0x1220   :  { %1280 = vadd.xlane.f32.xlu0 %v1279_v62 }
0x1293   :  { %v1281_v3 = vpop.xlane.xlu0 %1280 }
0x1294   :  { %v1282_v42 = vmul.f32 %v1281_v3, %v5375_v52 }
0x1296   :  { %v1283_v11 = vadd.f32 1e-05, %v1282_v42 }
0x1298   :  { %4930 = vrsqrt.f32 %v1283_v11  ;;  %vm1290_vm12 = vweird.f32 %v1283_v11 }
0x129e   :  { %v4931_v60 = vpop.eup %4930 }
0x129f   :  { %v1285_v16 = vmul.f32 %v4931_v60, %v1283_v11  ;;  %vm1291_vm10 = vweird.f32 %v4931_v60 }
0x12a0   :  { %vm1292_vm14 = vmor %vm1290_vm12, %vm1291_vm10 }
0x12a1   :  { %v1286_v56 = vmul.f32 %v4931_v60, %v1285_v16 }
0x12a3   :  { %v1287_v55 = vmul.f32 0.5, %v1286_v56 }
0x12a5   :  { %v1288_v61 = vsub.f32 1.5, %v1287_v55 }
0x12a7   :  { %v1289_v1 = vmul.f32 %v4931_v60, %v1288_v61 }
0x12a9   :  { %v1293_v6 = vsel %vm1292_vm14, %v4931_v60, %v1289_v1 }
0x12aa   :  { %v1294_v10 = vmul.f32 %v1293_v6, %v1273_v5 }
0x12ac   :  { %v1295_v19 = vmul.f32 %v1294_v10, %v5457_v26 }
0x12ae   :  { %v5744_v48 = vadd.f32 %v1295_v19, %v5459_v32 }
0x12b0   :  { %v6810_v43 = vrot.slane %v5744_v48, 4 }
0x12b2   :  { %1299 = vrot.lane.b32.xlu2 %v6810_v43, %s5235_s30 }
0x130c   :  { %v1300_v20 = vpop.permute.xlu2 %1299 }
0x130d   :  { %4731 = vmatmul.msk.f32.vlgmr.msrb.gmra.mxu2 %vm78_vm0, %v1300_v20  ;;  %4732 = vmatmul.msk.f32.vlgmr.msrb.gmra.mxu3 %vm78_vm0, %v1300_v20 }
0x130e   :  { %4733 = vmatmul.msk.f32.vlgmr.msrb.gmra.mxu0 %vm78_vm0, %v1300_v20  ;;  %4742 = vmatpush.xpose.msk.msrb.mxu2 %vm78_vm0, %v5756_v12 }
0x130f   :  { %1615 = vmatpush.msrb.mxu3 %v5763_v33  ;;  %1638 = vmatpush.msrb.mxu0 %v5756_v12 }
0x1390   :  { %v1320_v36 = vpop.f32.mrf.mxu2  ;;  %v1340_v35 = vpop.f32.mrf.mxu3 }
0x1391   :  { %v1321_v44 = vadd.f32 %v1320_v36, %v5459_v32  ;;  %v1341_v45 = vadd.f32 %v1340_v35, %v5519_v53 }
0x1393   :  { %v1364_v27 = vrot.slane %v1321_v44, 1  ;;  %4735 = vmatmul.msk.f32.vlgmr.msra.gmra.mxu1 %vm78_vm0, %v1321_v44  ;;  %v1504_v15 = vrot.slane %v1341_v45, 1 }
0x1394   :  { %1702 = vmatpush.msra.mxu1 %v5772_v38 }
0x1395   :  { %4737 = vmatmul.msk.f32.vlgmr.msra.gmra.mxu2 %vm78_vm0, %v1364_v27 }
0x1396   :  { %1731 = vmatpush.msra.mxu2 %v5779_v37  ;;  %1703 = vmatpush.msra.mxu1 %v5785_v39 }
0x1398   :  { %1732 = vmatpush.msra.mxu2 %v5792_v50  ;;  %1704 = vmatpush.msra.mxu1 %v5798_v54 }
0x139a   :  { %1733 = vmatpush.msra.mxu2 %v5804_v59  ;;  %1705 = vmatpush.msra.mxu1 %v5810_v23 }
0x139b   :  { %4741 = vmatmul.msk.f32.vlgmr.msrb.gmra.mxu1 %vm78_vm0, %v1341_v45 }
0x139c   :  { %1734 = vmatpush.msra.mxu2 %v5817_v22  ;;  %1874 = vmatpush.msrb.mxu1 %v5823_v41 }
0x139d   :  { %4743 = vmatmul.msk.f32.vlgmr.msrb.gmra.mxu2 %vm78_vm0, %v1504_v15 }
0x139e   :  { %1875 = vmatpush.msrb.mxu1 %v5830_v2  ;;  %4752 = vmatpush.xpose.msk.msrb.mxu2 %vm78_vm0, %v5836_v0 }
0x13a0   :  { %1876 = vmatpush.msrb.mxu1 %v5843_v24 }
0x13a2   :  { %1877 = vmatpush.msrb.mxu1 %v5849_v7 }
0x1410   :  { %v1384_v5 = vpop.f32.mrf.mxu1 }
0x1411   :  { %v1385_v8 = vadd.f32 %v1384_v5, %v5548_v18 }
0x1413   :  { %v1409_v49 = vsel %vm365_vm11, %v1385_v8, -inf }
0x1414   :  { %1410 = vmax.xlane.f32.xlu2 %v1409_v49 }
0x1418   :  { %v1406_v62 = vpop.f32.mrf.mxu2  ;;  %v1524_v3 = vpop.f32.mrf.mxu1 }
0x1419   :  { %v1407_v42 = vadd.f32 %v1406_v62, %v5545_v58  ;;  %v1525_v11 = vadd.f32 %v1524_v3, %v5510_v46 }
0x141b   :  { %v1549_v60 = vsel %vm365_vm11, %v1525_v11, -inf  ;;  %v1412_v16 = vsel %vm365_vm11, %v1407_v42, -inf }
0x141c   :  { %1550 = vmax.xlane.f32.xlu0 %v1549_v60  ;;  %1413 = vmax.xlane.f32.xlu1 %v1412_v16 }
0x1420   :  { %v1546_v56 = vpop.f32.mrf.mxu2 }
0x1421   :  { %v1547_v55 = vadd.f32 %v1546_v56, %v5513_v47  ;;  %v6808_v56 = vrot.slane %v5732_v4, 4 }
0x1423   :  { %v1552_v61 = vsel %vm365_vm11, %v1547_v55, -inf }
0x1424   :  { %1553 = vmax.xlane.f32.xlu1 %v1552_v61 }
0x1487   :  { %v1411_v1 = vpop.xlane.xlu2 %1410 }
0x1488   :  { %v1415_v6 = vsub.f32 %v1385_v8, %v1411_v1 }
0x148a   :  { %v1417_v10 = vmul.f32 1.442695, %v1415_v6 }
0x148c   :  { %4932 = vpow2.f32 %v1417_v10 }
0x148f   :  { %v1551_v19 = vpop.xlane.xlu0 %1550  ;;  %v1414_v20 = vpop.xlane.xlu1 %1413 }
0x1490   :  { %v1555_v36 = vsub.f32 %v1525_v11, %v1551_v19  ;;  %v1416_v44 = vsub.f32 %v1407_v42, %v1414_v20 }
0x1492   :  { %v4933_v27 = vpop.eup %4932  ;;  %v1557_v35 = vmul.f32 1.442695, %v1555_v36  ;;  %v1419_v45 = vmul.f32 1.442695, %v1416_v44 }
0x1493   :  { %v1421_v15 = vsel %vm365_vm11, %v4933_v27, 0.0 }
0x1494   :  { %4934 = vpow2.f32 %v1557_v35  ;;  %1422 = vadd.xlane.f32.xlu0 %v1421_v15 }
0x1495   :  { %4936 = vpow2.f32 %v1419_v45 }
0x1497   :  { %v1554_v5 = vpop.xlane.xlu1 %1553 }
0x1498   :  { %v1556_v49 = vsub.f32 %v1547_v55, %v1554_v5 }
0x149a   :  { %v5861_v62 = vpop.eup %4934  ;;  %v1559_v3 = vmul.f32 1.442695, %v1556_v49 }
0x149b   :  { %v5863_v8 = vpop.eup %4936  ;;  %v1561_v60 = vsel %vm365_vm11, %v5861_v62, 0.0 }
0x149c   :  { %4938 = vpow2.f32 %v1559_v3  ;;  %1562 = vadd.xlane.f32.xlu2 %v1561_v60  ;;  %v1424_v42 = vsel %vm365_vm11, %v5863_v8, 0.0 }
0x149d   :  { %1425 = vadd.xlane.f32.xlu1 %v1424_v42 }
0x14a2   :  { %v5869_v11 = vpop.eup %4938 }
0x14a3   :  { %v1564_v16 = vsel %vm365_vm11, %v5869_v11, 0.0 }
0x14a4   :  { %1565 = vadd.xlane.f32.xlu0 %v1564_v16 }
0x14b8   :  { %1715 = vrot.lane.b32.xlu0 %v6808_v56, %s5235_s30 }
0x1507   :  { %v1423_v55 = vpop.xlane.xlu0 %1422 }
0x1508   :  { %4940 = vrcp.f32 %v1423_v55  ;;  %v1438_v20 = vand.u32 2147483648, %v1423_v55  ;;  %v1436_v44 = vand.u32 2147483647, %v1423_v55  ;;  %vm1432_vm3 = vweird.f32 %v1423_v55 }
0x150a   :  { %v1439_v15 = vor.u32 1.1754944e-38, %v1438_v20  ;;  %vm1437_vm6 = vcmp.eq.f32.partialorder %v1436_v44, 8.507059e+37  ;;  %v5881_v20 = vld [vmem:[%s6802_s4 + $0x18] sm:$0xff] }
0x150e   :  { %v4941_v61 = vpop.eup %4940 }
0x150f   :  { %v1428_v1 = vmul.f32 %v4941_v61, %v1423_v55  ;;  %v1563_v6 = vpop.xlane.xlu2 %1562  ;;  %vm1433_vm15 = vweird.f32 %v4941_v61 }
0x1510   :  { %4942 = vrcp.f32 %v1563_v6  ;;  %v1426_v10 = vpop.xlane.xlu1 %1425  ;;  %vm1434_vm4 = vmor %vm1432_vm3, %vm1433_vm15  ;;  %v1576_v51 = vand.u32 2147483647, %v1563_v6  ;;  %vm1572_vm10 = vweird.f32 %v1563_v6 }
0x1511   :  { %v1429_v19 = vsub.f32 1.0, %v1428_v1  ;;  %4944 = vrcp.f32 %v1426_v10  ;;  %v1578_v1 = vand.u32 2147483648, %v1563_v6  ;;  %v1451_v9 = vand.u32 2147483647, %v1426_v10 }
0x1512   :  { %vm1447_vm14 = vweird.f32 %v1426_v10  ;;  %vm1577_vm15 = vcmp.eq.f32.partialorder %v1576_v51, 8.507059e+37  ;;  %v5896_v51 = vld [vmem:[%s6802_s4 + $0x8] sm:$0xff] }
0x1513   :  { %v1430_v36 = vmul.f32 %v4941_v61, %v1429_v19 }
0x1515   :  { %v1431_v35 = vadd.f32 %v4941_v61, %v1430_v36  ;;  %v1453_v36 = vand.u32 2147483648, %v1426_v10 }
0x1516   :  { %v4943_v45 = vpop.eup %4942 }
0x1517   :  { %v4945_v5 = vpop.eup %4944  ;;  %v1435_v49 = vsel %vm1434_vm4, %v4941_v61, %v1431_v35  ;;  %v1568_v3 = vmul.f32 %v4943_v45, %v1563_v6  ;;  %v1566_v60 = vpop.xlane.xlu0 %1565  ;;  %vm1573_vm7 = vweird.f32 %v4943_v45  ;;  %vm1452_vm4 = vcmp.eq.f32.partialorder %v1451_v9, 8.507059e+37  ;;  %v5903_v9 = vld [vmem:[%s6802_s4] sm:$0xff] }
0x1518   :  { %v1440_v42 = vsel %vm1437_vm6, %v1439_v15, %v1435_v49  ;;  %v1443_v16 = vmul.f32 %v4945_v5, %v1426_v10  ;;  %4946 = vrcp.f32 %v1566_v60  ;;  %vm1448_vm8 = vweird.f32 %v4945_v5  ;;  %vm1574_vm12 = vmor %vm1572_vm10, %vm1573_vm7 }
0x1519   :  { %v1569_v56 = vsub.f32 1.0, %v1568_v3  ;;  %v1441_v43 = vmul.f32 %v4933_v27, %v1440_v42  ;;  %v1579_v27 = vor.u32 1.1754944e-38, %v1578_v1  ;;  %vm1449_vm3 = vmor %vm1447_vm14, %vm1448_vm8  ;;  %v1593_v10 = vand.u32 2147483648, %v1566_v60 }
0x151a   :  { %v1444_v13 = vsub.f32 1.0, %v1443_v16  ;;  %vm1587_vm7 = vweird.f32 %v1566_v60 }
0x151b   :  { %v1570_v19 = vmul.f32 %v4943_v45, %v1569_v56  ;;  %4738 = vmatmul.msk.f32.vlgmr.msra.gmra.mxu3 %vm414_vm1, %v1441_v43  ;;  %v5887_v43 = vld [vmem:[%s6802_s4 + $0x10] sm:$0xff] }
0x151c   :  { %v1445_v55 = vmul.f32 %v4945_v5, %v1444_v13  ;;  %1834 = vmatpush.msra.mxu3 %v5881_v20  ;;  %v1454_v13 = vor.u32 1.1754944e-38, %v1453_v36 }
0x151d   :  { %v1571_v61 = vadd.f32 %v4943_v45, %v1570_v19  ;;  %v1591_v19 = vand.u32 2147483647, %v1566_v60 }
0x151e   :  { %v4947_v44 = vpop.eup %4946  ;;  %v1446_v56 = vadd.f32 %v4945_v5, %v1445_v55  ;;  %1835 = vmatpush.msra.mxu3 %v5887_v43  ;;  %v5920_v55 = vld [vmem:[%s6802_s4 + $0x30] sm:$0xff] }
0x151f   :  { %v1575_v35 = vsel %vm1574_vm12, %v4943_v45, %v1571_v61  ;;  %v1583_v15 = vmul.f32 %v4947_v44, %v1566_v60  ;;  %vm1588_vm6 = vweird.f32 %v4947_v44  ;;  %vm1592_vm10 = vcmp.eq.f32.partialorder %v1591_v19, 8.507059e+37 }
0x1520   :  { %v1580_v6 = vsel %vm1577_vm15, %v1579_v27, %v1575_v35  ;;  %v1450_v49 = vsel %vm1449_vm3, %v4945_v5, %v1446_v56  ;;  %1836 = vmatpush.msra.mxu3 %v5896_v51  ;;  %vm1589_vm8 = vmor %vm1587_vm7, %vm1588_vm6  ;;  %v1594_v5 = vor.u32 1.1754944e-38, %v1593_v10  ;;  %v5929_v27 = vld [vmem:[%s6802_s4 + $0x28] sm:$0xff]  ;;  %v5936_v56 = vld [vmem:[%s6802_s4 + $0x20] sm:$0xff] }
0x1521   :  { %v1455_v3 = vsel %vm1452_vm4, %v1454_v13, %v1450_v49  ;;  %v1584_v42 = vsub.f32 1.0, %v1583_v15  ;;  %v5891_v16 = vmul.f32 %v5861_v62, %v1580_v6 }
0x1522   :  { %v1456_v45 = vmul.f32 %v5863_v8, %v1455_v3  ;;  %1837 = vmatpush.msra.mxu3 %v5903_v9  ;;  %v5912_v8 = vld [vmem:[%s6802_s4 + $0x38] sm:$0xff] }
0x1523   :  { %6825 = vst [vmem:[#allocation9_spill] sm:$0xff] %v5891_v16  ;;  %v1585_v1 = vmul.f32 %v4947_v44, %v1584_v42  ;;  %4744 = vmatmul.msk.f32.vlgmr.msrb.gmra.mxu3 %vm414_vm1, %v5891_v16 }
0x1524   :  { %4739 = vmatmul.msk.f32.vlgmr.msra.gmra.mxu0 %vm414_vm1, %v1456_v45  ;;  %4754 = vmatpush.xpose.msk.msrb.mxu3 %vm78_vm0, %v5721_v21 }
0x1525   :  { %v1586_v62 = vadd.f32 %v4947_v44, %v1585_v1  ;;  %1854 = vmatpush.msra.mxu0 %v5912_v8 }
0x1527   :  { %v1590_v36 = vsel %vm1589_vm8, %v4947_v44, %v1586_v62  ;;  %1855 = vmatpush.msra.mxu0 %v5920_v55 }
0x1528   :  { %v1595_v60 = vsel %vm1592_vm10, %v1594_v5, %v1590_v36  ;;  %vm1787_vm10 = vcmask 261126  }
0x1529   :  { %v5924_v61 = vmul.f32 %v5869_v11, %v1595_v60  ;;  %1856 = vmatpush.msra.mxu0 %v5929_v27  ;;  %v1360_v11 = vpop.f32.mrf.mxu0 }
0x152a   :  { %v1716_v44 = vpop.permute.xlu0 %1715  ;;  %v1361_v6 = vadd.f32 %v1360_v11, %v5595_v29 }
0x152b   :  { %6826 = vst [vmem:[#allocation10_spill] sm:$0xff] %v5924_v61  ;;  %4747 = vmatmul.msk.f32.vlgmr.msra.gmra.mxu2 %vm78_vm0, %v1716_v44  ;;  %1857 = vmatpush.msra.mxu0 %v5936_v56 }
0x152c   :  { %4745 = vmatmul.msk.f32.vlgmr.msrb.gmra.mxu0 %vm414_vm1, %v5924_v61  ;;  %4758 = vmatpush.xpose.msk.msra.mxu2 %vm78_vm0, %v5763_v33 }
0x152d   :  { %1994 = vmatpush.msrb.mxu0 %v5836_v0 }
0x159e   :  { %v1477_v35 = vpop.f32.mrf.mxu3 }
0x15a1   :  { %v1500_v13 = vpop.f32.mrf.mxu0 }
0x15a2   :  { %v1645_v15 = vrot.slane %v1500_v13, 7 }
0x15a4   :  { %v1646_v49 = vsel %vm610_vm2, %v1645_v15, %v1477_v35 }
0x15a5   :  { %v1648_v3 = vmul.f32 %v1646_v49, %v1361_v6 }
0x15a6   :  { %v1617_v1 = vpop.f32.mrf.mxu3 }
0x15a7   :  { %v1649_v42 = vsel %vm194_vm5, %v1648_v3, 0.0 }
0x15a8   :  { %1650 = vadd.xlane.f32.xlu1 %v1649_v42 }
0x15a9   :  { %v1640_v10 = vpop.f32.mrf.mxu0 }
0x15aa   :  { %v1654_v45 = vrot.slane %v1640_v10, 7 }
0x15ac   :  { %v1655_v19 = vsel %vm610_vm2, %v1654_v45, %v1617_v1 }
0x15ad   :  { %v1657_v62 = vmul.f32 %v1655_v19, %v1361_v6 }
0x15af   :  { %v1658_v5 = vsel %vm194_vm5, %v1657_v62, 0.0 }
0x15b0   :  { %1659 = vadd.xlane.f32.xlu2 %v1658_v5 }
0x161b   :  { %v1651_v36 = vpop.xlane.xlu1 %1650 }
0x1623   :  { %v1660_v60 = vpop.xlane.xlu2 %1659 }
0x1624   :  { %v1661_v44 = vmax.f32 %v1651_v36, %v1660_v60 }
0x1626   :  { %v1662_v13 = vsub.f32 %v1651_v36, %v1661_v44  ;;  %v1665_v11 = vsub.f32 %v1660_v60, %v1661_v44 }
0x1628   :  { %v1663_v61 = vmul.f32 1.442695, %v1662_v13  ;;  %v1666_v35 = vmul.f32 1.442695, %v1665_v11 }
0x162a   :  { %4948 = vpow2.f32 %v1663_v61 }
0x162b   :  { %4950 = vpow2.f32 %v1666_v35 }
0x1630   :  { %v4949_v15 = vpop.eup %4948 }
0x1631   :  { %v4951_v3 = vpop.eup %4950  ;;  %v1668_v6 = vmul.f32 %v4949_v15, %v1646_v49 }
0x1632   :  { %v1671_v42 = vadd.f32 %v4951_v3, %v4949_v15  ;;  %v1669_v62 = vmul.f32 %v4951_v3, %v1655_v19 }
0x1634   :  { %4952 = vrcp.f32 %v1671_v42  ;;  %v1683_v1 = vand.u32 2147483648, %v1671_v42  ;;  %v1681_v63 = vand.u32 2147483647, %v1671_v42  ;;  %vm1677_vm14 = vweird.f32 %v1671_v42 }
0x1635   :  { %v1670_v60 = vadd.f32 %v1669_v62, %v1668_v6 }
0x1636   :  { %v1684_v36 = vor.u32 1.1754944e-38, %v1683_v1  ;;  %vm1682_vm3 = vcmp.eq.f32.partialorder %v1681_v63, 8.507059e+37 }
0x163a   :  { %v4953_v10 = vpop.eup %4952 }
0x163b   :  { %v1673_v16 = vmul.f32 %v4953_v10, %v1671_v42  ;;  %vm1678_vm12 = vweird.f32 %v4953_v10 }
0x163c   :  { %vm1679_vm15 = vmor %vm1677_vm14, %vm1678_vm12 }
0x163d   :  { %v1674_v45 = vsub.f32 1.0, %v1673_v16  ;;  %v1736_v16 = vpop.f32.mrf.mxu2 }
0x163e   :  { %v1740_v11 = vrot.slane %v1736_v16, 2 }
0x163f   :  { %v1675_v5 = vmul.f32 %v4953_v10, %v1674_v45 }
0x1641   :  { %v1676_v30 = vadd.f32 %v4953_v10, %v1675_v5 }
0x1643   :  { %v1680_v61 = vsel %vm1679_vm15, %v4953_v10, %v1676_v30 }
0x1644   :  { %v1685_v44 = vsel %vm1682_vm3, %v1684_v36, %v1680_v61 }
0x1645   :  { %v1686_v13 = vmul.f32 %v1685_v44, %v1670_v60 }
0x1647   :  { %4746 = vmatmul.msk.f32.vlgmr.msra.gmra.mxu1 %vm78_vm0, %v1686_v13  ;;  %4280 = vst [vmem:[#allocation1 + $0x2] ss:$4 sm:$0xff] %v1686_v13  ;;  %v1764_v13 = vrot.slane %v5728_v40, 6 }
0x1648   :  { %2017 = vmatpush.msra.mxu1 %v5721_v21 }
0x16c4   :  { %v1707_v49 = vpop.f32.mrf.mxu1 }
0x16c5   :  { %v1711_v19 = vrot.slane %v1707_v49, 2 }
0x16c7   :  { %v1713_v35 = vadd.f32 %v1711_v19, %v5358_v17 }
0x16c9   :  { %v1742_v15 = vadd.f32 %v1740_v11, %v1713_v35 }
0x16cb   :  { %4954 = vtanh.f32 %v1742_v15  ;;  %v4748_v30 = vmul.f32 -1.442695, %v1742_v15 }
0x16cd   :  { %4956 = vpow2.f32 %v4748_v30 }
0x16d1   :  { %v4955_v3 = vpop.eup %4954 }
0x16d2   :  { %1768 = vrot.lane.b32.xlu1 %v4955_v3, %s5234_s29 }
0x16d3   :  { %v4957_v63 = vpop.eup %4956 }
0x16d4   :  { %v1746_v42 = vadd.f32 1.0, %v4957_v63 }
0x16d6   :  { %4958 = vrcp.f32 %v1746_v42  ;;  %v1758_v62 = vand.u32 2147483648, %v1746_v42  ;;  %vm1752_vm6 = vweird.f32 %v1746_v42  ;;  %v1756_v5 = vand.u32 2147483647, %v1746_v42 }
0x16d8   :  { %v1759_v36 = vor.u32 1.1754944e-38, %v1758_v62  ;;  %vm1757_vm8 = vcmp.eq.f32.partialorder %v1756_v5, 8.507059e+37 }
0x16dc   :  { %v4959_v10 = vpop.eup %4958 }
0x16dd   :  { %v1748_v45 = vmul.f32 %v4959_v10, %v1746_v42  ;;  %vm1753_vm4 = vweird.f32 %v4959_v10 }
0x16de   :  { %vm1754_vm7 = vmor %vm1752_vm6, %vm1753_vm4 }
0x16df   :  { %v1749_v6 = vsub.f32 1.0, %v1748_v45 }
0x16e1   :  { %v1750_v21 = vmul.f32 %v4959_v10, %v1749_v6 }
0x16e3   :  { %v1751_v1 = vadd.f32 %v4959_v10, %v1750_v21 }
0x16e5   :  { %v1755_v17 = vsel %vm1754_vm7, %v4959_v10, %v1751_v1 }
0x16e6   :  { %v1760_v61 = vsel %vm1757_vm8, %v1759_v36, %v1755_v17 }
0x16e7   :  { %v1766_v16 = vmul.f32 %v1764_v13, %v1760_v61 }
0x1744   :  { %v1769_v60 = vpop.permute.xlu1 %1768 }
0x1745   :  { %v1771_v44 = vmul.f32 %v1769_v60, %v1760_v61 }
0x1747   :  { %1773 = vrot.lane.b32.xlu2 %v1771_v44, %s5235_s30 }
0x17a1   :  { %v1774_v49 = vpop.permute.xlu2 %1773 }
0x17a2   :  { %v5955_v19 = vadd.f32 %v1774_v49, %v1766_v16 }
0x17a4   :  { %4960 = vtanh.f32 %v5955_v19 }
0x17aa   :  { %v4961_v11 = vpop.eup %4960 }
0x17ab   :  { %1779 = vrot.lane.b32.xlu0 %v4961_v11, %s5234_s29 }
0x181d   :  { %v1780_v35 = vpop.permute.xlu0 %1779 }
0x181e   :  { %v5959_v15 = vmul.f32 %v1780_v35, %v1760_v61 }
0x1820   :  { %1784 = vrot.lane.b32.xlu1 %v5959_v15, %s5235_s30 }
0x1892   :  { %v1785_v3 = vpop.permute.xlu1 %1784 }
0x1893   :  { %v1788_v30 = vsel %vm1787_vm10, %v1785_v3, 0.0 }
0x1894   :  { %1789 = vadd.xlane.f32.xlu0 %v1788_v30 }
0x1907   :  { %v1790_v40 = vpop.xlane.xlu0 %1789 }
0x1908   :  { %v1791_v63 = vmul.f32 %v1790_v40, %v5375_v52 }
0x190a   :  { %v1792_v42 = vsub.f32 %v5959_v15, %v1791_v63 }
0x190c   :  { %v1793_v10 = vmul.f32 %v1792_v42, %v1792_v42 }
0x190e   :  { %1795 = vrot.lane.b32.xlu2 %v1793_v10, %s5235_s30 }
0x1968   :  { %v1796_v45 = vpop.permute.xlu2 %1795 }
0x1969   :  { %v1798_v6 = vsel %vm1787_vm10, %v1796_v45, 0.0 }
0x196a   :  { %1799 = vadd.xlane.f32.xlu1 %v1798_v6 }
0x19dd   :  { %v1800_v21 = vpop.xlane.xlu1 %1799 }
0x19de   :  { %v1801_v1 = vmul.f32 %v1800_v21, %v5375_v52 }
0x19e0   :  { %v1802_v62 = vadd.f32 1e-05, %v1801_v1 }
0x19e2   :  { %4962 = vrsqrt.f32 %v1802_v62  ;;  %vm1809_vm14 = vweird.f32 %v1802_v62 }
0x19e8   :  { %v4963_v5 = vpop.eup %4962 }
0x19e9   :  { %v1804_v17 = vmul.f32 %v4963_v5, %v1802_v62  ;;  %vm1810_vm12 = vweird.f32 %v4963_v5 }
0x19ea   :  { %vm1811_vm15 = vmor %vm1809_vm14, %vm1810_vm12 }
0x19eb   :  { %v1805_v36 = vmul.f32 %v4963_v5, %v1804_v17 }
0x19ed   :  { %v1806_v60 = vmul.f32 0.5, %v1805_v36 }
0x19ef   :  { %v1807_v61 = vsub.f32 1.5, %v1806_v60 }
0x19f1   :  { %v1808_v44 = vmul.f32 %v4963_v5, %v1807_v61 }
0x19f3   :  { %v1812_v13 = vsel %vm1811_vm15, %v4963_v5, %v1808_v44 }
0x19f4   :  { %v1813_v16 = vmul.f32 %v1812_v13, %v1792_v42 }
0x19f6   :  { %v1814_v49 = vmul.f32 %v1813_v16, %v5457_v26 }
0x19f8   :  { %v5971_v11 = vadd.f32 %v1814_v49, %v5459_v32 }
0x19fa   :  { %v1817_v35 = vrot.slane %v5971_v11, 6 }
0x19fc   :  { %1818 = vrot.lane.b32.xlu2 %v1817_v35, %s5235_s30 }
0x1a56   :  { %v1819_v3 = vpop.permute.xlu2 %1818 }
0x1a57   :  { %4749 = vmatmul.msk.f32.vlgmr.msra.gmra.mxu3 %vm78_vm0, %v1819_v3  ;;  %4750 = vmatmul.msk.f32.vlgmr.msra.gmra.mxu0 %vm78_vm0, %v1819_v3 }
0x1a58   :  { %4751 = vmatmul.msk.f32.vlgmr.msrb.gmra.mxu1 %vm78_vm0, %v1819_v3  ;;  %4760 = vmatpush.xpose.msk.msra.mxu3 %vm78_vm0, %v5756_v12 }
0x1a59   :  { %2157 = vmatpush.msrb.mxu1 %v5756_v12  ;;  %2134 = vmatpush.msra.mxu0 %v5763_v33 }
0x1ad4   :  { %v1859_v42 = vpop.f32.mrf.mxu0 }
0x1ad5   :  { %v1860_v10 = vadd.f32 %v1859_v42, %v5519_v53 }
0x1ad7   :  { %v2023_v12 = vrot.slane %v1860_v10, 1 }
0x1ada   :  { %v1839_v30 = vpop.f32.mrf.mxu3 }
0x1adb   :  { %v1840_v40 = vadd.f32 %v1839_v30, %v5459_v32 }
0x1add   :  { %v1883_v63 = vrot.slane %v1840_v40, 1  ;;  %4753 = vmatmul.msk.f32.vlgmr.msrb.gmra.mxu2 %vm78_vm0, %v1840_v40 }
0x1ade   :  { %2221 = vmatpush.msrb.mxu2 %v5772_v38 }
0x1adf   :  { %4755 = vmatmul.msk.f32.vlgmr.msrb.gmra.mxu3 %vm78_vm0, %v1883_v63 }
0x1ae0   :  { %2247 = vmatpush.msrb.mxu3 %v5779_v37  ;;  %2222 = vmatpush.msrb.mxu2 %v5785_v39 }
0x1ae2   :  { %2248 = vmatpush.msrb.mxu3 %v5792_v50  ;;  %2223 = vmatpush.msrb.mxu2 %v5798_v54 }
0x1ae4   :  { %2249 = vmatpush.msrb.mxu3 %v5804_v59  ;;  %2224 = vmatpush.msrb.mxu2 %v5810_v23 }
0x1ae5   :  { %4759 = vmatmul.msk.f32.vlgmr.msra.gmra.mxu2 %vm78_vm0, %v1860_v10 }
0x1ae6   :  { %2250 = vmatpush.msrb.mxu3 %v5817_v22  ;;  %2385 = vmatpush.msra.mxu2 %v5823_v41 }
0x1ae7   :  { %4761 = vmatmul.msk.f32.vlgmr.msra.gmra.mxu3 %vm78_vm0, %v2023_v12  ;;  %v6817_v12 = vrot.slane %v5959_v15, 6 }
0x1ae8   :  { %2386 = vmatpush.msra.mxu2 %v5830_v2  ;;  %4770 = vmatpush.xpose.msk.msra.mxu3 %vm78_vm0, %v5836_v0 }
0x1aea   :  { %2387 = vmatpush.msra.mxu2 %v5843_v24 }
0x1aec   :  { %2388 = vmatpush.msra.mxu2 %v5849_v7 }
0x1b60   :  { %v1903_v38 = vpop.f32.mrf.mxu2 }
0x1b61   :  { %v1904_v37 = vadd.f32 %v1903_v38, %v5548_v18 }
0x1b62   :  { %v1925_v39 = vpop.f32.mrf.mxu3 }
0x1b63   :  { %v1926_v50 = vadd.f32 %v1925_v39, %v5545_v58  ;;  %v1928_v54 = vsel %vm365_vm11, %v1904_v37, -inf }
0x1b64   :  { %1929 = vmax.xlane.f32.xlu0 %v1928_v54 }
0x1b65   :  { %v1931_v59 = vsel %vm365_vm11, %v1926_v50, -inf }
0x1b66   :  { %1932 = vmax.xlane.f32.xlu2 %v1931_v59 }
0x1b68   :  { %v2043_v23 = vpop.f32.mrf.mxu2 }
0x1b69   :  { %v2044_v22 = vadd.f32 %v2043_v23, %v5510_v46 }
0x1b6a   :  { %v2065_v41 = vpop.f32.mrf.mxu3 }
0x1b6b   :  { %v2066_v2 = vadd.f32 %v2065_v41, %v5513_v47  ;;  %v2068_v24 = vsel %vm365_vm11, %v2044_v22, -inf }
0x1b6c   :  { %2069 = vmax.xlane.f32.xlu0 %v2068_v24 }
0x1b6d   :  { %v2071_v7 = vsel %vm365_vm11, %v2066_v2, -inf }
0x1b6e   :  { %2072 = vmax.xlane.f32.xlu1 %v2071_v7 }
0x1bd7   :  { %v1930_v45 = vpop.xlane.xlu0 %1929 }
0x1bd8   :  { %v1934_v6 = vsub.f32 %v1904_v37, %v1930_v45 }
0x1bd9   :  { %v1933_v21 = vpop.xlane.xlu2 %1932 }
0x1bda   :  { %v1936_v1 = vmul.f32 1.442695, %v1934_v6  ;;  %v1935_v62 = vsub.f32 %v1926_v50, %v1933_v21 }
0x1bdc   :  { %4964 = vpow2.f32 %v1936_v1  ;;  %v1938_v5 = vmul.f32 1.442695, %v1935_v62 }
0x1bde   :  { %4966 = vpow2.f32 %v1938_v5 }
0x1bdf   :  { %v2070_v17 = vpop.xlane.xlu0 %2069 }
0x1be0   :  { %v2074_v36 = vsub.f32 %v2044_v22, %v2070_v17 }
0x1be1   :  { %v2073_v60 = vpop.xlane.xlu1 %2072 }
0x1be2   :  { %v4965_v61 = vpop.eup %4964  ;;  %v2076_v44 = vmul.f32 1.442695, %v2074_v36  ;;  %v2075_v13 = vsub.f32 %v2066_v2, %v2073_v60 }
0x1be3   :  { %v1940_v16 = vsel %vm365_vm11, %v4965_v61, 0.0 }
0x1be4   :  { %v4967_v49 = vpop.eup %4966  ;;  %4968 = vpow2.f32 %v2076_v44  ;;  %v2078_v3 = vmul.f32 1.442695, %v2075_v13  ;;  %1941 = vadd.xlane.f32.xlu0 %v1940_v16 }
0x1be5   :  { %v1943_v30 = vsel %vm365_vm11, %v4967_v49, 0.0 }
0x1be6   :  { %4970 = vpow2.f32 %v2078_v3  ;;  %1944 = vadd.xlane.f32.xlu1 %v1943_v30 }
0x1bea   :  { %v6014_v40 = vpop.eup %4968 }
0x1beb   :  { %v2080_v10 = vsel %vm365_vm11, %v6014_v40, 0.0 }
0x1bec   :  { %v6016_v63 = vpop.eup %4970 }
0x1bed   :  { %v2083_v42 = vsel %vm365_vm11, %v6016_v63, 0.0 }
0x1bee   :  { %2084 = vadd.xlane.f32.xlu2 %v2083_v42  ;;  %2081 = vadd.xlane.f32.xlu1 %v2080_v10 }
0x1c07   :  { %2231 = vrot.lane.b32.xlu1 %v6817_v12, %s5235_s30 }
0x1c57   :  { %v1942_v38 = vpop.xlane.xlu0 %1941 }
0x1c58   :  { %4972 = vrcp.f32 %v1942_v38  ;;  %v1955_v2 = vand.u32 2147483647, %v1942_v38  ;;  %v1957_v24 = vand.u32 2147483648, %v1942_v38  ;;  %vm1951_vm4 = vweird.f32 %v1942_v38 }
0x1c59   :  { %v1945_v37 = vpop.xlane.xlu1 %1944 }
0x1c5a   :  { %4974 = vrcp.f32 %v1945_v37  ;;  %v1972_v6 = vand.u32 2147483648, %v1945_v37  ;;  %v1970_v62 = vand.u32 2147483647, %v1945_v37  ;;  %v1958_v5 = vor.u32 1.1754944e-38, %v1957_v24 }
0x1c5b   :  { %vm1956_vm8 = vcmp.eq.f32.partialorder %v1955_v2, 8.507059e+37  ;;  %vm1966_vm12 = vweird.f32 %v1945_v37 }
0x1c5c   :  { %v1973_v13 = vor.u32 1.1754944e-38, %v1972_v6  ;;  %vm1971_vm15 = vcmp.eq.f32.partialorder %v1970_v62, 8.507059e+37 }
0x1c5e   :  { %v4973_v39 = vpop.eup %4972 }
0x1c5f   :  { %v1947_v50 = vmul.f32 %v4973_v39, %v1942_v38  ;;  %vm1952_vm3 = vweird.f32 %v4973_v39 }
0x1c60   :  { %v4975_v54 = vpop.eup %4974  ;;  %vm1953_vm7 = vmor %vm1951_vm4, %vm1952_vm3 }
0x1c61   :  { %v1948_v59 = vsub.f32 1.0, %v1947_v50  ;;  %v1962_v23 = vmul.f32 %v4975_v54, %v1945_v37  ;;  %v2082_v22 = vpop.xlane.xlu1 %2081  ;;  %v2085_v41 = vpop.xlane.xlu2 %2084  ;;  %vm1967_vm6 = vweird.f32 %v4975_v54 }
0x1c62   :  { %4976 = vrcp.f32 %v2082_v22  ;;  %vm1968_vm14 = vmor %vm1966_vm12, %vm1967_vm6  ;;  %v2095_v2 = vand.u32 2147483647, %v2082_v22  ;;  %v2112_v24 = vand.u32 2147483648, %v2085_v41  ;;  %vm2091_vm6 = vweird.f32 %v2082_v22 }
0x1c63   :  { %v1949_v7 = vmul.f32 %v4973_v39, %v1948_v59  ;;  %v1963_v45 = vsub.f32 1.0, %v1962_v23  ;;  %4978 = vrcp.f32 %v2085_v41  ;;  %v2097_v23 = vand.u32 2147483648, %v2082_v22 }
0x1c64   :  { %vm2096_vm12 = vcmp.eq.f32.partialorder %v2095_v2, 8.507059e+37  ;;  %v2113_v6 = vor.u32 1.1754944e-38, %v2112_v24 }
0x1c65   :  { %v1950_v21 = vadd.f32 %v4973_v39, %v1949_v7  ;;  %v1964_v1 = vmul.f32 %v4975_v54, %v1963_v45  ;;  %v2110_v7 = vand.u32 2147483647, %v2085_v41 }
0x1c67   :  { %v1954_v17 = vsel %vm1953_vm7, %v4973_v39, %v1950_v21  ;;  %v1965_v36 = vadd.f32 %v4975_v54, %v1964_v1 }
0x1c68   :  { %v4977_v60 = vpop.eup %4976  ;;  %v1959_v44 = vsel %vm1956_vm8, %v1958_v5, %v1954_v17  ;;  %vm2106_vm8 = vweird.f32 %v2085_v41 }
0x1c69   :  { %v4979_v16 = vpop.eup %4978  ;;  %v1969_v3 = vsel %vm1968_vm14, %v4975_v54, %v1965_v36  ;;  %v2087_v30 = vmul.f32 %v4977_v60, %v2082_v22  ;;  %v1960_v42 = vmul.f32 %v4965_v61, %v1959_v44  ;;  %vm2092_vm3 = vweird.f32 %v4977_v60 }
0x1c6a   :  { %v1974_v10 = vsel %vm1971_vm15, %v1973_v13, %v1969_v3  ;;  %v2102_v38 = vmul.f32 %v4979_v16, %v2085_v41  ;;  %vm2107_vm4 = vweird.f32 %v4979_v16  ;;  %vm2093_vm7 = vmor %vm2091_vm6, %vm2092_vm3  ;;  %vm2111_vm15 = vcmp.eq.f32.partialorder %v2110_v7, 8.507059e+37 }
0x1c6b   :  { %v2088_v50 = vsub.f32 1.0, %v2087_v30  ;;  %4756 = vmatmul.msk.f32.vlgmr.msrb.gmra.mxu0 %vm414_vm1, %v1960_v42  ;;  %v1975_v59 = vmul.f32 %v4967_v49, %v1974_v10  ;;  %v2098_v49 = vor.u32 1.1754944e-38, %v2097_v23  ;;  %vm2108_vm14 = vmor %vm2106_vm8, %vm2107_vm4 }
0x1c6c   :  { %v2103_v39 = vsub.f32 1.0, %v2102_v38  ;;  %2345 = vmatpush.msrb.mxu0 %v5881_v20 }
0x1c6d   :  { %v2089_v37 = vmul.f32 %v4977_v60, %v2088_v50  ;;  %4757 = vmatmul.msk.f32.vlgmr.msra.gmra.mxu1 %vm414_vm1, %v1975_v59 }
0x1c6e   :  { %v2104_v54 = vmul.f32 %v4979_v16, %v2103_v39  ;;  %2365 = vmatpush.msra.mxu1 %v5912_v8  ;;  %2346 = vmatpush.msrb.mxu0 %v5887_v43 }
0x1c6f   :  { %v2090_v61 = vadd.f32 %v4977_v60, %v2089_v37 }
0x1c70   :  { %v2105_v45 = vadd.f32 %v4979_v16, %v2104_v54  ;;  %2366 = vmatpush.msra.mxu1 %v5920_v55  ;;  %2347 = vmatpush.msrb.mxu0 %v5896_v51  ;;  %v6049_v51 = vld [vmem:[%s6799_s1 + $0x18] sm:$0xff]  ;;  %v1879_v55 = vpop.f32.mrf.mxu1 }
0x1c71   :  { %v2094_v20 = vsel %vm2093_vm7, %v4977_v60, %v2090_v61 }
0x1c72   :  { %v2099_v21 = vsel %vm2096_vm12, %v2098_v49, %v2094_v20  ;;  %v2109_v1 = vsel %vm2108_vm14, %v4979_v16, %v2105_v45  ;;  %2367 = vmatpush.msra.mxu1 %v5929_v27  ;;  %2348 = vmatpush.msrb.mxu0 %v5903_v9 }
0x1c73   :  { %v2114_v43 = vsel %vm2111_vm15, %v2113_v6, %v2109_v1  ;;  %v6036_v8 = vmul.f32 %v6014_v40, %v2099_v21  ;;  %v1880_v40 = vadd.f32 %v1879_v55, %v5595_v29  ;;  %v6829_v55 = vrot.slane %v5624_v28, 2 }
0x1c74   :  { %v6039_v22 = vmul.f32 %v6016_v63, %v2114_v43  ;;  %2368 = vmatpush.msra.mxu1 %v5936_v56 }
0x1c75   :  { %6827 = vst [vmem:[#allocation11_spill] sm:$0xff] %v6036_v8  ;;  %4762 = vmatmul.msk.f32.vlgmr.msra.gmra.mxu0 %vm414_vm1, %v6036_v8 }
0x1c76   :  { %6828 = vst [vmem:[#allocation12_spill] sm:$0xff] %v6039_v22  ;;  %4763 = vmatmul.msk.f32.vlgmr.msrb.gmra.mxu1 %vm414_vm1, %v6039_v22  ;;  %4772 = vmatpush.xpose.msk.msra.mxu0 %vm78_vm0, %v6049_v51 }
0x1c77   :  { %2505 = vmatpush.msrb.mxu1 %v5836_v0 }
0x1c79   :  { %v2232_v9 = vpop.permute.xlu1 %2231 }
0x1c7a   :  { %4765 = vmatmul.msk.f32.vlgmr.msrb.gmra.mxu3 %vm78_vm0, %v2232_v9 }
0x1c7b   :  { %4776 = vmatpush.xpose.msk.msrb.mxu3 %vm78_vm0, %v5763_v33 }
0x1ce8   :  { %v1996_v63 = vpop.f32.mrf.mxu0 }
0x1cea   :  { %v2019_v27 = vpop.f32.mrf.mxu1 }
0x1ceb   :  { %v2164_v56 = vrot.slane %v2019_v27, 7  ;;  %v6830_v27 = vrot.slane %v5744_v48, 4 }
0x1ced   :  { %v2165_v41 = vsel %vm610_vm2, %v2164_v56, %v1996_v63  ;;  %v6831_v56 = vperm.slane %v5353_v14, 0 }
0x1cee   :  { %v2167_v62 = vmul.f32 %v2165_v41, %v1880_v40 }
0x1cf0   :  { %v2168_v5 = vsel %vm194_vm5, %v2167_v62, 0.0 }
0x1cf1   :  { %2169 = vadd.xlane.f32.xlu0 %v2168_v5 }
0x1cf2   :  { %v2136_v36 = vpop.f32.mrf.mxu0 }
0x1cf3   :  { %v2159_v17 = vpop.f32.mrf.mxu1 }
0x1cf4   :  { %v2173_v0 = vrot.slane %v2159_v17, 7 }
0x1cf6   :  { %v2174_v60 = vsel %vm610_vm2, %v2173_v0, %v2136_v36 }
0x1cf7   :  { %v2176_v44 = vmul.f32 %v2174_v60, %v1880_v40  ;;  %v6076_v40 = vadd.f32 %v5543_v57, %v6831_v56 }
0x1cf9   :  { %v2177_v33 = vsel %vm194_vm5, %v2176_v44, 0.0 }
0x1cfa   :  { %2178 = vadd.xlane.f32.xlu2 %v2177_v33 }
0x1cfd   :  { %v2252_v62 = vpop.f32.mrf.mxu3 }
0x1d64   :  { %v2170_v13 = vpop.xlane.xlu0 %2169 }
0x1d6d   :  { %v2179_v16 = vpop.xlane.xlu2 %2178 }
0x1d6e   :  { %v2180_v3 = vmax.f32 %v2170_v13, %v2179_v16 }
0x1d70   :  { %v2181_v30 = vsub.f32 %v2170_v13, %v2180_v3  ;;  %v2184_v42 = vsub.f32 %v2179_v16, %v2180_v3 }
0x1d72   :  { %v2182_v10 = vmul.f32 1.442695, %v2181_v30  ;;  %v2185_v38 = vmul.f32 1.442695, %v2184_v42  ;;  %v2277_v30 = vrot.slane %v5955_v19, 6 }
0x1d74   :  { %4980 = vpow2.f32 %v2182_v10 }
0x1d75   :  { %4982 = vpow2.f32 %v2185_v38 }
0x1d7a   :  { %v4981_v50 = vpop.eup %4980 }
0x1d7b   :  { %v4983_v59 = vpop.eup %4982  ;;  %v2187_v24 = vmul.f32 %v4981_v50, %v2165_v41 }
0x1d7c   :  { %v2190_v23 = vadd.f32 %v4983_v59, %v4981_v50  ;;  %v2188_v7 = vmul.f32 %v4983_v59, %v2174_v60 }
0x1d7e   :  { %4984 = vrcp.f32 %v2190_v23  ;;  %v2202_v54 = vand.u32 2147483648, %v2190_v23  ;;  %v2200_v49 = vand.u32 2147483647, %v2190_v23  ;;  %vm2196_vm4 = vweird.f32 %v2190_v23 }
0x1d7f   :  { %v2189_v6 = vadd.f32 %v2188_v7, %v2187_v24 }
0x1d80   :  { %v2203_v20 = vor.u32 1.1754944e-38, %v2202_v54  ;;  %vm2201_vm7 = vcmp.eq.f32.partialorder %v2200_v49, 8.507059e+37 }
0x1d84   :  { %v4985_v39 = vpop.eup %4984 }
0x1d85   :  { %v2192_v37 = vmul.f32 %v4985_v39, %v2190_v23  ;;  %vm2197_vm3 = vweird.f32 %v4985_v39 }
0x1d86   :  { %vm2198_vm6 = vmor %vm2196_vm4, %vm2197_vm3 }
0x1d87   :  { %v2193_v2 = vsub.f32 1.0, %v2192_v37 }
0x1d89   :  { %v2194_v61 = vmul.f32 %v4985_v39, %v2193_v2 }
0x1d8b   :  { %v2195_v45 = vadd.f32 %v4985_v39, %v2194_v61 }
0x1d8d   :  { %v2199_v21 = vsel %vm2198_vm6, %v4985_v39, %v2195_v45 }
0x1d8e   :  { %v2204_v1 = vsel %vm2201_vm7, %v2203_v20, %v2199_v21 }
0x1d8f   :  { %v2205_v43 = vmul.f32 %v2204_v1, %v2189_v6 }
0x1d91   :  { %4764 = vmatmul.msk.f32.vlgmr.msrb.gmra.mxu2 %vm78_vm0, %v2205_v43  ;;  %4282 = vst [vmem:[#allocation1 + $0x3] ss:$4 sm:$0xff] %v2205_v43 }
0x1d92   :  { %2528 = vmatpush.msrb.mxu2 %v6049_v51 }
0x1d98   :  { %v6064_v9 = vld.sshfl [vmem:[#allocation1] sm:$0xff pattern:$0x73625140] }
0x1d99   :  { %4326 = vst [vmem:[#allocation1 + $0x3] ss:$4 sm:$0xff] %v1817_v35 }
0x1d9a   :  { %4320 = vst [vmem:[#allocation1] ss:$4 sm:$0xff] %v5463_v34 }
0x1d9b   :  { %4322 = vst [vmem:[#allocation1 + $0x1] ss:$4 sm:$0xff] %v6829_v55 }
0x1d9c   :  { %4324 = vst [vmem:[#allocation1 + $0x2] ss:$4 sm:$0xff] %v6830_v27 }
0x1e14   :  { %v2226_v63 = vpop.f32.mrf.mxu2 }
0x1e15   :  { %v2229_v41 = vadd.f32 %v2226_v63, %v6076_v40 }
0x1e17   :  { %v2255_v5 = vadd.f32 %v2252_v62, %v2229_v41 }
0x1e19   :  { %4986 = vtanh.f32 %v2255_v5  ;;  %v4766_v34 = vmul.f32 -1.442695, %v2255_v5 }
0x1e1b   :  { %4988 = vpow2.f32 %v4766_v34  ;;  %v6119_v34 = vld [vmem:[%s6799_s1] sm:$0xff] }
0x1e1f   :  { %v4987_v11 = vpop.eup %4986 }
0x1e20   :  { %2281 = vrot.lane.b32.xlu0 %v4987_v11, %s5234_s29  ;;  %v6111_v11 = vld [vmem:[%s6799_s1 + $0x10] sm:$0xff] }
0x1e21   :  { %v4989_v28 = vpop.eup %4988 }
0x1e22   :  { %v2259_v35 = vadd.f32 1.0, %v4989_v28 }
0x1e24   :  { %4990 = vrcp.f32 %v2259_v35  ;;  %v2271_v36 = vand.u32 2147483648, %v2259_v35  ;;  %vm2265_vm12 = vweird.f32 %v2259_v35  ;;  %v2269_v60 = vand.u32 2147483647, %v2259_v35 }
0x1e26   :  { %v2272_v33 = vor.u32 1.1754944e-38, %v2271_v36  ;;  %vm2270_vm15 = vcmp.eq.f32.partialorder %v2269_v60, 8.507059e+37  ;;  %v6147_v60 = vld [vmem:[%s6801_s3 + $0x50] sm:$0xff] }
0x1e2a   :  { %v4991_v48 = vpop.eup %4990 }
0x1e2b   :  { %v2261_v17 = vmul.f32 %v4991_v48, %v2259_v35  ;;  %vm2266_vm8 = vweird.f32 %v4991_v48 }
0x1e2c   :  { %vm2267_vm14 = vmor %vm2265_vm12, %vm2266_vm8 }
0x1e2d   :  { %v2262_v14 = vsub.f32 1.0, %v2261_v17 }
0x1e2f   :  { %v2263_v0 = vmul.f32 %v4991_v48, %v2262_v14  ;;  %v6127_v14 = vld [vmem:[%s6801_s3 + $0x38] sm:$0xff] }
0x1e31   :  { %v2264_v57 = vadd.f32 %v4991_v48, %v2263_v0  ;;  %v6134_v0 = vld [vmem:[%s6801_s3 + $0x58] sm:$0xff] }
0x1e33   :  { %v2268_v44 = vsel %vm2267_vm14, %v4991_v48, %v2264_v57  ;;  %v6140_v57 = vld [vmem:[%s6801_s3 + $0x30] sm:$0xff] }
0x1e34   :  { %v2273_v16 = vsel %vm2270_vm15, %v2272_v33, %v2268_v44  ;;  %v6153_v44 = vld [vmem:[%s6801_s3 + $0x28] sm:$0xff] }
0x1e35   :  { %v2279_v42 = vmul.f32 %v2277_v30, %v2273_v16  ;;  %v6159_v33 = vld [vmem:[%s6801_s3 + $0x48] sm:$0xff]  ;;  %v6178_v30 = vld [vmem:[%s6802_s4 + $0x58] sm:$0xff] }
0x1e92   :  { %v2282_v13 = vpop.permute.xlu0 %2281 }
0x1e93   :  { %v2284_v3 = vmul.f32 %v2282_v13, %v2273_v16  ;;  %v6165_v13 = vld [vmem:[%s6801_s3 + $0x20] sm:$0xff] }
0x1e95   :  { %2286 = vrot.lane.b32.xlu2 %v2284_v3, %s5235_s30  ;;  %v6172_v3 = vld [vmem:[%s6801_s3 + $0x40] sm:$0xff] }
0x1eef   :  { %v2287_v10 = vpop.permute.xlu2 %2286 }
0x1ef0   :  { %v6082_v38 = vadd.f32 %v2287_v10, %v2279_v42  ;;  %v6185_v42 = vld [vmem:[%s6802_s4 + $0x50] sm:$0xff]  ;;  %v6191_v10 = vld [vmem:[%s6799_s1 + $0x8] sm:$0xff] }
0x1ef2   :  { %4992 = vtanh.f32 %v6082_v38 }
0x1ef8   :  { %v4993_v50 = vpop.eup %4992 }
0x1ef9   :  { %2292 = vrot.lane.b32.xlu0 %v4993_v50, %s5234_s29  ;;  %v6198_v50 = vld [vmem:[%s6802_s4 + $0x48] sm:$0xff] }
0x1f6b   :  { %v2293_v59 = vpop.permute.xlu0 %2292 }
0x1f6c   :  { %v6086_v23 = vmul.f32 %v2293_v59, %v2273_v16  ;;  %v6204_v59 = vld [vmem:[%s6802_s4 + $0x40] sm:$0xff] }
0x1f6e   :  { %2297 = vrot.lane.b32.xlu1 %v6086_v23, %s5235_s30 }
0x1fe0   :  { %v6090_v39 = vpop.permute.xlu1 %2297 }
0x1fe1   :  { %v2300_v19 = vsel %vm194_vm5, %v6090_v39, 0.0 }
0x1fe2   :  { %2301 = vadd.xlane.f32.xlu2 %v2300_v19 }
0x2055   :  { %v2302_v37 = vpop.xlane.xlu2 %2301 }
0x2056   :  { %v2303_v2 = vmul.f32 %v2302_v37, %v5375_v52 }
0x2058   :  { %v2304_v24 = vsub.f32 %v6086_v23, %v2303_v2 }
0x205a   :  { %v2305_v54 = vmul.f32 %v2304_v24, %v2304_v24 }
0x205c   :  { %2307 = vrot.lane.b32.xlu0 %v2305_v54, %s5235_s30 }
0x20ce   :  { %v2308_v7 = vpop.permute.xlu0 %2307 }
0x20cf   :  { %v2310_v61 = vsel %vm194_vm5, %v2308_v7, 0.0 }
0x20d0   :  { %2311 = vadd.xlane.f32.xlu1 %v2310_v61 }
0x2143   :  { %v2312_v49 = vpop.xlane.xlu1 %2311 }
0x2144   :  { %v2313_v45 = vmul.f32 %v2312_v49, %v5375_v52 }
0x2146   :  { %v2314_v20 = vadd.f32 1e-05, %v2313_v45 }
0x2148   :  { %4994 = vrsqrt.f32 %v2314_v20  ;;  %vm2321_vm4 = vweird.f32 %v2314_v20 }
0x214e   :  { %v4995_v6 = vpop.eup %4994 }
0x214f   :  { %v2316_v21 = vmul.f32 %v4995_v6, %v2314_v20  ;;  %vm2322_vm3 = vweird.f32 %v4995_v6 }
0x2150   :  { %vm2323_vm6 = vmor %vm2321_vm4, %vm2322_vm3 }
0x2151   :  { %v2317_v1 = vmul.f32 %v4995_v6, %v2316_v21 }
0x2153   :  { %v2318_v43 = vmul.f32 0.5, %v2317_v1 }
0x2155   :  { %v2319_v55 = vsub.f32 1.5, %v2318_v43 }
0x2157   :  { %v2320_v27 = vmul.f32 %v4995_v6, %v2319_v55 }
0x2159   :  { %v2324_v56 = vsel %vm2323_vm6, %v4995_v6, %v2320_v27 }
0x215a   :  { %v2325_v63 = vmul.f32 %v2324_v56, %v2304_v24 }
0x215c   :  { %v2326_v41 = vmul.f32 %v2325_v63, %v5457_v26 }
0x215e   :  { %v6101_v62 = vadd.f32 %v2326_v41, %v5459_v32 }
0x2160   :  { %2329 = vrot.lane.b32.xlu0 %v6101_v62, %s5235_s30 }
0x21d2   :  { %v2330_v5 = vpop.permute.xlu0 %2329 }
0x21d3   :  { %4767 = vmatmul.msk.f32.vlgmr.msrb.gmra.mxu0 %vm78_vm0, %v2330_v5  ;;  %4768 = vmatmul.msk.f32.vlgmr.msra.gmra.mxu1 %vm78_vm0, %v2330_v5 }
0x21d4   :  { %4769 = vmatmul.msk.f32.vlgmr.msra.gmra.mxu2 %vm78_vm0, %v2330_v5  ;;  %4778 = vmatpush.xpose.msk.msrb.mxu0 %vm78_vm0, %v6111_v11 }
0x21d5   :  { %2668 = vmatpush.msra.mxu2 %v6111_v11  ;;  %2645 = vmatpush.msra.mxu1 %v6119_v34 }
0x2250   :  { %v2350_v28 = vpop.f32.mrf.mxu0  ;;  %v2370_v17 = vpop.f32.mrf.mxu1 }
0x2251   :  { %v2351_v35 = vadd.f32 %v2350_v28, %v5459_v32  ;;  %v2371_v36 = vadd.f32 %v2370_v17, %v5519_v53 }
0x2253   :  { %v2394_v48 = vrot.slane %v2351_v35, 1  ;;  %4771 = vmatmul.msk.f32.vlgmr.msra.gmra.mxu3 %vm78_vm0, %v2351_v35  ;;  %v2534_v16 = vrot.slane %v2371_v36, 1 }
0x2254   :  { %2732 = vmatpush.msra.mxu3 %v6127_v14 }
0x2255   :  { %4773 = vmatmul.msk.f32.vlgmr.msra.gmra.mxu0 %vm78_vm0, %v2394_v48 }
0x2256   :  { %2758 = vmatpush.msra.mxu0 %v6134_v0  ;;  %2733 = vmatpush.msra.mxu3 %v6140_v57 }
0x2258   :  { %2759 = vmatpush.msra.mxu0 %v6147_v60  ;;  %2734 = vmatpush.msra.mxu3 %v6153_v44 }
0x225a   :  { %2760 = vmatpush.msra.mxu0 %v6159_v33  ;;  %2735 = vmatpush.msra.mxu3 %v6165_v13 }
0x225b   :  { %4777 = vmatmul.msk.f32.vlgmr.msrb.gmra.mxu3 %vm78_vm0, %v2371_v36 }
0x225c   :  { %2761 = vmatpush.msra.mxu0 %v6172_v3  ;;  %2900 = vmatpush.msrb.mxu3 %v6178_v30 }
0x225d   :  { %4779 = vmatmul.msk.f32.vlgmr.msrb.gmra.mxu0 %vm78_vm0, %v2534_v16 }
0x225e   :  { %2901 = vmatpush.msrb.mxu3 %v6185_v42  ;;  %4788 = vmatpush.xpose.msk.msrb.mxu0 %vm78_vm0, %v6191_v10 }
0x2260   :  { %2902 = vmatpush.msrb.mxu3 %v6198_v50 }
0x2262   :  { %2903 = vmatpush.msrb.mxu3 %v6204_v59 }
0x2265   :  { %4783 = vmatmul.msk.f32.vlgmr.msra.gmra.mxu0 %vm78_vm0, %v6090_v39 }
0x2266   :  { %4794 = vmatpush.xpose.msk.msra.mxu0 %vm78_vm0, %v6119_v34 }
0x22d2   :  { %v2436_v19 = vpop.f32.mrf.mxu0 }
0x22d3   :  { %v2437_v37 = vadd.f32 %v2436_v19, %v5545_v58 }
0x22d5   :  { %v2442_v2 = vsel %vm365_vm11, %v2437_v37, -inf }
0x22d6   :  { %v2414_v24 = vpop.f32.mrf.mxu3  ;;  %2443 = vmax.xlane.f32.xlu0 %v2442_v2 }
0x22d7   :  { %v2415_v54 = vadd.f32 %v2414_v24, %v5548_v18 }
0x22d9   :  { %v2439_v7 = vsel %vm365_vm11, %v2415_v54, -inf }
0x22da   :  { %2440 = vmax.xlane.f32.xlu2 %v2439_v7  ;;  %v2576_v61 = vpop.f32.mrf.mxu0 }
0x22db   :  { %v2577_v49 = vadd.f32 %v2576_v61, %v5513_v47 }
0x22dd   :  { %v2582_v6 = vsel %vm365_vm11, %v2577_v49, -inf }
0x22de   :  { %v2554_v45 = vpop.f32.mrf.mxu3 }
0x22df   :  { %v2555_v39 = vadd.f32 %v2554_v45, %v5510_v46 }
0x22e1   :  { %v2579_v20 = vsel %vm365_vm11, %v2555_v39, -inf }
0x22e2   :  { %2580 = vmax.xlane.f32.xlu1 %v2579_v20  ;;  %2583 = vmax.xlane.f32.xlu2 %v2582_v6 }
0x2349   :  { %v2444_v21 = vpop.xlane.xlu0 %2443 }
0x234a   :  { %v2446_v1 = vsub.f32 %v2437_v37, %v2444_v21 }
0x234c   :  { %v2449_v43 = vmul.f32 1.442695, %v2446_v1 }
0x234d   :  { %v2441_v55 = vpop.xlane.xlu2 %2440 }
0x234e   :  { %4996 = vpow2.f32 %v2449_v43  ;;  %v2445_v27 = vsub.f32 %v2415_v54, %v2441_v55 }
0x2350   :  { %v2447_v56 = vmul.f32 1.442695, %v2445_v27 }
0x2352   :  { %4998 = vpow2.f32 %v2447_v56 }
0x2354   :  { %v4997_v63 = vpop.eup %4996 }
0x2355   :  { %v2581_v41 = vpop.xlane.xlu1 %2580  ;;  %v2584_v5 = vpop.xlane.xlu2 %2583  ;;  %v2454_v28 = vsel %vm365_vm11, %v4997_v63, 0.0 }
0x2356   :  { %v2585_v35 = vsub.f32 %v2555_v39, %v2581_v41  ;;  %v2586_v48 = vsub.f32 %v2577_v49, %v2584_v5  ;;  %2455 = vadd.xlane.f32.xlu2 %v2454_v28 }
0x2358   :  { %v4999_v17 = vpop.eup %4998  ;;  %v2587_v36 = vmul.f32 1.442695, %v2585_v35  ;;  %v2589_v16 = vmul.f32 1.442695, %v2586_v48 }
0x2359   :  { %v2451_v19 = vsel %vm365_vm11, %v4999_v17, 0.0 }
0x235a   :  { %5000 = vpow2.f32 %v2587_v36  ;;  %2452 = vadd.xlane.f32.xlu1 %v2451_v19 }
0x235b   :  { %5002 = vpow2.f32 %v2589_v16 }
0x2360   :  { %v6221_v37 = vpop.eup %5000 }
0x2361   :  { %v6223_v2 = vpop.eup %5002  ;;  %v2591_v24 = vsel %vm365_vm11, %v6221_v37, 0.0 }
0x2362   :  { %v2594_v54 = vsel %vm365_vm11, %v6223_v2, 0.0  ;;  %2592 = vadd.xlane.f32.xlu2 %v2591_v24 }
0x2363   :  { %2595 = vadd.xlane.f32.xlu0 %v2594_v54 }
0x23c9   :  { %v2456_v7 = vpop.xlane.xlu2 %2455 }
0x23ca   :  { %5004 = vrcp.f32 %v2456_v7  ;;  %v2481_v6 = vand.u32 2147483647, %v2456_v7  ;;  %v2483_v21 = vand.u32 2147483648, %v2456_v7  ;;  %vm2477_vm8 = vweird.f32 %v2456_v7 }
0x23cc   :  { %vm2482_vm14 = vcmp.eq.f32.partialorder %v2481_v6, 8.507059e+37  ;;  %v2484_v5 = vor.u32 1.1754944e-38, %v2483_v21 }
0x23cd   :  { %v2453_v61 = vpop.xlane.xlu1 %2452 }
0x23ce   :  { %5006 = vrcp.f32 %v2453_v61  ;;  %v2468_v28 = vand.u32 2147483648, %v2453_v61  ;;  %v2466_v36 = vand.u32 2147483647, %v2453_v61  ;;  %vm2462_vm3 = vweird.f32 %v2453_v61 }
0x23d0   :  { %v5005_v49 = vpop.eup %5004  ;;  %vm2467_vm6 = vcmp.eq.f32.partialorder %v2466_v36, 8.507059e+37  ;;  %v6258_v36 = vld [vmem:[%s6802_s4 + $0x28] sm:$0xff] }
0x23d1   :  { %v2473_v45 = vmul.f32 %v5005_v49, %v2456_v7  ;;  %vm2478_vm7 = vweird.f32 %v5005_v49 }
0x23d2   :  { %vm2479_vm12 = vmor %vm2477_vm8, %vm2478_vm7 }
0x23d3   :  { %v2474_v39 = vsub.f32 1.0, %v2473_v45  ;;  %v2469_v45 = vor.u32 1.1754944e-38, %v2468_v28 }
0x23d4   :  { %v5007_v20 = vpop.eup %5006 }
0x23d5   :  { %v2475_v1 = vmul.f32 %v5005_v49, %v2474_v39  ;;  %v2458_v43 = vmul.f32 %v5007_v20, %v2453_v61  ;;  %v2593_v55 = vpop.xlane.xlu2 %2592  ;;  %vm2463_vm15 = vweird.f32 %v5007_v20 }
0x23d6   :  { %5008 = vrcp.f32 %v2593_v55  ;;  %v6229_v27 = vpop.xlane.xlu0 %2595  ;;  %vm2464_vm4 = vmor %vm2462_vm3, %vm2463_vm15 }
0x23d7   :  { %v2476_v56 = vadd.f32 %v5005_v49, %v2475_v1  ;;  %v2459_v41 = vsub.f32 1.0, %v2458_v43  ;;  %5010 = vrcp.f32 %v6229_v27  ;;  %v2608_v43 = vand.u32 2147483648, %v2593_v55 }
0x23d8   :  { %v2623_v28 = vand.u32 2147483648, %v6229_v27  ;;  %vm2617_vm15 = vweird.f32 %v6229_v27 }
0x23d9   :  { %v2480_v35 = vsel %vm2479_vm12, %v5005_v49, %v2476_v56  ;;  %v2460_v48 = vmul.f32 %v5007_v20, %v2459_v41  ;;  %v6237_v49 = vld [vmem:[%s6802_s4 + $0x38] sm:$0xff]  ;;  %vm2602_vm12 = vweird.f32 %v2593_v55 }
0x23da   :  { %v2485_v16 = vsel %vm2482_vm14, %v2484_v5, %v2480_v35  ;;  %v2606_v5 = vand.u32 2147483647, %v2593_v55 }
0x23db   :  { %v2461_v19 = vadd.f32 %v5007_v20, %v2460_v48  ;;  %v2486_v24 = vmul.f32 %v4997_v63, %v2485_v16  ;;  %v6252_v48 = vld [vmem:[%s6802_s4 + $0x18] sm:$0xff] }
0x23dc   :  { %v5009_v54 = vpop.eup %5008  ;;  %vm2607_vm3 = vcmp.eq.f32.partialorder %v2606_v5, 8.507059e+37 }
0x23dd   :  { %v5011_v39 = vpop.eup %5010  ;;  %v2465_v7 = vsel %vm2464_vm4, %v5007_v20, %v2461_v19  ;;  %v2598_v1 = vmul.f32 %v5009_v54, %v2593_v55  ;;  %4775 = vmatmul.msk.f32.vlgmr.msrb.gmra.mxu2 %vm414_vm1, %v2486_v24  ;;  %v6243_v20 = vld [vmem:[%s6802_s4 + $0x30] sm:$0xff]  ;;  %vm2603_vm7 = vweird.f32 %v5009_v54  ;;  %v2609_v19 = vor.u32 1.1754944e-38, %v2608_v43  ;;  %v6290_v43 = vld [vmem:[%s6802_s4] sm:$0xff] }
0x23de   :  { %v2470_v6 = vsel %vm2467_vm6, %v2469_v45, %v2465_v7  ;;  %v2613_v21 = vmul.f32 %v5011_v39, %v6229_v27  ;;  %2880 = vmatpush.msrb.mxu2 %v6237_v49  ;;  %vm2618_vm8 = vweird.f32 %v5011_v39  ;;  %vm2604_vm14 = vmor %vm2602_vm12, %vm2603_vm7  ;;  %v6265_v45 = vld [vmem:[%s6802_s4 + $0x10] sm:$0xff]  ;;  %v6271_v7 = vld [vmem:[%s6802_s4 + $0x20] sm:$0xff] }
0x23df   :  { %v2599_v63 = vsub.f32 1.0, %v2598_v1  ;;  %v2471_v61 = vmul.f32 %v4999_v17, %v2470_v6  ;;  %v2621_v17 = vand.u32 2147483647, %v6229_v27  ;;  %vm2619_vm4 = vmor %vm2617_vm15, %vm2618_vm8  ;;  %v2624_v1 = vor.u32 1.1754944e-38, %v2623_v28 }
0x23e0   :  { %v2614_v56 = vsub.f32 1.0, %v2613_v21  ;;  %2881 = vmatpush.msrb.mxu2 %v6243_v20  ;;  %v6278_v21 = vld [vmem:[%s6802_s4 + $0x8] sm:$0xff] }
0x23e1   :  { %v2600_v41 = vmul.f32 %v5009_v54, %v2599_v63  ;;  %4774 = vmatmul.msk.f32.vlgmr.msrb.gmra.mxu1 %vm414_vm1, %v2471_v61  ;;  %vm2622_vm6 = vcmp.eq.f32.partialorder %v2621_v17, 8.507059e+37 }
0x23e2   :  { %v2615_v35 = vmul.f32 %v5011_v39, %v2614_v56  ;;  %2860 = vmatpush.msrb.mxu1 %v6252_v48  ;;  %2882 = vmatpush.msrb.mxu2 %v6258_v36 }
0x23e3   :  { %v2601_v16 = vadd.f32 %v5009_v54, %v2600_v41 }
0x23e4   :  { %v2616_v24 = vadd.f32 %v5011_v39, %v2615_v35  ;;  %2861 = vmatpush.msrb.mxu1 %v6265_v45  ;;  %2883 = vmatpush.msrb.mxu2 %v6271_v7 }
0x23e5   :  { %v2605_v55 = vsel %vm2604_vm14, %v5009_v54, %v2601_v16 }
0x23e6   :  { %v2610_v27 = vsel %vm2607_vm3, %v2609_v19, %v2605_v55  ;;  %v2620_v6 = vsel %vm2619_vm4, %v5011_v39, %v2616_v24  ;;  %2862 = vmatpush.msrb.mxu1 %v6278_v21 }
0x23e7   :  { %v2625_v63 = vsel %vm2622_vm6, %v2624_v1, %v2620_v6  ;;  %v6282_v61 = vmul.f32 %v6221_v37, %v2610_v27  ;;  %v2390_v37 = vpop.f32.mrf.mxu2 }
0x23e8   :  { %v6285_v54 = vmul.f32 %v6223_v2, %v2625_v63  ;;  %2863 = vmatpush.msrb.mxu1 %v6290_v43  ;;  %v2391_v56 = vadd.f32 %v2390_v37, %v5595_v29 }
0x23e9   :  { %4780 = vmatmul.msk.f32.vlgmr.msra.gmra.mxu1 %vm414_vm1, %v6282_v61 }
0x23ea   :  { %6832 = vst [vmem:[#allocation13_spill] sm:$0xff] %v6285_v54  ;;  %4781 = vmatmul.msk.f32.vlgmr.msra.gmra.mxu2 %vm414_vm1, %v6285_v54  ;;  %4790 = vmatpush.xpose.msk.msra.mxu1 %vm78_vm0, %v6049_v51 }
0x23eb   :  { %3020 = vmatpush.msra.mxu2 %v6191_v10 }
0x245e   :  { %v2507_v41 = vpop.f32.mrf.mxu1 }
0x2460   :  { %v2530_v2 = vpop.f32.mrf.mxu2 }
0x2461   :  { %v2675_v39 = vrot.slane %v2530_v2, 7 }
0x2463   :  { %v2676_v5 = vsel %vm610_vm2, %v2675_v39, %v2507_v41 }
0x2464   :  { %v2678_v28 = vmul.f32 %v2676_v5, %v2391_v56 }
0x2466   :  { %v2679_v35 = vsel %vm194_vm5, %v2678_v28, 0.0  ;;  %v2647_v19 = vpop.f32.mrf.mxu1 }
0x2467   :  { %2680 = vadd.xlane.f32.xlu1 %v2679_v35 }
0x246d   :  { %v2670_v17 = vpop.f32.mrf.mxu2 }
0x246e   :  { %v2684_v16 = vrot.slane %v2670_v17, 7 }
0x2470   :  { %v2685_v24 = vsel %vm610_vm2, %v2684_v16, %v2647_v19 }
0x2471   :  { %v2687_v55 = vmul.f32 %v2685_v24, %v2391_v56 }
0x2473   :  { %v2688_v1 = vsel %vm194_vm5, %v2687_v55, 0.0 }
0x2474   :  { %2689 = vadd.xlane.f32.xlu0 %v2688_v1 }
0x24da   :  { %v2681_v27 = vpop.xlane.xlu1 %2680 }
0x24e7   :  { %v2690_v6 = vpop.xlane.xlu0 %2689 }
0x24e8   :  { %v2691_v63 = vmax.f32 %v2681_v27, %v2690_v6 }
0x24ea   :  { %v2692_v37 = vsub.f32 %v2681_v27, %v2691_v63  ;;  %v2695_v2 = vsub.f32 %v2690_v6, %v2691_v63 }
0x24ec   :  { %v2693_v12 = vmul.f32 1.442695, %v2692_v37  ;;  %v2696_v39 = vmul.f32 1.442695, %v2695_v2 }
0x24ee   :  { %5012 = vpow2.f32 %v2693_v12 }
0x24ef   :  { %5014 = vpow2.f32 %v2696_v39 }
0x24f4   :  { %v5013_v41 = vpop.eup %5012 }
0x24f5   :  { %v5015_v28 = vpop.eup %5014  ;;  %v2698_v56 = vmul.f32 %v5013_v41, %v2676_v5 }
0x24f6   :  { %v2701_v35 = vadd.f32 %v5015_v28, %v5013_v41  ;;  %v2699_v55 = vmul.f32 %v5015_v28, %v2685_v24 }
0x24f8   :  { %5016 = vrcp.f32 %v2701_v35  ;;  %v2713_v19 = vand.u32 2147483648, %v2701_v35  ;;  %v2711_v22 = vand.u32 2147483647, %v2701_v35  ;;  %vm2707_vm8 = vweird.f32 %v2701_v35 }
0x24f9   :  { %v2700_v6 = vadd.f32 %v2699_v55, %v2698_v56 }
0x24fa   :  { %v2714_v27 = vor.u32 1.1754944e-38, %v2713_v19  ;;  %vm2712_vm14 = vcmp.eq.f32.partialorder %v2711_v22, 8.507059e+37 }
0x24fe   :  { %v5017_v17 = vpop.eup %5016 }
0x24ff   :  { %v2703_v54 = vmul.f32 %v5017_v17, %v2701_v35  ;;  %vm2708_vm7 = vweird.f32 %v5017_v17 }
0x2500   :  { %vm2709_vm12 = vmor %vm2707_vm8, %vm2708_vm7 }
0x2501   :  { %v2704_v16 = vsub.f32 1.0, %v2703_v54  ;;  %v2763_v54 = vpop.f32.mrf.mxu0 }
0x2502   :  { %v2767_v2 = vrot.slane %v2763_v54, 6  ;;  %v2791_v54 = vrot.slane %v6082_v38, 6 }
0x2503   :  { %v2705_v1 = vmul.f32 %v5017_v17, %v2704_v16 }
0x2505   :  { %v2706_v8 = vadd.f32 %v5017_v17, %v2705_v1 }
0x2507   :  { %v2710_v12 = vsel %vm2709_vm12, %v5017_v17, %v2706_v8 }
0x2508   :  { %v2715_v63 = vsel %vm2712_vm14, %v2714_v27, %v2710_v12 }
0x2509   :  { %v2716_v37 = vmul.f32 %v2715_v63, %v2700_v6 }
0x250b   :  { %4782 = vmatmul.msk.f32.vlgmr.msra.gmra.mxu3 %vm78_vm0, %v2716_v37  ;;  %4284 = vst [vmem:[#allocation1 + $0x20] ss:$4 sm:$0xff] %v2716_v37 }
0x250c   :  { %3043 = vmatpush.msra.mxu3 %v6049_v51 }
0x258e   :  { %v2737_v5 = vpop.f32.mrf.mxu3 }
0x258f   :  { %v2741_v24 = vrot.slane %v2737_v5, 6 }
0x2591   :  { %v2743_v39 = vadd.f32 %v2741_v24, %v6076_v40 }
0x2593   :  { %v2769_v41 = vadd.f32 %v2767_v2, %v2743_v39 }
0x2595   :  { %5018 = vtanh.f32 %v2769_v41  ;;  %v4784_v8 = vmul.f32 -1.442695, %v2769_v41 }
0x2597   :  { %5020 = vpow2.f32 %v4784_v8 }
0x259b   :  { %v5019_v28 = vpop.eup %5018 }
0x259c   :  { %2795 = vrot.lane.b32.xlu2 %v5019_v28, %s5234_s29 }
0x259d   :  { %v5021_v22 = vpop.eup %5020 }
0x259e   :  { %v2773_v35 = vadd.f32 1.0, %v5021_v22 }
0x25a0   :  { %5022 = vrcp.f32 %v2773_v35  ;;  %v2785_v55 = vand.u32 2147483648, %v2773_v35  ;;  %vm2779_vm3 = vweird.f32 %v2773_v35  ;;  %v2783_v1 = vand.u32 2147483647, %v2773_v35 }
0x25a2   :  { %v2786_v6 = vor.u32 1.1754944e-38, %v2785_v55  ;;  %vm2784_vm6 = vcmp.eq.f32.partialorder %v2783_v1, 8.507059e+37 }
0x25a6   :  { %v5023_v17 = vpop.eup %5022 }
0x25a7   :  { %v2775_v16 = vmul.f32 %v5023_v17, %v2773_v35  ;;  %vm2780_vm15 = vweird.f32 %v5023_v17 }
0x25a8   :  { %vm2781_vm4 = vmor %vm2779_vm3, %vm2780_vm15 }
0x25a9   :  { %v2776_v56 = vsub.f32 1.0, %v2775_v16 }
0x25ab   :  { %v2777_v51 = vmul.f32 %v5023_v17, %v2776_v56 }
0x25ad   :  { %v2778_v19 = vadd.f32 %v5023_v17, %v2777_v51 }
0x25af   :  { %v2782_v27 = vsel %vm2781_vm4, %v5023_v17, %v2778_v19 }
0x25b0   :  { %v2787_v63 = vsel %vm2784_vm6, %v2786_v6, %v2782_v27 }
0x25b1   :  { %v2793_v5 = vmul.f32 %v2791_v54, %v2787_v63 }
0x25f6   :  { %v2796_v12 = vpop.permute.xlu2 %2795 }
0x25f7   :  { %v2798_v37 = vmul.f32 %v2796_v12, %v2787_v63 }
0x25f9   :  { %2800 = vrot.lane.b32.xlu1 %v2798_v37, %s5235_s30 }
0x266b   :  { %v2801_v24 = vpop.permute.xlu1 %2800 }
0x266c   :  { %v6311_v2 = vadd.f32 %v2801_v24, %v2793_v5 }
0x266e   :  { %5024 = vtanh.f32 %v6311_v2 }
0x2674   :  { %v5025_v39 = vpop.eup %5024 }
0x2675   :  { %2806 = vrot.lane.b32.xlu0 %v5025_v39, %s5234_s29 }
0x26e7   :  { %v2807_v41 = vpop.permute.xlu0 %2806 }
0x26e8   :  { %v6315_v28 = vmul.f32 %v2807_v41, %v2787_v63 }
0x26ea   :  { %2811 = vrot.lane.b32.xlu2 %v6315_v28, %s5235_s30 }
0x2744   :  { %v2812_v8 = vpop.permute.xlu2 %2811 }
0x2745   :  { %v2814_v22 = vsel %vm749_vm13, %v2812_v8, 0.0 }
0x2746   :  { %2815 = vadd.xlane.f32.xlu0 %v2814_v22 }
0x27b9   :  { %v2816_v38 = vpop.xlane.xlu0 %2815 }
0x27ba   :  { %v2817_v35 = vmul.f32 %v2816_v38, %v5375_v52 }
0x27bc   :  { %v2818_v17 = vsub.f32 %v6315_v28, %v2817_v35 }
0x27be   :  { %v2819_v16 = vmul.f32 %v2818_v17, %v2818_v17 }
0x27c0   :  { %2821 = vrot.lane.b32.xlu1 %v2819_v16, %s5235_s30 }
0x2832   :  { %v2822_v56 = vpop.permute.xlu1 %2821 }
0x2833   :  { %v2824_v51 = vsel %vm749_vm13, %v2822_v56, 0.0 }
0x2834   :  { %2825 = vadd.xlane.f32.xlu2 %v2824_v51 }
0x28a7   :  { %v2826_v19 = vpop.xlane.xlu2 %2825 }
0x28a8   :  { %v2827_v55 = vmul.f32 %v2826_v19, %v5375_v52 }
0x28aa   :  { %v2828_v1 = vadd.f32 1e-05, %v2827_v55 }
0x28ac   :  { %5026 = vrsqrt.f32 %v2828_v1  ;;  %vm2835_vm8 = vweird.f32 %v2828_v1 }
0x28b2   :  { %v5027_v27 = vpop.eup %5026 }
0x28b3   :  { %v2830_v6 = vmul.f32 %v5027_v27, %v2828_v1  ;;  %vm2836_vm7 = vweird.f32 %v5027_v27 }
0x28b4   :  { %vm2837_vm12 = vmor %vm2835_vm8, %vm2836_vm7 }
0x28b5   :  { %v2831_v12 = vmul.f32 %v5027_v27, %v2830_v6 }
0x28b7   :  { %v2832_v63 = vmul.f32 0.5, %v2831_v12 }
0x28b9   :  { %v2833_v37 = vsub.f32 1.5, %v2832_v63 }
0x28bb   :  { %v2834_v54 = vmul.f32 %v5027_v27, %v2833_v37 }
0x28bd   :  { %v2838_v5 = vsel %vm2837_vm12, %v5027_v27, %v2834_v54 }
0x28be   :  { %v2839_v24 = vmul.f32 %v2838_v5, %v2818_v17 }
0x28c0   :  { %v2840_v39 = vmul.f32 %v2839_v24, %v5457_v26 }
0x28c2   :  { %v6327_v41 = vadd.f32 %v2840_v39, %v5459_v32 }
0x28c4   :  { %v2843_v8 = vrot.slane %v6327_v41, 2 }
0x28c6   :  { %2844 = vrot.lane.b32.xlu1 %v2843_v8, %s5235_s30 }
0x2938   :  { %v2845_v22 = vpop.permute.xlu1 %2844 }
0x2939   :  { %4785 = vmatmul.msk.f32.vlgmr.msrb.gmra.mxu1 %vm78_vm0, %v2845_v22  ;;  %4786 = vmatmul.msk.f32.vlgmr.msrb.gmra.mxu2 %vm78_vm0, %v2845_v22 }
0x293a   :  { %4787 = vmatmul.msk.f32.vlgmr.msrb.gmra.mxu3 %vm78_vm0, %v2845_v22  ;;  %4796 = vmatpush.xpose.msk.msrb.mxu1 %vm78_vm0, %v6111_v11 }
0x293b   :  { %3183 = vmatpush.msrb.mxu3 %v6111_v11  ;;  %3160 = vmatpush.msrb.mxu2 %v6119_v34 }
0x29b6   :  { %v2865_v38 = vpop.f32.mrf.mxu1 }
0x29b7   :  { %v2866_v35 = vadd.f32 %v2865_v38, %v5459_v32 }
0x29b9   :  { %v2909_v17 = vrot.slane %v2866_v35, 1  ;;  %4789 = vmatmul.msk.f32.vlgmr.msrb.gmra.mxu0 %vm78_vm0, %v2866_v35 }
0x29ba   :  { %3247 = vmatpush.msrb.mxu0 %v6127_v14 }
0x29bb   :  { %4791 = vmatmul.msk.f32.vlgmr.msra.gmra.mxu1 %vm78_vm0, %v2909_v17 }
0x29bc   :  { %v2885_v16 = vpop.f32.mrf.mxu2  ;;  %3276 = vmatpush.msra.mxu1 %v6134_v0  ;;  %3248 = vmatpush.msrb.mxu0 %v6140_v57 }
0x29bd   :  { %v2886_v56 = vadd.f32 %v2885_v16, %v5519_v53 }
0x29be   :  { %3277 = vmatpush.msra.mxu1 %v6147_v60  ;;  %3249 = vmatpush.msrb.mxu0 %v6153_v44 }
0x29bf   :  { %v3049_v11 = vrot.slane %v2886_v56, 1 }
0x29c0   :  { %3278 = vmatpush.msra.mxu1 %v6159_v33  ;;  %3250 = vmatpush.msrb.mxu0 %v6165_v13 }
0x29c1   :  { %4795 = vmatmul.msk.f32.vlgmr.msra.gmra.mxu0 %vm78_vm0, %v2886_v56 }
0x29c2   :  { %3279 = vmatpush.msra.mxu1 %v6172_v3  ;;  %3418 = vmatpush.msra.mxu0 %v6178_v30 }
0x29c3   :  { %4797 = vmatmul.msk.f32.vlgmr.msrb.gmra.mxu1 %vm78_vm0, %v3049_v11 }
0x29c4   :  { %3419 = vmatpush.msra.mxu0 %v6185_v42  ;;  %4806 = vmatpush.xpose.msk.msrb.mxu1 %vm78_vm0, %v6191_v10 }
0x29c6   :  { %3420 = vmatpush.msra.mxu0 %v6198_v50 }
0x29c8   :  { %3421 = vmatpush.msra.mxu0 %v6204_v59 }
0x2a36   :  { %v2929_v14 = vpop.f32.mrf.mxu0 }
0x2a37   :  { %v2930_v0 = vadd.f32 %v2929_v14, %v5548_v18  ;;  %v3259_v14 = vrot.slane %v6315_v28, 2 }
0x2a38   :  { %v2951_v57 = vpop.f32.mrf.mxu1 }
0x2a39   :  { %v2952_v60 = vadd.f32 %v2951_v57, %v5545_v58  ;;  %v2954_v44 = vsel %vm365_vm11, %v2930_v0, -inf }
0x2a3a   :  { %2955 = vmax.xlane.f32.xlu0 %v2954_v44 }
0x2a3b   :  { %v2957_v33 = vsel %vm365_vm11, %v2952_v60, -inf }
0x2a3c   :  { %2958 = vmax.xlane.f32.xlu1 %v2957_v33 }
0x2a3e   :  { %v3069_v13 = vpop.f32.mrf.mxu0 }
0x2a3f   :  { %v3070_v3 = vadd.f32 %v3069_v13, %v5510_v46 }
0x2a40   :  { %v3091_v30 = vpop.f32.mrf.mxu1 }
0x2a41   :  { %v3092_v42 = vadd.f32 %v3091_v30, %v5513_v47  ;;  %v3094_v50 = vsel %vm365_vm11, %v3070_v3, -inf }
0x2a42   :  { %3095 = vmax.xlane.f32.xlu0 %v3094_v50 }
0x2a43   :  { %v3097_v59 = vsel %vm365_vm11, %v3092_v42, -inf }
0x2a44   :  { %3098 = vmax.xlane.f32.xlu2 %v3097_v59 }
0x2aad   :  { %v2956_v51 = vpop.xlane.xlu0 %2955 }
0x2aae   :  { %v2960_v19 = vsub.f32 %v2930_v0, %v2956_v51 }
0x2aaf   :  { %v2959_v55 = vpop.xlane.xlu1 %2958 }
0x2ab0   :  { %v2962_v1 = vmul.f32 1.442695, %v2960_v19  ;;  %v2961_v27 = vsub.f32 %v2952_v60, %v2959_v55 }
0x2ab2   :  { %5028 = vpow2.f32 %v2962_v1  ;;  %v2964_v6 = vmul.f32 1.442695, %v2961_v27 }
0x2ab4   :  { %5030 = vpow2.f32 %v2964_v6 }
0x2ab5   :  { %v3096_v12 = vpop.xlane.xlu0 %3095 }
0x2ab6   :  { %v3100_v63 = vsub.f32 %v3070_v3, %v3096_v12 }
0x2ab7   :  { %v3099_v37 = vpop.xlane.xlu2 %3098 }
0x2ab8   :  { %v5029_v54 = vpop.eup %5028  ;;  %v3102_v5 = vmul.f32 1.442695, %v3100_v63  ;;  %v3101_v24 = vsub.f32 %v3092_v42, %v3099_v37 }
0x2ab9   :  { %v2966_v39 = vsel %vm365_vm11, %v5029_v54, 0.0 }
0x2aba   :  { %v5031_v22 = vpop.eup %5030  ;;  %5032 = vpow2.f32 %v3102_v5  ;;  %v3104_v38 = vmul.f32 1.442695, %v3101_v24  ;;  %2967 = vadd.xlane.f32.xlu0 %v2966_v39 }
0x2abb   :  { %v2969_v35 = vsel %vm365_vm11, %v5031_v22, 0.0 }
0x2abc   :  { %5034 = vpow2.f32 %v3104_v38  ;;  %2970 = vadd.xlane.f32.xlu2 %v2969_v35 }
0x2ac0   :  { %v6370_v17 = vpop.eup %5032 }
0x2ac1   :  { %v3106_v11 = vsel %vm365_vm11, %v6370_v17, 0.0 }
0x2ac2   :  { %v6372_v16 = vpop.eup %5034 }
0x2ac3   :  { %v3109_v56 = vsel %vm365_vm11, %v6372_v16, 0.0 }
0x2ac4   :  { %3110 = vadd.xlane.f32.xlu1 %v3109_v56  ;;  %3107 = vadd.xlane.f32.xlu2 %v3106_v11 }
0x2adc   :  { %3260 = vrot.lane.b32.xlu2 %v3259_v14, %s5235_s30 }
0x2b2d   :  { %v2968_v0 = vpop.xlane.xlu0 %2967 }
0x2b2e   :  { %5036 = vrcp.f32 %v2968_v0  ;;  %v2981_v50 = vand.u32 2147483647, %v2968_v0  ;;  %v2983_v59 = vand.u32 2147483648, %v2968_v0  ;;  %vm2977_vm14 = vweird.f32 %v2968_v0 }
0x2b2f   :  { %v2971_v57 = vpop.xlane.xlu2 %2970 }
0x2b30   :  { %5038 = vrcp.f32 %v2971_v57  ;;  %v2998_v55 = vand.u32 2147483648, %v2971_v57  ;;  %v2996_v6 = vand.u32 2147483647, %v2971_v57  ;;  %v2984_v12 = vor.u32 1.1754944e-38, %v2983_v59 }
0x2b31   :  { %vm2982_vm4 = vcmp.eq.f32.partialorder %v2981_v50, 8.507059e+37  ;;  %vm2992_vm6 = vweird.f32 %v2971_v57 }
0x2b32   :  { %v2999_v39 = vor.u32 1.1754944e-38, %v2998_v55  ;;  %vm2997_vm8 = vcmp.eq.f32.partialorder %v2996_v6, 8.507059e+37 }
0x2b34   :  { %v5037_v60 = vpop.eup %5036 }
0x2b35   :  { %v2973_v44 = vmul.f32 %v5037_v60, %v2968_v0  ;;  %vm2978_vm13 = vweird.f32 %v5037_v60 }
0x2b36   :  { %v5039_v33 = vpop.eup %5038  ;;  %vm2979_vm3 = vmor %vm2977_vm14, %vm2978_vm13 }
0x2b37   :  { %v2974_v13 = vsub.f32 1.0, %v2973_v44  ;;  %v2988_v3 = vmul.f32 %v5039_v33, %v2971_v57  ;;  %v3108_v30 = vpop.xlane.xlu2 %3107  ;;  %v6382_v42 = vpop.xlane.xlu1 %3110  ;;  %vm2993_vm15 = vweird.f32 %v5039_v33 }
0x2b38   :  { %5040 = vrcp.f32 %v3108_v30  ;;  %vm2994_vm7 = vmor %vm2992_vm6, %vm2993_vm15  ;;  %v3123_v57 = vand.u32 2147483648, %v3108_v30  ;;  %v3121_v59 = vand.u32 2147483647, %v3108_v30  ;;  %vm3117_vm14 = vweird.f32 %v3108_v30 }
0x2b39   :  { %v2975_v51 = vmul.f32 %v5037_v60, %v2974_v13  ;;  %v2989_v19 = vsub.f32 1.0, %v2988_v3  ;;  %5042 = vrcp.f32 %v6382_v42 }
0x2b3b   :  { %v2976_v1 = vadd.f32 %v5037_v60, %v2975_v51  ;;  %v2990_v27 = vmul.f32 %v5039_v33, %v2989_v19  ;;  %v3136_v19 = vand.u32 2147483647, %v6382_v42 }
0x2b3d   :  { %v2980_v63 = vsel %vm2979_vm3, %v5037_v60, %v2976_v1  ;;  %v2991_v37 = vadd.f32 %v5039_v33, %v2990_v27  ;;  %vm3132_vm3 = vweird.f32 %v6382_v42 }
0x2b3e   :  { %v5041_v5 = vpop.eup %5040  ;;  %v2985_v24 = vsel %vm2982_vm4, %v2984_v12, %v2980_v63  ;;  %vm3122_vm4 = vcmp.eq.f32.partialorder %v3121_v59, 8.507059e+37 }
0x2b3f   :  { %v5043_v38 = vpop.eup %5042  ;;  %v2995_v35 = vsel %vm2994_vm7, %v5039_v33, %v2991_v37  ;;  %v3113_v56 = vmul.f32 %v5041_v5, %v3108_v30  ;;  %v3261_v11 = vpop.permute.xlu2 %3260  ;;  %v2986_v0 = vmul.f32 %v5029_v54, %v2985_v24  ;;  %vm3118_vm12 = vweird.f32 %v5041_v5 }
0x2b40   :  { %v3000_v44 = vsel %vm2997_vm8, %v2999_v39, %v2995_v35  ;;  %v3128_v13 = vmul.f32 %v5043_v38, %v6382_v42  ;;  %4801 = vmatmul.msk.f32.vlgmr.msra.gmra.mxu1 %vm78_vm0, %v3261_v11  ;;  %v3138_v54 = vand.u32 2147483648, %v6382_v42  ;;  %vm3133_vm13 = vweird.f32 %v5043_v38  ;;  %vm3119_vm15 = vmor %vm3117_vm14, %vm3118_vm12 }
0x2b41   :  { %v3114_v3 = vsub.f32 1.0, %v3113_v56  ;;  %4792 = vmatmul.msk.f32.vlgmr.msra.gmra.mxu2 %vm414_vm1, %v2986_v0  ;;  %v3001_v60 = vmul.f32 %v5031_v22, %v3000_v44  ;;  %4812 = vmatpush.xpose.msk.msra.mxu1 %vm78_vm0, %v6119_v34  ;;  %v3124_v22 = vor.u32 1.1754944e-38, %v3123_v57  ;;  %vm3134_vm6 = vmor %vm3132_vm3, %vm3133_vm13  ;;  %vm3137_vm7 = vcmp.eq.f32.partialorder %v3136_v19, 8.507059e+37 }
0x2b42   :  { %v3129_v50 = vsub.f32 1.0, %v3128_v13  ;;  %3378 = vmatpush.msra.mxu2 %v6252_v48  ;;  %v3139_v1 = vor.u32 1.1754944e-38, %v3138_v54 }
0x2b43   :  { %v3115_v33 = vmul.f32 %v5041_v5, %v3114_v3  ;;  %4793 = vmatmul.msk.f32.vlgmr.msra.gmra.mxu3 %vm414_vm1, %v3001_v60 }
0x2b44   :  { %v3130_v51 = vmul.f32 %v5043_v38, %v3129_v50  ;;  %3398 = vmatpush.msra.mxu3 %v6237_v49  ;;  %3379 = vmatpush.msra.mxu2 %v6265_v45 }
0x2b45   :  { %v3116_v34 = vadd.f32 %v5041_v5, %v3115_v33 }
0x2b46   :  { %v3131_v48 = vadd.f32 %v5043_v38, %v3130_v51  ;;  %3399 = vmatpush.msra.mxu3 %v6243_v20  ;;  %3380 = vmatpush.msra.mxu2 %v6278_v21  ;;  %v6415_v20 = vld [vmem:[%s6799_s1 + $0x18] sm:$0xff] }
0x2b47   :  { %v3120_v55 = vsel %vm3119_vm15, %v5041_v5, %v3116_v34 }
0x2b48   :  { %v3125_v27 = vsel %vm3122_vm4, %v3124_v22, %v3120_v55  ;;  %v3135_v6 = vsel %vm3134_vm6, %v5043_v38, %v3131_v48  ;;  %3400 = vmatpush.msra.mxu3 %v6258_v36  ;;  %3381 = vmatpush.msra.mxu2 %v6290_v43  ;;  %v2905_v36 = vpop.f32.mrf.mxu3 }
0x2b49   :  { %v3140_v49 = vsel %vm3137_vm7, %v3139_v1, %v3135_v6  ;;  %v6402_v45 = vmul.f32 %v6370_v17, %v3125_v27 }
0x2b4a   :  { %v6405_v30 = vmul.f32 %v6372_v16, %v3140_v49  ;;  %3401 = vmatpush.msra.mxu3 %v6271_v7  ;;  %v2906_v7 = vadd.f32 %v2905_v36, %v5595_v29 }
0x2b4b   :  { %4798 = vmatmul.msk.f32.vlgmr.msrb.gmra.mxu2 %vm414_vm1, %v6402_v45 }
0x2b4c   :  { %4799 = vmatmul.msk.f32.vlgmr.msrb.gmra.mxu3 %vm414_vm1, %v6405_v30  ;;  %4808 = vmatpush.xpose.msk.msrb.mxu2 %vm78_vm0, %v6415_v20 }
0x2b4d   :  { %3538 = vmatpush.msrb.mxu3 %v6191_v10 }
0x2bbd   :  { %v3281_v36 = vpop.f32.mrf.mxu1 }
0x2bc4   :  { %v3022_v17 = vpop.f32.mrf.mxu2 }
0x2bc6   :  { %v3045_v21 = vpop.f32.mrf.mxu3 }
0x2bc7   :  { %v3190_v43 = vrot.slane %v3045_v21, 7 }
0x2bc9   :  { %v3191_v16 = vsel %vm610_vm2, %v3190_v43, %v3022_v17 }
0x2bca   :  { %v3193_v42 = vmul.f32 %v3191_v16, %v2906_v7 }
0x2bcc   :  { %v3194_v12 = vsel %vm194_vm5, %v3193_v42, 0.0 }
0x2bcd   :  { %3195 = vadd.xlane.f32.xlu0 %v3194_v12 }
0x2bce   :  { %v3162_v5 = vpop.f32.mrf.mxu2 }
0x2bcf   :  { %v3185_v63 = vpop.f32.mrf.mxu3 }
0x2bd0   :  { %v3199_v37 = vrot.slane %v3185_v63, 7 }
0x2bd2   :  { %v3200_v24 = vsel %vm610_vm2, %v3199_v37, %v3162_v5 }
0x2bd3   :  { %v3202_v39 = vmul.f32 %v3200_v24, %v2906_v7  ;;  %v3285_v7 = vrot.slane %v3281_v36, 4 }
0x2bd5   :  { %v3203_v10 = vsel %vm194_vm5, %v3202_v39, 0.0 }
0x2bd6   :  { %3204 = vadd.xlane.f32.xlu1 %v3203_v10 }
0x2c40   :  { %v3196_v38 = vpop.xlane.xlu0 %3195 }
0x2c49   :  { %v3205_v35 = vpop.xlane.xlu1 %3204 }
0x2c4a   :  { %v3206_v56 = vmax.f32 %v3196_v38, %v3205_v35 }
0x2c4c   :  { %v3207_v11 = vsub.f32 %v3196_v38, %v3206_v56  ;;  %v3210_v0 = vsub.f32 %v3205_v35, %v3206_v56 }
0x2c4e   :  { %v3208_v44 = vmul.f32 1.442695, %v3207_v11  ;;  %v3211_v13 = vmul.f32 1.442695, %v3210_v0 }
0x2c50   :  { %5044 = vpow2.f32 %v3208_v44 }
0x2c51   :  { %5046 = vpow2.f32 %v3211_v13 }
0x2c56   :  { %v5045_v3 = vpop.eup %5044 }
0x2c57   :  { %v5047_v60 = vpop.eup %5046  ;;  %v3213_v54 = vmul.f32 %v5045_v3, %v3191_v16 }
0x2c58   :  { %v3216_v57 = vadd.f32 %v5047_v60, %v5045_v3  ;;  %v3214_v19 = vmul.f32 %v5047_v60, %v3200_v24  ;;  %v3309_v60 = vrot.slane %v6311_v2, 6 }
0x2c5a   :  { %5048 = vrcp.f32 %v3216_v57  ;;  %v3228_v51 = vand.u32 2147483648, %v3216_v57  ;;  %v3226_v22 = vand.u32 2147483647, %v3216_v57  ;;  %vm3222_vm12 = vweird.f32 %v3216_v57 }
0x2c5b   :  { %v3215_v1 = vadd.f32 %v3214_v19, %v3213_v54 }
0x2c5c   :  { %v3229_v55 = vor.u32 1.1754944e-38, %v3228_v51  ;;  %vm3227_vm14 = vcmp.eq.f32.partialorder %v3226_v22, 8.507059e+37 }
0x2c60   :  { %v5049_v50 = vpop.eup %5048 }
0x2c61   :  { %v3218_v33 = vmul.f32 %v5049_v50, %v3216_v57  ;;  %vm3223_vm8 = vweird.f32 %v5049_v50 }
0x2c62   :  { %vm3224_vm13 = vmor %vm3222_vm12, %vm3223_vm8 }
0x2c63   :  { %v3219_v59 = vsub.f32 1.0, %v3218_v33 }
0x2c65   :  { %v3220_v34 = vmul.f32 %v5049_v50, %v3219_v59 }
0x2c67   :  { %v3221_v48 = vadd.f32 %v5049_v50, %v3220_v34 }
0x2c69   :  { %v3225_v27 = vsel %vm3224_vm13, %v5049_v50, %v3221_v48 }
0x2c6a   :  { %v3230_v6 = vsel %vm3227_vm14, %v3229_v55, %v3225_v27 }
0x2c6b   :  { %v3231_v49 = vmul.f32 %v3230_v6, %v3215_v1 }
0x2c6d   :  { %4800 = vmatmul.msk.f32.vlgmr.msrb.gmra.mxu0 %vm78_vm0, %v3231_v49  ;;  %4286 = vst [vmem:[#allocation1 + $0x21] ss:$4 sm:$0xff] %v3231_v49 }
0x2c6e   :  { %3561 = vmatpush.msrb.mxu0 %v6415_v20 }
0x2cea   :  { %v3252_v21 = vpop.f32.mrf.mxu0 }
0x2ceb   :  { %v3256_v43 = vrot.slane %v3252_v21, 4 }
0x2ced   :  { %v3258_v17 = vadd.f32 %v3256_v43, %v6076_v40 }
0x2cef   :  { %v3287_v16 = vadd.f32 %v3285_v7, %v3258_v17 }
0x2cf1   :  { %5050 = vtanh.f32 %v3287_v16  ;;  %v4802_v12 = vmul.f32 -1.442695, %v3287_v16 }
0x2cf3   :  { %5052 = vpow2.f32 %v4802_v12 }
0x2cf7   :  { %v5051_v42 = vpop.eup %5050 }
0x2cf8   :  { %3313 = vrot.lane.b32.xlu0 %v5051_v42, %s5234_s29 }
0x2cf9   :  { %v5053_v63 = vpop.eup %5052 }
0x2cfa   :  { %v3291_v37 = vadd.f32 1.0, %v5053_v63 }
0x2cfc   :  { %5054 = vrcp.f32 %v3291_v37  ;;  %v3303_v35 = vand.u32 2147483648, %v3291_v37  ;;  %vm3297_vm3 = vweird.f32 %v3291_v37  ;;  %v3301_v56 = vand.u32 2147483647, %v3291_v37 }
0x2cfe   :  { %v3304_v0 = vor.u32 1.1754944e-38, %v3303_v35  ;;  %vm3302_vm6 = vcmp.eq.f32.partialorder %v3301_v56, 8.507059e+37 }
0x2d02   :  { %v5055_v5 = vpop.eup %5054 }
0x2d03   :  { %v3293_v24 = vmul.f32 %v5055_v5, %v3291_v37  ;;  %vm3298_vm15 = vweird.f32 %v5055_v5 }
0x2d04   :  { %vm3299_vm4 = vmor %vm3297_vm3, %vm3298_vm15 }
0x2d05   :  { %v3294_v39 = vsub.f32 1.0, %v3293_v24 }
0x2d07   :  { %v3295_v10 = vmul.f32 %v5055_v5, %v3294_v39 }
0x2d09   :  { %v3296_v38 = vadd.f32 %v5055_v5, %v3295_v10  ;;  %v6459_v10 = vld [vmem:[%s6799_s1 + $0x10] sm:$0xff] }
0x2d0b   :  { %v3300_v11 = vsel %vm3299_vm4, %v5055_v5, %v3296_v38  ;;  %v6466_v38 = vld [vmem:[%s6799_s1] sm:$0xff] }
0x2d0c   :  { %v3305_v13 = vsel %vm3302_vm6, %v3304_v0, %v3300_v11 }
0x2d0d   :  { %v3311_v57 = vmul.f32 %v3309_v60, %v3305_v13 }
0x2d6a   :  { %v3314_v44 = vpop.permute.xlu0 %3313 }
0x2d6b   :  { %v3316_v3 = vmul.f32 %v3314_v44, %v3305_v13  ;;  %v5185_v44 = vld [vmem:[%s6801_s3 + $0x38] sm:$0xff] }
0x2d6d   :  { %3318 = vrot.lane.b32.xlu1 %v3316_v3, %s5235_s30  ;;  %v5187_v3 = vld [vmem:[%s6801_s3 + $0x30] sm:$0xff] }
0x2ddf   :  { %v3319_v50 = vpop.permute.xlu1 %3318 }
0x2de0   :  { %v6431_v33 = vadd.f32 %v3319_v50, %v3311_v57  ;;  %v5188_v57 = vld [vmem:[%s6801_s3 + $0x50] sm:$0xff]  ;;  %v5189_v50 = vld [vmem:[%s6801_s3 + $0x28] sm:$0xff] }
0x2de2   :  { %5056 = vtanh.f32 %v6431_v33 }
0x2de8   :  { %v5057_v59 = vpop.eup %5056 }
0x2de9   :  { %3324 = vrot.lane.b32.xlu0 %v5057_v59, %s5234_s29  ;;  %v5190_v59 = vld [vmem:[%s6801_s3 + $0x48] sm:$0xff] }
0x2e5b   :  { %v3325_v54 = vpop.permute.xlu0 %3324 }
0x2e5c   :  { %v6435_v51 = vmul.f32 %v3325_v54, %v3305_v13  ;;  %v5186_v13 = vld [vmem:[%s6801_s3 + $0x58] sm:$0xff]  ;;  %v5191_v54 = vld [vmem:[%s6801_s3 + $0x20] sm:$0xff] }
0x2e5e   :  { %3329 = vrot.lane.b32.xlu2 %v6435_v51, %s5235_s30 }
0x2eb8   :  { %v3330_v19 = vpop.permute.xlu2 %3329 }
0x2eb9   :  { %v3332_v34 = vsel %vm1268_vm9, %v3330_v19, 0.0 }
0x2eba   :  { %3333 = vadd.xlane.f32.xlu1 %v3332_v34  ;;  %v5192_v34 = vld [vmem:[%s6801_s3 + $0x40] sm:$0xff] }
0x2f2d   :  { %v3334_v2 = vpop.xlane.xlu1 %3333 }
0x2f2e   :  { %v3335_v22 = vmul.f32 %v3334_v2, %v5375_v52  ;;  %v5193_v2 = vld [vmem:[%s6802_s4 + $0x58] sm:$0xff] }
0x2f30   :  { %v3336_v48 = vsub.f32 %v6435_v51, %v3335_v22  ;;  %v5194_v22 = vld [vmem:[%s6802_s4 + $0x50] sm:$0xff] }
0x2f32   :  { %v3337_v55 = vmul.f32 %v3336_v48, %v3336_v48 }
0x2f34   :  { %3339 = vrot.lane.b32.xlu0 %v3337_v55, %s5235_s30  ;;  %v5196_v55 = vld [vmem:[%s6802_s4 + $0x48] sm:$0xff] }
0x2fa6   :  { %v3340_v1 = vpop.permute.xlu0 %3339 }
0x2fa7   :  { %v3342_v27 = vsel %vm1268_vm9, %v3340_v1, 0.0  ;;  %v5197_v1 = vld [vmem:[%s6802_s4 + $0x40] sm:$0xff] }
0x2fa8   :  { %3343 = vadd.xlane.f32.xlu2 %v3342_v27 }
0x301b   :  { %v3344_v6 = vpop.xlane.xlu2 %3343 }
0x301c   :  { %v3345_v49 = vmul.f32 %v3344_v6, %v5375_v52 }
0x301e   :  { %v3346_v36 = vadd.f32 1e-05, %v3345_v49 }
0x3020   :  { %5058 = vrsqrt.f32 %v3346_v36  ;;  %vm3353_vm8 = vweird.f32 %v3346_v36 }
0x3026   :  { %v5059_v21 = vpop.eup %5058 }
0x3027   :  { %v3348_v43 = vmul.f32 %v5059_v21, %v3346_v36  ;;  %vm3354_vm7 = vweird.f32 %v5059_v21 }
0x3028   :  { %vm3355_vm12 = vmor %vm3353_vm8, %vm3354_vm7 }
0x3029   :  { %v3349_v7 = vmul.f32 %v5059_v21, %v3348_v43 }
0x302b   :  { %v3350_v17 = vmul.f32 0.5, %v3349_v7 }
0x302d   :  { %v3351_v16 = vsub.f32 1.5, %v3350_v17 }
0x302f   :  { %v3352_v42 = vmul.f32 %v5059_v21, %v3351_v16 }
0x3031   :  { %v3356_v12 = vsel %vm3355_vm12, %v5059_v21, %v3352_v42 }
0x3032   :  { %v3357_v63 = vmul.f32 %v3356_v12, %v3336_v48  ;;  %v6509_v48 = vld [vmem:[%s6799_s1 + $0x8] sm:$0xff] }
0x3034   :  { %v3358_v37 = vmul.f32 %v3357_v63, %v5457_v26 }
0x3036   :  { %v6447_v5 = vadd.f32 %v3358_v37, %v5459_v32 }
0x3038   :  { %v3361_v24 = vrot.slane %v6447_v5, 4 }
0x303a   :  { %3362 = vrot.lane.b32.xlu0 %v3361_v24, %s5235_s30 }
0x30ac   :  { %v3363_v39 = vpop.permute.xlu0 %3362 }
0x30ad   :  { %4803 = vmatmul.msk.f32.vlgmr.msra.gmra.mxu2 %vm78_vm0, %v3363_v39  ;;  %4804 = vmatmul.msk.f32.vlgmr.msra.gmra.mxu3 %vm78_vm0, %v3363_v39 }
0x30ae   :  { %4805 = vmatmul.msk.f32.vlgmr.msra.gmra.mxu0 %vm78_vm0, %v3363_v39  ;;  %4814 = vmatpush.xpose.msk.msra.mxu2 %vm78_vm0, %v6459_v10 }
0x30af   :  { %3678 = vmatpush.msra.mxu3 %v6466_v38  ;;  %3701 = vmatpush.msra.mxu0 %v6459_v10 }
0x3130   :  { %v3383_v35 = vpop.f32.mrf.mxu2  ;;  %v3403_v0 = vpop.f32.mrf.mxu3 }
0x3131   :  { %v3384_v56 = vadd.f32 %v3383_v35, %v5459_v32  ;;  %v3404_v60 = vadd.f32 %v3403_v0, %v5519_v53 }
0x3133   :  { %v3427_v11 = vrot.slane %v3384_v56, 1  ;;  %4807 = vmatmul.msk.f32.vlgmr.msrb.gmra.mxu1 %vm78_vm0, %v3384_v56  ;;  %v3567_v19 = vrot.slane %v3404_v60, 1 }
0x3134   :  { %3765 = vmatpush.msrb.mxu1 %v5185_v44 }
0x3135   :  { %4809 = vmatmul.msk.f32.vlgmr.msrb.gmra.mxu2 %vm78_vm0, %v3427_v11 }
0x3136   :  { %3794 = vmatpush.msrb.mxu2 %v5186_v13  ;;  %3766 = vmatpush.msrb.mxu1 %v5187_v3 }
0x3138   :  { %3795 = vmatpush.msrb.mxu2 %v5188_v57  ;;  %3767 = vmatpush.msrb.mxu1 %v5189_v50 }
0x313a   :  { %3796 = vmatpush.msrb.mxu2 %v5190_v59  ;;  %3768 = vmatpush.msrb.mxu1 %v5191_v54 }
0x313b   :  { %4813 = vmatmul.msk.f32.vlgmr.msra.gmra.mxu1 %vm78_vm0, %v3404_v60 }
0x313c   :  { %3797 = vmatpush.msrb.mxu2 %v5192_v34  ;;  %3936 = vmatpush.msra.mxu1 %v5193_v2 }
0x313d   :  { %4815 = vmatmul.msk.f32.vlgmr.msra.gmra.mxu2 %vm78_vm0, %v3567_v19 }
0x313e   :  { %3937 = vmatpush.msra.mxu1 %v5194_v22  ;;  %4824 = vmatpush.xpose.msk.msra.mxu2 %vm78_vm0, %v6509_v48 }
0x3140   :  { %3938 = vmatpush.msra.mxu1 %v5196_v55 }
0x3142   :  { %3939 = vmatpush.msra.mxu1 %v5197_v1 }
0x31b0   :  { %v3447_v27 = vpop.f32.mrf.mxu1 }
0x31b1   :  { %v3448_v6 = vadd.f32 %v3447_v27, %v5548_v18  ;;  %v3777_v27 = vrot.slane %v6435_v51, 4 }
0x31b3   :  { %v3472_v49 = vsel %vm365_vm11, %v3448_v6, -inf }
0x31b4   :  { %3473 = vmax.xlane.f32.xlu0 %v3472_v49 }
0x31b8   :  { %v3469_v36 = vpop.f32.mrf.mxu2  ;;  %v3587_v21 = vpop.f32.mrf.mxu1 }
0x31b9   :  { %v3470_v43 = vadd.f32 %v3469_v36, %v5545_v58  ;;  %v3588_v7 = vadd.f32 %v3587_v21, %v5510_v46 }
0x31bb   :  { %v3612_v17 = vsel %vm365_vm11, %v3588_v7, -inf  ;;  %v3475_v16 = vsel %vm365_vm11, %v3470_v43, -inf }
0x31bc   :  { %3613 = vmax.xlane.f32.xlu2 %v3612_v17  ;;  %3476 = vmax.xlane.f32.xlu1 %v3475_v16 }
0x31c0   :  { %v3609_v42 = vpop.f32.mrf.mxu2 }
0x31c1   :  { %v3610_v12 = vadd.f32 %v3609_v42, %v5513_v47 }
0x31c3   :  { %v3615_v63 = vsel %vm365_vm11, %v3610_v12, -inf }
0x31c4   :  { %3616 = vmax.xlane.f32.xlu1 %v3615_v63 }
0x3227   :  { %v3474_v37 = vpop.xlane.xlu0 %3473 }
0x3228   :  { %v3478_v39 = vsub.f32 %v3448_v6, %v3474_v37 }
0x322a   :  { %v3480_v35 = vmul.f32 1.442695, %v3478_v39 }
0x322c   :  { %5060 = vpow2.f32 %v3480_v35 }
0x322f   :  { %v3614_v56 = vpop.xlane.xlu2 %3613  ;;  %v3477_v11 = vpop.xlane.xlu1 %3476 }
0x3230   :  { %v3618_v0 = vsub.f32 %v3588_v7, %v3614_v56  ;;  %v3479_v44 = vsub.f32 %v3470_v43, %v3477_v11 }
0x3232   :  { %v5061_v13 = vpop.eup %5060  ;;  %v3620_v3 = vmul.f32 1.442695, %v3618_v0  ;;  %v3482_v60 = vmul.f32 1.442695, %v3479_v44 }
0x3233   :  { %v3484_v57 = vsel %vm365_vm11, %v5061_v13, 0.0 }
0x3234   :  { %5062 = vpow2.f32 %v3620_v3  ;;  %3485 = vadd.xlane.f32.xlu2 %v3484_v57 }
0x3235   :  { %5064 = vpow2.f32 %v3482_v60 }
0x3237   :  { %v3617_v50 = vpop.xlane.xlu1 %3616 }
0x3238   :  { %v3619_v59 = vsub.f32 %v3610_v12, %v3617_v50 }
0x323a   :  { %v6528_v54 = vpop.eup %5062  ;;  %v3622_v19 = vmul.f32 1.442695, %v3619_v59 }
0x323b   :  { %v6530_v34 = vpop.eup %5064  ;;  %v3624_v2 = vsel %vm365_vm11, %v6528_v54, 0.0 }
0x323c   :  { %5066 = vpow2.f32 %v3622_v19  ;;  %3625 = vadd.xlane.f32.xlu0 %v3624_v2  ;;  %v3487_v22 = vsel %vm365_vm11, %v6530_v34, 0.0 }
0x323d   :  { %3488 = vadd.xlane.f32.xlu1 %v3487_v22 }
0x3242   :  { %v6536_v55 = vpop.eup %5066 }
0x3243   :  { %v3627_v1 = vsel %vm365_vm11, %v6536_v55, 0.0 }
0x3244   :  { %3628 = vadd.xlane.f32.xlu2 %v3627_v1 }
0x325c   :  { %3778 = vrot.lane.b32.xlu2 %v3777_v27, %s5235_s30 }
0x32a7   :  { %v3486_v6 = vpop.xlane.xlu2 %3485 }
0x32a8   :  { %5068 = vrcp.f32 %v3486_v6  ;;  %v3501_v17 = vand.u32 2147483648, %v3486_v6  ;;  %v3499_v42 = vand.u32 2147483647, %v3486_v6  ;;  %vm3495_vm13 = vweird.f32 %v3486_v6 }
0x32aa   :  { %v3502_v37 = vor.u32 1.1754944e-38, %v3501_v17  ;;  %vm3500_vm15 = vcmp.eq.f32.partialorder %v3499_v42, 8.507059e+37 }
0x32ae   :  { %v5069_v49 = vpop.eup %5068 }
0x32af   :  { %v3491_v36 = vmul.f32 %v5069_v49, %v3486_v6  ;;  %v3626_v21 = vpop.xlane.xlu0 %3625  ;;  %vm3496_vm9 = vweird.f32 %v5069_v49 }
0x32b0   :  { %5070 = vrcp.f32 %v3626_v21  ;;  %v3489_v43 = vpop.xlane.xlu1 %3488  ;;  %vm3497_vm14 = vmor %vm3495_vm13, %vm3496_vm9  ;;  %v3641_v60 = vand.u32 2147483648, %v3626_v21  ;;  %v3639_v19 = vand.u32 2147483647, %v3626_v21  ;;  %vm3635_vm6 = vweird.f32 %v3626_v21 }
0x32b1   :  { %v3492_v7 = vsub.f32 1.0, %v3491_v36  ;;  %5072 = vrcp.f32 %v3489_v43  ;;  %v3516_v2 = vand.u32 2147483648, %v3489_v43  ;;  %v3514_v1 = vand.u32 2147483647, %v3489_v43 }
0x32b2   :  { %vm3510_vm8 = vweird.f32 %v3489_v43  ;;  %vm3640_vm12 = vcmp.eq.f32.partialorder %v3639_v19, 8.507059e+37  ;;  %v5203_v19 = vld [vmem:[%s6802_s4 + $0x30] sm:$0xff] }
0x32b3   :  { %v3493_v16 = vmul.f32 %v5069_v49, %v3492_v7  ;;  %v3642_v7 = vor.u32 1.1754944e-38, %v3641_v60  ;;  %vm3515_vm13 = vcmp.eq.f32.partialorder %v3514_v1, 8.507059e+37  ;;  %v5205_v1 = vld [vmem:[%s6802_s4 + $0x20] sm:$0xff] }
0x32b5   :  { %v3494_v12 = vadd.f32 %v5069_v49, %v3493_v16  ;;  %v3517_v16 = vor.u32 1.1754944e-38, %v3516_v2 }
0x32b6   :  { %v5071_v63 = vpop.eup %5070 }
0x32b7   :  { %v5073_v39 = vpop.eup %5072  ;;  %v3498_v35 = vsel %vm3497_vm14, %v5069_v49, %v3494_v12  ;;  %v3631_v56 = vmul.f32 %v5071_v63, %v3626_v21  ;;  %v3629_v11 = vpop.xlane.xlu2 %3628  ;;  %vm3636_vm3 = vweird.f32 %v5071_v63  ;;  %v5198_v49 = vld [vmem:[%s6802_s4 + $0x18] sm:$0xff]  ;;  %v5199_v21 = vld [vmem:[%s6802_s4 + $0x10] sm:$0xff] }
0x32b8   :  { %v3503_v0 = vsel %vm3500_vm15, %v3502_v37, %v3498_v35  ;;  %v3506_v44 = vmul.f32 %v5073_v39, %v3489_v43  ;;  %5074 = vrcp.f32 %v3629_v11  ;;  %vm3511_vm4 = vweird.f32 %v5073_v39  ;;  %vm3637_vm7 = vmor %vm3635_vm6, %vm3636_vm3 }
0x32b9   :  { %v3632_v3 = vsub.f32 1.0, %v3631_v56  ;;  %v3504_v50 = vmul.f32 %v5061_v13, %v3503_v0  ;;  %vm3512_vm9 = vmor %vm3510_vm8, %vm3511_vm4  ;;  %v3654_v60 = vand.u32 2147483647, %v3629_v11  ;;  %vm3650_vm15 = vweird.f32 %v3629_v11 }
0x32ba   :  { %v3507_v57 = vsub.f32 1.0, %v3506_v44  ;;  %v3656_v44 = vand.u32 2147483648, %v3629_v11 }
0x32bb   :  { %v3633_v59 = vmul.f32 %v5071_v63, %v3632_v3  ;;  %4810 = vmatmul.msk.f32.vlgmr.msrb.gmra.mxu3 %vm414_vm1, %v3504_v50  ;;  %v5202_v50 = vld [vmem:[%s6802_s4 + $0x38] sm:$0xff]  ;;  %vm3655_vm4 = vcmp.eq.f32.partialorder %v3654_v60, 8.507059e+37 }
0x32bc   :  { %v3508_v22 = vmul.f32 %v5073_v39, %v3507_v57  ;;  %3896 = vmatpush.msrb.mxu3 %v5198_v49  ;;  %v5201_v57 = vld [vmem:[%s6802_s4] sm:$0xff] }
0x32bd   :  { %v3634_v6 = vadd.f32 %v5071_v63, %v3633_v59 }
0x32be   :  { %v5075_v36 = vpop.eup %5074  ;;  %v3509_v13 = vadd.f32 %v5073_v39, %v3508_v22  ;;  %3897 = vmatpush.msrb.mxu3 %v5199_v21  ;;  %v5204_v22 = vld [vmem:[%s6802_s4 + $0x28] sm:$0xff] }
0x32bf   :  { %v3638_v17 = vsel %vm3637_vm7, %v5071_v63, %v3634_v6  ;;  %v3646_v42 = vmul.f32 %v5075_v36, %v3629_v11  ;;  %v3779_v12 = vpop.permute.xlu2 %3778  ;;  %v5200_v63 = vld [vmem:[%s6802_s4 + $0x8] sm:$0xff]  ;;  %vm3651_vm14 = vweird.f32 %v5075_v36  ;;  %v3423_v6 = vpop.f32.mrf.mxu0 }
0x32c0   :  { %v3643_v37 = vsel %vm3640_vm12, %v3642_v7, %v3638_v17  ;;  %v3513_v35 = vsel %vm3512_vm9, %v5073_v39, %v3509_v13  ;;  %4819 = vmatmul.msk.f32.vlgmr.msrb.gmra.mxu2 %vm78_vm0, %v3779_v12  ;;  %3898 = vmatpush.msrb.mxu3 %v5200_v63  ;;  %vm3652_vm3 = vmor %vm3650_vm15, %vm3651_vm14  ;;  %v3424_v7 = vadd.f32 %v3423_v6, %v5595_v29 }
0x32c1   :  { %v3518_v56 = vsel %vm3515_vm13, %v3517_v16, %v3513_v35  ;;  %v3647_v0 = vsub.f32 1.0, %v3646_v42  ;;  %v6553_v43 = vmul.f32 %v6528_v54, %v3643_v37  ;;  %4830 = vmatpush.xpose.msk.msrb.mxu2 %vm78_vm0, %v6466_v38 }
0x32c2   :  { %v3519_v3 = vmul.f32 %v6530_v34, %v3518_v56  ;;  %3899 = vmatpush.msrb.mxu3 %v5201_v57  ;;  %v3657_v34 = vor.u32 1.1754944e-38, %v3656_v44 }
0x32c3   :  { %v3648_v39 = vmul.f32 %v5075_v36, %v3647_v0  ;;  %4816 = vmatmul.msk.f32.vlgmr.msra.gmra.mxu3 %vm414_vm1, %v6553_v43 }
0x32c4   :  { %4811 = vmatmul.msk.f32.vlgmr.msrb.gmra.mxu0 %vm414_vm1, %v3519_v3  ;;  %4826 = vmatpush.xpose.msk.msra.mxu3 %vm78_vm0, %v6415_v20 }
0x32c5   :  { %v3649_v54 = vadd.f32 %v5075_v36, %v3648_v39  ;;  %3916 = vmatpush.msrb.mxu0 %v5202_v50 }
0x32c7   :  { %v3653_v59 = vsel %vm3652_vm3, %v5075_v36, %v3649_v54  ;;  %3917 = vmatpush.msrb.mxu0 %v5203_v19 }
0x32c8   :  { %v3658_v2 = vsel %vm3655_vm4, %v3657_v34, %v3653_v59 }
0x32c9   :  { %v6576_v11 = vmul.f32 %v6536_v55, %v3658_v2  ;;  %3918 = vmatpush.msrb.mxu0 %v5204_v22 }
0x32cb   :  { %3919 = vmatpush.msrb.mxu0 %v5205_v1 }
0x32cc   :  { %4817 = vmatmul.msk.f32.vlgmr.msra.gmra.mxu0 %vm414_vm1, %v6576_v11 }
0x32cd   :  { %4056 = vmatpush.msra.mxu0 %v6509_v48 }
0x333e   :  { %v3540_v49 = vpop.f32.mrf.mxu3 }
0x3341   :  { %v3563_v36 = vpop.f32.mrf.mxu0 }
0x3342   :  { %v3708_v55 = vrot.slane %v3563_v36, 7 }
0x3344   :  { %v3709_v13 = vsel %vm610_vm2, %v3708_v55, %v3540_v49 }
0x3345   :  { %v3711_v17 = vmul.f32 %v3709_v13, %v3424_v7 }
0x3346   :  { %v3680_v21 = vpop.f32.mrf.mxu3 }
0x3347   :  { %v3712_v16 = vsel %vm194_vm5, %v3711_v17, 0.0 }
0x3348   :  { %3713 = vadd.xlane.f32.xlu1 %v3712_v16 }
0x3349   :  { %v3703_v42 = vpop.f32.mrf.mxu0 }
0x334a   :  { %v3717_v12 = vrot.slane %v3703_v42, 7 }
0x334c   :  { %v3718_v37 = vsel %vm610_vm2, %v3717_v12, %v3680_v21 }
0x334d   :  { %v3720_v35 = vmul.f32 %v3718_v37, %v3424_v7 }
0x334f   :  { %v3721_v48 = vsel %vm194_vm5, %v3720_v35, 0.0 }
0x3350   :  { %3722 = vadd.xlane.f32.xlu0 %v3721_v48 }
0x33bb   :  { %v3714_v56 = vpop.xlane.xlu1 %3713 }
0x33c3   :  { %v3723_v0 = vpop.xlane.xlu0 %3722 }
0x33c4   :  { %v3724_v63 = vmax.f32 %v3714_v56, %v3723_v0 }
0x33c6   :  { %v3725_v44 = vsub.f32 %v3714_v56, %v3724_v63  ;;  %v3728_v3 = vsub.f32 %v3723_v0, %v3724_v63 }
0x33c8   :  { %v3726_v39 = vmul.f32 1.442695, %v3725_v44  ;;  %v3729_v60 = vmul.f32 1.442695, %v3728_v3 }
0x33ca   :  { %5076 = vpow2.f32 %v3726_v39 }
0x33cb   :  { %5078 = vpow2.f32 %v3729_v60 }
0x33d0   :  { %v5077_v57 = vpop.eup %5076 }
0x33d1   :  { %v5079_v54 = vpop.eup %5078  ;;  %v3731_v2 = vmul.f32 %v5077_v57, %v3709_v13  ;;  %v3799_v13 = vpop.f32.mrf.mxu2 }
0x33d2   :  { %v3734_v50 = vadd.f32 %v5079_v54, %v5077_v57  ;;  %v3732_v1 = vmul.f32 %v5079_v54, %v3718_v37  ;;  %v3803_v37 = vrot.slane %v3799_v13, 2 }
0x33d4   :  { %5080 = vrcp.f32 %v3734_v50  ;;  %v3746_v22 = vand.u32 2147483648, %v3734_v50  ;;  %v3744_v49 = vand.u32 2147483647, %v3734_v50  ;;  %vm3740_vm7 = vweird.f32 %v3734_v50 }
0x33d5   :  { %v3733_v7 = vadd.f32 %v3732_v1, %v3731_v2 }
0x33d6   :  { %v3747_v55 = vor.u32 1.1754944e-38, %v3746_v22  ;;  %vm3745_vm12 = vcmp.eq.f32.partialorder %v3744_v49, 8.507059e+37  ;;  %v3827_v22 = vrot.slane %v6431_v33, 6 }
0x33da   :  { %v5081_v34 = vpop.eup %5080 }
0x33db   :  { %v3736_v59 = vmul.f32 %v5081_v34, %v3734_v50  ;;  %vm3741_vm6 = vweird.f32 %v5081_v34 }
0x33dc   :  { %vm3742_vm8 = vmor %vm3740_vm7, %vm3741_vm6 }
0x33dd   :  { %v3737_v19 = vsub.f32 1.0, %v3736_v59 }
0x33df   :  { %v3738_v6 = vmul.f32 %v5081_v34, %v3737_v19 }
0x33e1   :  { %v3739_v36 = vadd.f32 %v5081_v34, %v3738_v6 }
0x33e3   :  { %v3743_v17 = vsel %vm3742_vm8, %v5081_v34, %v3739_v36 }
0x33e4   :  { %v3748_v16 = vsel %vm3745_vm12, %v3747_v55, %v3743_v17 }
0x33e5   :  { %v3749_v42 = vmul.f32 %v3748_v16, %v3733_v7 }
0x33e7   :  { %4818 = vmatmul.msk.f32.vlgmr.msrb.gmra.mxu1 %vm78_vm0, %v3749_v42  ;;  %4288 = vst [vmem:[#allocation1 + $0x22] ss:$4 sm:$0xff] %v3749_v42 }
0x33e8   :  { %4079 = vmatpush.msrb.mxu1 %v6415_v20 }
0x3464   :  { %v3770_v12 = vpop.f32.mrf.mxu1 }
0x3465   :  { %v3774_v21 = vrot.slane %v3770_v12, 2 }
0x3467   :  { %v3776_v35 = vadd.f32 %v3774_v21, %v6076_v40 }
0x3469   :  { %v3805_v48 = vadd.f32 %v3803_v37, %v3776_v35 }
0x346b   :  { %5082 = vtanh.f32 %v3805_v48  ;;  %v4820_v0 = vmul.f32 -1.442695, %v3805_v48 }
0x346d   :  { %5084 = vpow2.f32 %v4820_v0 }
0x3471   :  { %v5083_v56 = vpop.eup %5082 }
0x3472   :  { %3831 = vrot.lane.b32.xlu1 %v5083_v56, %s5234_s29 }
0x3473   :  { %v5085_v63 = vpop.eup %5084 }
0x3474   :  { %v3809_v44 = vadd.f32 1.0, %v5085_v63 }
0x3476   :  { %5086 = vrcp.f32 %v3809_v44  ;;  %v3821_v54 = vand.u32 2147483648, %v3809_v44  ;;  %vm3815_vm13 = vweird.f32 %v3809_v44  ;;  %v3819_v50 = vand.u32 2147483647, %v3809_v44 }
0x3478   :  { %v3822_v34 = vor.u32 1.1754944e-38, %v3821_v54  ;;  %vm3820_vm15 = vcmp.eq.f32.partialorder %v3819_v50, 8.507059e+37 }
0x347c   :  { %v5087_v3 = vpop.eup %5086 }
0x347d   :  { %v3811_v39 = vmul.f32 %v5087_v3, %v3809_v44  ;;  %vm3816_vm9 = vweird.f32 %v5087_v3 }
0x347e   :  { %vm3817_vm14 = vmor %vm3815_vm13, %vm3816_vm9 }
0x347f   :  { %v3812_v60 = vsub.f32 1.0, %v3811_v39 }
0x3481   :  { %v3813_v20 = vmul.f32 %v5087_v3, %v3812_v60 }
0x3483   :  { %v3814_v57 = vadd.f32 %v5087_v3, %v3813_v20 }
0x3485   :  { %v3818_v40 = vsel %vm3817_vm14, %v5087_v3, %v3814_v57 }
0x3486   :  { %v3823_v19 = vsel %vm3820_vm15, %v3822_v34, %v3818_v40 }
0x3487   :  { %v3829_v1 = vmul.f32 %v3827_v22, %v3823_v19 }
0x34e4   :  { %v3832_v59 = vpop.permute.xlu1 %3831 }
0x34e5   :  { %v3834_v2 = vmul.f32 %v3832_v59, %v3823_v19  ;;  %v72_v59 = vld [vmem:[%s6803_s5 + $0x38] sm:$0xff] }
0x34e7   :  { %3836 = vrot.lane.b32.xlu0 %v3834_v2, %s5235_s30  ;;  %v71_v2 = vld [vmem:[%s6803_s5 + $0x30] sm:$0xff] }
0x3559   :  { %v3837_v6 = vpop.permute.xlu0 %3836 }
0x355a   :  { %v3839_v49 = vadd.f32 %v3837_v6, %v3829_v1 }
0x355c   :  { %5088 = vtanh.f32 %v3839_v49 }
0x3562   :  { %v5089_v36 = vpop.eup %5088 }
0x3563   :  { %3842 = vrot.lane.b32.xlu2 %v5089_v36, %s5234_s29 }
0x35bd   :  { %v3843_v55 = vpop.permute.xlu2 %3842 }
0x35be   :  { %v6599_v7 = vmul.f32 %v3843_v55, %v3823_v19 }
0x35c0   :  { %3847 = vrot.lane.b32.xlu0 %v6599_v7, %s5235_s30 }
0x3632   :  { %v3848_v17 = vpop.permute.xlu0 %3847 }
0x3633   :  { %v3850_v16 = vsel %vm1787_vm10, %v3848_v17, 0.0 }
0x3634   :  { %3851 = vadd.xlane.f32.xlu1 %v3850_v16 }
0x36a7   :  { %v3852_v42 = vpop.xlane.xlu1 %3851 }
0x36a8   :  { %v3853_v33 = vmul.f32 %v3852_v42, %v5375_v52 }
0x36aa   :  { %v3854_v13 = vsub.f32 %v6599_v7, %v3853_v33 }
0x36ac   :  { %v3855_v12 = vmul.f32 %v3854_v13, %v3854_v13 }
0x36ae   :  { %3857 = vrot.lane.b32.xlu2 %v3855_v12, %s5235_s30 }
0x3708   :  { %v3858_v21 = vpop.permute.xlu2 %3857 }
0x3709   :  { %v3860_v37 = vsel %vm1787_vm10, %v3858_v21, 0.0 }
0x370a   :  { %3861 = vadd.xlane.f32.xlu0 %v3860_v37 }
0x377d   :  { %v3862_v35 = vpop.xlane.xlu0 %3861 }
0x377e   :  { %v3863_v48 = vmul.f32 %v3862_v35, %v5375_v52 }
0x3780   :  { %v3864_v56 = vadd.f32 1e-05, %v3863_v48 }
0x3782   :  { %5090 = vrsqrt.f32 %v3864_v56  ;;  %vm3871_vm4 = vweird.f32 %v3864_v56 }
0x3788   :  { %v5091_v0 = vpop.eup %5090 }
0x3789   :  { %v3866_v63 = vmul.f32 %v5091_v0, %v3864_v56  ;;  %vm3872_vm3 = vweird.f32 %v5091_v0 }
0x378a   :  { %vm3873_vm6 = vmor %vm3871_vm4, %vm3872_vm3 }
0x378b   :  { %v3867_v44 = vmul.f32 %v5091_v0, %v3866_v63 }
0x378d   :  { %v3868_v3 = vmul.f32 0.5, %v3867_v44 }
0x378f   :  { %v3869_v39 = vsub.f32 1.5, %v3868_v3 }
0x3791   :  { %v3870_v60 = vmul.f32 %v5091_v0, %v3869_v39 }
0x3793   :  { %v3874_v20 = vsel %vm3873_vm6, %v5091_v0, %v3870_v60 }
0x3794   :  { %v3875_v57 = vmul.f32 %v3874_v20, %v3854_v13 }
0x3796   :  { %v3876_v54 = vmul.f32 %v3875_v57, %v5457_v26 }
0x3798   :  { %v6611_v50 = vadd.f32 %v3876_v54, %v5459_v32 }
0x379a   :  { %v3879_v52 = vrot.slane %v6611_v50, 6 }
0x379c   :  { %3880 = vrot.lane.b32.xlu2 %v3879_v52, %s5235_s30 }
0x37f6   :  { %v3881_v40 = vpop.permute.xlu2 %3880 }
0x37f7   :  { %4821 = vmatmul.msk.f32.vlgmr.msrb.gmra.mxu3 %vm78_vm0, %v3881_v40  ;;  %4822 = vmatmul.msk.f32.vlgmr.msrb.gmra.mxu0 %vm78_vm0, %v3881_v40 }
0x37f8   :  { %4823 = vmatmul.msk.f32.vlgmr.msra.gmra.mxu1 %vm78_vm0, %v3881_v40  ;;  %4832 = vmatpush.xpose.msk.msrb.mxu3 %vm78_vm0, %v6459_v10 }
0x37f9   :  { %4219 = vmatpush.msra.mxu1 %v6459_v10  ;;  %4196 = vmatpush.msrb.mxu0 %v6466_v38  ;;  %v70_v10 = vld [vmem:[%s6803_s5 + $0x28] sm:$0xff]  ;;  %v69_v38 = vld [vmem:[%s6803_s5 + $0x20] sm:$0xff] }
0x3874   :  { %v3921_v22 = vpop.f32.mrf.mxu0 }
0x387a   :  { %v3901_v26 = vpop.f32.mrf.mxu3 }
0x387b   :  { %v3902_v34 = vadd.f32 %v3901_v26, %v5459_v32  ;;  %v3922_v32 = vadd.f32 %v3921_v22, %v5519_v53  ;;  %v67_v22 = vld [vmem:[%s6803_s5 + $0x10] sm:$0xff] }
0x387d   :  { %v3945_v19 = vrot.slane %v3902_v34, 1  ;;  %4825 = vmatmul.msk.f32.vlgmr.msra.gmra.mxu2 %vm78_vm0, %v3902_v34  ;;  %v4085_v1 = vrot.slane %v3922_v32, 1  ;;  %v4335_v34 = vld.sshfl [vmem:[#allocation1] sm:$0xff pattern:$0x73625140] }
0x387e   :  { %4309 = vmatpush.msra.mxu2 %v72_v59  ;;  %v4420_v59 = vrot.slane %v5595_v29, 2 }
0x387f   :  { %4827 = vmatmul.msk.f32.vlgmr.msra.gmra.mxu3 %vm78_vm0, %v3945_v19  ;;  %v4421_v19 = vrot.slane %v5595_v29, 4 }
0x3880   :  { %4310 = vmatpush.msra.mxu2 %v71_v2  ;;  %v68_v2 = vld [vmem:[%s6803_s5 + $0x18] sm:$0xff] }
0x3881   :  { %4357 = vmatpush.msra.mxu3 %v68_v2 }
0x3882   :  { %4311 = vmatpush.msra.mxu2 %v70_v10  ;;  %v66_v10 = vld [vmem:[%s6803_s5 + $0x8] sm:$0xff] }
0x3883   :  { %4358 = vmatpush.msra.mxu3 %v67_v22 }
0x3884   :  { %4312 = vmatpush.msra.mxu2 %v69_v38 }
0x3885   :  { %4831 = vmatmul.msk.f32.vlgmr.msrb.gmra.mxu2 %vm78_vm0, %v3922_v32  ;;  %4359 = vmatpush.msra.mxu3 %v66_v10  ;;  %v65_v32 = vld [vmem:[%s6803_s5] sm:$0xff] }
0x3887   :  { %4833 = vmatmul.msk.f32.vlgmr.msrb.gmra.mxu3 %vm78_vm0, %v4085_v1 }
0x3888   :  { %4360 = vmatpush.msra.mxu3 %v65_v32 }
0x388d   :  { %4836 = vmatmul.msk.f32.vlgmr.msra.gmra.mxu2 %vm78_vm0, %v6064_v9 }
0x3900   :  { %v3965_v6 = vpop.f32.mrf.mxu2 }
0x3901   :  { %v3966_v49 = vadd.f32 %v3965_v6, %v5548_v18 }
0x3902   :  { %v3987_v36 = vpop.f32.mrf.mxu3 }
0x3903   :  { %v3988_v53 = vadd.f32 %v3987_v36, %v5545_v58  ;;  %v3990_v55 = vsel %vm365_vm11, %v3966_v49, -inf }
0x3904   :  { %3991 = vmax.xlane.f32.xlu1 %v3990_v55 }
0x3905   :  { %v3993_v17 = vsel %vm365_vm11, %v3988_v53, -inf }
0x3906   :  { %3994 = vmax.xlane.f32.xlu2 %v3993_v17 }
0x3908   :  { %v4105_v16 = vpop.f32.mrf.mxu2 }
0x3909   :  { %v4106_v42 = vadd.f32 %v4105_v16, %v5510_v46 }
0x390a   :  { %v4127_v33 = vpop.f32.mrf.mxu3 }
0x390b   :  { %v4128_v13 = vadd.f32 %v4127_v33, %v5513_v47  ;;  %v4130_v9 = vsel %vm365_vm11, %v4106_v42, -inf }
0x390c   :  { %4131 = vmax.xlane.f32.xlu1 %v4130_v9 }
0x390d   :  { %v4133_v18 = vsel %vm365_vm11, %v4128_v13, -inf }
0x390e   :  { %4134 = vmax.xlane.f32.xlu0 %v4133_v18 }
0x3977   :  { %v3992_v12 = vpop.xlane.xlu1 %3991 }
0x3978   :  { %v3996_v58 = vsub.f32 %v3966_v49, %v3992_v12 }
0x3979   :  { %v3995_v21 = vpop.xlane.xlu2 %3994 }
0x397a   :  { %v3998_v37 = vmul.f32 1.442695, %v3996_v58  ;;  %v3997_v35 = vsub.f32 %v3988_v53, %v3995_v21 }
0x397c   :  { %5092 = vpow2.f32 %v3998_v37  ;;  %v4000_v48 = vmul.f32 1.442695, %v3997_v35 }
0x397e   :  { %5094 = vpow2.f32 %v4000_v48 }
0x397f   :  { %v4132_v56 = vpop.xlane.xlu1 %4131 }
0x3980   :  { %v4136_v0 = vsub.f32 %v4106_v42, %v4132_v56 }
0x3981   :  { %v4135_v46 = vpop.xlane.xlu0 %4134 }
0x3982   :  { %v6652_v63 = vpop.eup %5092  ;;  %v4138_v47 = vmul.f32 1.442695, %v4136_v0  ;;  %v4137_v44 = vsub.f32 %v4128_v13, %v4135_v46 }
0x3983   :  { %v4002_v3 = vsel %vm365_vm11, %v6652_v63, 0.0 }
0x3984   :  { %v6656_v39 = vpop.eup %5094  ;;  %5096 = vpow2.f32 %v4138_v47  ;;  %v4140_v60 = vmul.f32 1.442695, %v4137_v44  ;;  %4003 = vadd.xlane.f32.xlu1 %v4002_v3 }
0x3985   :  { %v4005_v20 = vsel %vm365_vm11, %v6656_v39, 0.0 }
0x3986   :  { %5098 = vpow2.f32 %v4140_v60  ;;  %4006 = vadd.xlane.f32.xlu0 %v4005_v20 }
0x398a   :  { %v6660_v57 = vpop.eup %5096 }
0x398b   :  { %v4142_v26 = vsel %vm365_vm11, %v6660_v57, 0.0 }
0x398c   :  { %v6662_v54 = vpop.eup %5098 }
0x398d   :  { %v4145_v40 = vsel %vm365_vm11, %v6662_v54, 0.0 }
0x398e   :  { %4146 = vadd.xlane.f32.xlu2 %v4145_v40  ;;  %4143 = vadd.xlane.f32.xlu0 %v4142_v26 }
0x39a2   :  { %4337 = vrot.lane.b32.xlu0 %v4335_v34, %s5235_s30 }
0x39aa   :  { %4425 = vrot.lane.b32.xlu0 %v4420_v59, %s5234_s29 }
0x39b2   :  { %4427 = vrot.lane.b32.xlu0 %v4421_v19, %s5234_s29 }
0x39f7   :  { %v4004_v38 = vpop.xlane.xlu1 %4003 }
0x39f8   :  { %5100 = vrcp.f32 %v4004_v38  ;;  %v4017_v42 = vand.u32 2147483647, %v4004_v38  ;;  %v4019_v33 = vand.u32 2147483648, %v4004_v38  ;;  %vm4013_vm10 = vweird.f32 %v4004_v38 }
0x39f9   :  { %v4007_v1 = vpop.xlane.xlu0 %4006 }
0x39fa   :  { %5102 = vrcp.f32 %v4007_v1  ;;  %v4034_v18 = vand.u32 2147483648, %v4007_v1  ;;  %v4032_v21 = vand.u32 2147483647, %v4007_v1  ;;  %v4020_v37 = vor.u32 1.1754944e-38, %v4019_v33 }
0x39fb   :  { %vm4018_vm12 = vcmp.eq.f32.partialorder %v4017_v42, 8.507059e+37  ;;  %vm4028_vm9 = vweird.f32 %v4007_v1 }
0x39fc   :  { %v4035_v46 = vor.u32 1.1754944e-38, %v4034_v18  ;;  %vm4033_vm14 = vcmp.eq.f32.partialorder %v4032_v21, 8.507059e+37 }
0x39fe   :  { %v5101_v6 = vpop.eup %5100 }
0x39ff   :  { %v4009_v49 = vmul.f32 %v5101_v6, %v4004_v38  ;;  %vm4014_vm11 = vweird.f32 %v5101_v6 }
0x3a00   :  { %v5103_v36 = vpop.eup %5102  ;;  %vm4015_vm8 = vmor %vm4013_vm10, %vm4014_vm11 }
0x3a01   :  { %v4010_v53 = vsub.f32 1.0, %v4009_v49  ;;  %v4024_v55 = vmul.f32 %v5103_v36, %v4007_v1  ;;  %v4144_v17 = vpop.xlane.xlu0 %4143  ;;  %v4147_v16 = vpop.xlane.xlu2 %4146  ;;  %vm4029_vm7 = vweird.f32 %v5103_v36 }
0x3a02   :  { %5104 = vrcp.f32 %v4144_v17  ;;  %vm4030_vm13 = vmor %vm4028_vm9, %vm4029_vm7  ;;  %v4159_v59 = vand.u32 2147483648, %v4144_v17  ;;  %v4157_v22 = vand.u32 2147483647, %v4144_v17  ;;  %v4174_v10 = vand.u32 2147483648, %v4147_v16 }
0x3a03   :  { %v4011_v13 = vmul.f32 %v5101_v6, %v4010_v53  ;;  %v4025_v9 = vsub.f32 1.0, %v4024_v55  ;;  %5106 = vrcp.f32 %v4147_v16  ;;  %vm4153_vm4 = vweird.f32 %v4144_v17 }
0x3a04   :  { %v4160_v1 = vor.u32 1.1754944e-38, %v4159_v59  ;;  %vm4168_vm11 = vweird.f32 %v4147_v16  ;;  %vm4158_vm10 = vcmp.eq.f32.partialorder %v4157_v22, 8.507059e+37  ;;  %v4175_v49 = vor.u32 1.1754944e-38, %v4174_v10  ;;  %v6835_v22 = vld [vmem:[#allocation5_spill] sm:$0xff] }
0x3a05   :  { %v4012_v12 = vadd.f32 %v5101_v6, %v4011_v13  ;;  %v4026_v58 = vmul.f32 %v5103_v36, %v4025_v9 }
0x3a07   :  { %v4016_v35 = vsel %vm4015_vm8, %v5101_v6, %v4012_v12  ;;  %v4027_v48 = vadd.f32 %v5103_v36, %v4026_v58  ;;  %v3941_v12 = vpop.f32.mrf.mxu1 }
0x3a08   :  { %v5105_v56 = vpop.eup %5104  ;;  %v4021_v0 = vsel %vm4018_vm12, %v4020_v37, %v4016_v35  ;;  %v3942_v37 = vadd.f32 %v3941_v12, %v5595_v29 }
0x3a09   :  { %v5107_v47 = vpop.eup %5106  ;;  %v4022_v44 = vmul.f32 %v6652_v63, %v4021_v0  ;;  %v4031_v3 = vsel %vm4030_vm13, %v5103_v36, %v4027_v48  ;;  %v4149_v60 = vmul.f32 %v5105_v56, %v4144_v17  ;;  %vm4154_vm15 = vweird.f32 %v5105_v56 }
0x3a0a   :  { %v4036_v20 = vsel %vm4033_vm14, %v4035_v46, %v4031_v3  ;;  %v4164_v40 = vmul.f32 %v5107_v47, %v4147_v16  ;;  %vm4169_vm3 = vweird.f32 %v5107_v47  ;;  %v4172_v63 = vand.u32 2147483647, %v4147_v16  ;;  %vm4155_vm6 = vmor %vm4153_vm4, %vm4154_vm15 }
0x3a0b   :  { %v4037_v26 = vmul.f32 %v6656_v39, %v4036_v20  ;;  %v4150_v34 = vsub.f32 1.0, %v4149_v60  ;;  %4828 = vmatmul.msk.f32.vlgmr.msra.gmra.mxu0 %vm414_vm1, %v4022_v44  ;;  %vm4170_vm7 = vmor %vm4168_vm11, %vm4169_vm3  ;;  %v6833_v16 = vrot.slane %v5612_v31, 2  ;;  %vm4370_vm13 = vcmask 408576  }
0x3a0c   :  { %v4165_v19 = vsub.f32 1.0, %v4164_v40  ;;  %vm4173_vm8 = vcmp.eq.f32.partialorder %v4172_v63, 8.507059e+37 }
0x3a0d   :  { %v4151_v2 = vmul.f32 %v5105_v56, %v4150_v34  ;;  %4829 = vmatmul.msk.f32.vlgmr.msrb.gmra.mxu1 %vm414_vm1, %v4037_v26 }
0x3a0e   :  { %v4166_v32 = vmul.f32 %v5107_v47, %v4165_v19 }
0x3a0f   :  { %v4152_v38 = vadd.f32 %v5105_v56, %v4151_v2 }
0x3a10   :  { %v4167_v6 = vadd.f32 %v5107_v47, %v4166_v32 }
0x3a11   :  { %v4156_v39 = vsel %vm4155_vm6, %v5105_v56, %v4152_v38 }
0x3a12   :  { %v4161_v36 = vsel %vm4158_vm10, %v4160_v1, %v4156_v39  ;;  %v4171_v53 = vsel %vm4170_vm7, %v5107_v47, %v4167_v6  ;;  %vm4625_vm7 = vcmask 1042434  }
0x3a13   :  { %v6690_v55 = vmul.f32 %v6660_v57, %v4161_v36  ;;  %v4176_v42 = vsel %vm4173_vm8, %v4175_v49, %v4171_v53  ;;  %vm4628_vm8 = vcmask 1043459  }
0x3a14   :  { %v6693_v33 = vmul.f32 %v6662_v54, %v4176_v42  ;;  %v4338_v13 = vpop.permute.xlu0 %4337  ;;  %v6834_v54 = vrot.slane %v5732_v4, 4 }
0x3a15   :  { %4834 = vmatmul.msk.f32.vlgmr.msrb.gmra.mxu0 %vm414_vm1, %v6690_v55  ;;  %4838 = vmatmul.msk.f32.vlgmr.msra.gmra.mxu3 %vm78_vm0, %v4338_v13 }
0x3a16   :  { %4835 = vmatmul.msk.f32.vlgmr.msra.gmra.mxu1 %vm414_vm1, %v6693_v33 }
0x3a1c   :  { %v6700_v17 = vpop.permute.xlu0 %4425 }
0x3a1d   :  { %v4436_v57 = vmul.f32 %v6700_v17, %v6833_v16 }
0x3a1f   :  { %4453 = vst [vmem:[#allocation1 + $0x1] ss:$4 sm:$0xff] %v4436_v57 }
0x3a24   :  { %v6705_v9 = vpop.permute.xlu0 %4427 }
0x3a25   :  { %v4437_v18 = vmul.f32 %v6705_v9, %v6834_v54  ;;  %v4441_v50 = vmul.f32 %v6705_v9, %v3777_v27 }
0x3a27   :  { %4455 = vst [vmem:[#allocation1 + $0x2] ss:$4 sm:$0xff] %v4437_v18 }
0x3a88   :  { %v4058_v35 = vpop.f32.mrf.mxu0 }
0x3a8a   :  { %v4081_v58 = vpop.f32.mrf.mxu1 }
0x3a8b   :  { %v4226_v21 = vrot.slane %v4081_v58, 7 }
0x3a8d   :  { %v4227_v48 = vsel %vm610_vm2, %v4226_v21, %v4058_v35  ;;  %v4440_v35 = vmul.f32 %v6700_v17, %v3259_v14  ;;  %v5206_v17 = vld [vmem:[%s6804_s6] sm:$0xf]  ;;  %s5240_s6 = smov 50  }
0x3a8e   :  { %v4229_v56 = vmul.f32 %v4227_v48, %v3942_v37 }
0x3a90   :  { %v4230_v31 = vsel %vm194_vm5, %v4229_v56, 0.0 }
0x3a91   :  { %4231 = vadd.xlane.f32.xlu1 %v4230_v31 }
0x3a92   :  { %v4198_v47 = vpop.f32.mrf.mxu0 }
0x3a93   :  { %v4221_v0 = vpop.f32.mrf.mxu1 }
0x3a94   :  { %v4235_v46 = vrot.slane %v4221_v0, 7 }
0x3a96   :  { %v4236_v4 = vsel %vm610_vm2, %v4235_v46, %v4198_v47 }
0x3a97   :  { %v4238_v44 = vmul.f32 %v4236_v4, %v3942_v37 }
0x3a98   :  { %v4362_v27 = vpop.f32.mrf.mxu3 }
0x3a99   :  { %v4239_v3 = vsel %vm194_vm5, %v4238_v44, 0.0 }
0x3a9a   :  { %4240 = vadd.xlane.f32.xlu2 %v4239_v3 }
0x3ab2   :  { %4423 = vrot.lane.b32.xlu2 %v5595_v29, %s5234_s29 }
0x3b04   :  { %v4232_v60 = vpop.xlane.xlu1 %4231 }
0x3b0d   :  { %v4241_v20 = vpop.xlane.xlu2 %4240 }
0x3b0e   :  { %v4242_v40 = vmax.f32 %v4232_v60, %v4241_v20 }
0x3b10   :  { %v4243_v26 = vsub.f32 %v4232_v60, %v4242_v40  ;;  %v4246_v34 = vsub.f32 %v4241_v20, %v4242_v40 }
0x3b12   :  { %v4244_v59 = vmul.f32 1.442695, %v4243_v26  ;;  %v4247_v19 = vmul.f32 1.442695, %v4246_v34 }
0x3b14   :  { %5108 = vpow2.f32 %v4244_v59 }
0x3b15   :  { %5110 = vpow2.f32 %v4247_v19  ;;  %v4424_v2 = vpop.permute.xlu2 %4423 }
0x3b16   :  { %v4435_v10 = vmul.f32 %v4424_v2, %v6835_v22  ;;  %v4439_v37 = vmul.f32 %v4424_v2, %v6086_v23  ;;  %v4273_v23 = vrot.slane %v6599_v7, 6  ;;  %v76_v7 = vperm.slane %v5206_v17, 3 }
0x3b17   :  { %v5239_v22 = vmov 64  }
0x3b18   :  { %4451 = vst [vmem:[#allocation1] ss:$4 sm:$0xff] %v4435_v10  ;;  %4853 = vset.pattern.permute.xlu1 %v5239_v22  ;;  %4854 = vset.pattern.permute.xlu2 %v5239_v22 }
0x3b19   :  { %4855 = vset.pattern.permute.xlu0 %v5239_v22  ;;  %v6838_v22 = vld [vmem:[#allocation7_spill] sm:$0xff] }
0x3b1a   :  { %v5109_v32 = vpop.eup %5108 }
0x3b1b   :  { %v5111_v63 = vpop.eup %5110  ;;  %v4249_v49 = vmul.f32 %v5109_v32, %v4227_v48 }
0x3b1c   :  { %v4252_v38 = vadd.f32 %v5111_v63, %v5109_v32  ;;  %v4250_v53 = vmul.f32 %v5111_v63, %v4236_v4 }
0x3b1e   :  { %5112 = vrcp.f32 %v4252_v38  ;;  %v4264_v36 = vand.u32 2147483648, %v4252_v38  ;;  %v4262_v13 = vand.u32 2147483647, %v4252_v38  ;;  %vm4258_vm1 = vweird.f32 %v4252_v38 }
0x3b1f   :  { %v4251_v54 = vadd.f32 %v4250_v53, %v4249_v49 }
0x3b20   :  { %v4265_v57 = vor.u32 1.1754944e-38, %v4264_v36  ;;  %vm4263_vm9 = vcmp.eq.f32.partialorder %v4262_v13, 8.507059e+37 }
0x3b24   :  { %v5113_v1 = vpop.eup %5112 }
0x3b25   :  { %v4254_v6 = vmul.f32 %v5113_v1, %v4252_v38  ;;  %vm4259_vm5 = vweird.f32 %v5113_v1 }
0x3b26   :  { %vm4260_vm12 = vmor %vm4258_vm1, %vm4259_vm5  ;;  %vm4631_vm5 = vcmask 1044484   ;;  %vm4634_vm1 = vcmask 1045509  }
0x3b27   :  { %v4255_v39 = vsub.f32 1.0, %v4254_v6 }
0x3b29   :  { %v4256_v42 = vmul.f32 %v5113_v1, %v4255_v39 }
0x3b2b   :  { %v4257_v16 = vadd.f32 %v5113_v1, %v4256_v42 }
0x3b2d   :  { %v4261_v18 = vsel %vm4260_vm12, %v5113_v1, %v4257_v16  ;;  %vm4637_vm12 = vcmask 1046534  }
0x3b2e   :  { %v4266_v12 = vsel %vm4263_vm9, %v4265_v57, %v4261_v18  ;;  %vm4640_vm9 = vcmask 1047559  }
0x3b2f   :  { %v4267_v58 = vmul.f32 %v4266_v12, %v4251_v54 }
0x3b31   :  { %4290 = vst [vmem:[#allocation1 + $0x23] ss:$4 sm:$0xff] %v4267_v58 }
0x3b38   :  { %v4292_v21 = vld.sshfl [vmem:[#allocation1 + $0x20] sm:$0xff pattern:$0x73625140] }
0x3b39   :  { %4334 = vst [vmem:[#allocation1 + $0x23] ss:$4 sm:$0xff] %v3879_v52  ;;  %4837 = vmatmul.msk.f32.gmra.mxu2 %vm78_vm0, %v4292_v21  ;;  %v4314_v52 = vpop.f32.mrf.mxu2 }
0x3b3a   :  { %4328 = vst [vmem:[#allocation1 + $0x20] ss:$4 sm:$0xff] %v6101_v62  ;;  %v4422_v62 = vrot.slane %v5595_v29, 6  ;;  %v4363_v9 = vadd.f32 %v4362_v27, %v4314_v52 }
0x3b3b   :  { %4330 = vst [vmem:[#allocation1 + $0x21] ss:$4 sm:$0xff] %v2843_v8  ;;  %v6836_v8 = vrot.slane %v5959_v15, 6 }
0x3b3c   :  { %4332 = vst [vmem:[#allocation1 + $0x22] ss:$4 sm:$0xff] %v3361_v24  ;;  %v4368_v56 = vadd.f32 %v4363_v9, %v76_v7 }
0x3b3e   :  { %v4371_v15 = vsel %vm4370_vm13, %v4368_v56, -inf }
0x3b43   :  { %v4336_v48 = vld.sshfl [vmem:[#allocation1 + $0x20] sm:$0xff pattern:$0x73625140] }
0x3b44   :  { %4339 = vrot.lane.b32.xlu1 %v4336_v48, %s5235_s30  ;;  %4459 = vst [vmem:[#allocation1 + $0x20] ss:$4 sm:$0xff] %v4439_v37 }
0x3b45   :  { %4461 = vst [vmem:[#allocation1 + $0x21] ss:$4 sm:$0xff] %v4440_v35 }
0x3b46   :  { %4463 = vst [vmem:[#allocation1 + $0x22] ss:$4 sm:$0xff] %v4441_v50 }
0x3b4c   :  { %4429 = vrot.lane.b32.xlu1 %v4422_v62, %s5234_s29 }
0x3bb6   :  { %v4340_v41 = vpop.permute.xlu1 %4339 }
0x3bb7   :  { %4839 = vmatmul.msk.f32.gmra.mxu3 %vm78_vm0, %v4340_v41 }
0x3bbc   :  { %v4317_v47 = vpop.f32.mrf.mxu2 }
0x3bbe   :  { %v4430_v28 = vpop.permute.xlu1 %4429 }
0x3bbf   :  { %v4438_v14 = vmul.f32 %v4430_v28, %v6836_v8  ;;  %v4442_v51 = vmul.f32 %v4430_v28, %v4273_v23 }
0x3bc1   :  { %4457 = vst [vmem:[#allocation1 + $0x3] ss:$4 sm:$0xff] %v4438_v14 }
0x3bc2   :  { %4465 = vst [vmem:[#allocation1 + $0x23] ss:$4 sm:$0xff] %v4442_v51 }
0x3bc8   :  { %v4466_v5 = vld.sshfl [vmem:[#allocation1] sm:$0xff pattern:$0x73625140] }
0x3bc9   :  { %4468 = vrot.lane.b32.xlu2 %v4466_v5, %s5235_s30  ;;  %v4467_v24 = vld.sshfl [vmem:[#allocation1 + $0x20] sm:$0xff pattern:$0x73625140] }
0x3bca   :  { %4470 = vrot.lane.b32.xlu0 %v4467_v24, %s5235_s30  ;;  %s5241_s30 = smov [#allocation2]  }
0x3bcb   :  { %s4677_s19 = sshll.u32 %s5241_s30, 4  ;;  %s4678_s19 = int_to_ptr.vmem [resolvable:$true] %s4677_s19 }
0x3bf4   :  { %4372 = vmax.xlane.f32.xlu0 %v4371_v15 }
0x3c23   :  { %v4469_v31 = vpop.permute.xlu2 %4468 }
0x3c24   :  { %v4474_v0 = vsel %vm78_vm0, %v4469_v31, 0.0 }
0x3c25   :  { %4475 = vadd.xlane.f32.xlu1 %v4474_v0 }
0x3c3a   :  { %v4365_v46 = vpop.f32.mrf.mxu3 }
0x3c3b   :  { %v4366_v44 = vadd.f32 %v4365_v46, %v4317_v47 }
0x3c3c   :  { %v4471_v4 = vpop.permute.xlu0 %4470 }
0x3c3d   :  { %v4477_v3 = vsel %vm78_vm0, %v4471_v4, 0.0  ;;  %v4369_v60 = vadd.f32 %v4366_v44, %v76_v7  ;;  %v6837_v44 = vld [vmem:[#allocation6_spill] sm:$0xff] }
0x3c3e   :  { %4478 = vadd.xlane.f32.xlu2 %v4477_v3 }
0x3c3f   :  { %v4374_v20 = vsel %vm4370_vm13, %v4369_v60, -inf }
0x3c46   :  { %4375 = vmax.xlane.f32.xlu2 %v4374_v20 }
0x3c67   :  { %v4373_v40 = vpop.xlane.xlu0 %4372 }
0x3c68   :  { %v4377_v26 = vsub.f32 %v4368_v56, %v4373_v40 }
0x3c6a   :  { %v4379_v34 = vmul.f32 1.442695, %v4377_v26 }
0x3c6c   :  { %5114 = vpow2.f32 %v4379_v34 }
0x3c72   :  { %v6749_v59 = vpop.eup %5114 }
0x3c73   :  { %v4383_v19 = vsel %vm4370_vm13, %v6749_v59, 0.0 }
0x3c74   :  { %4384 = vadd.xlane.f32.xlu0 %v4383_v19 }
0x3c98   :  { %v4476_v2 = vpop.xlane.xlu1 %4475 }
0x3c99   :  { %v4480_v10 = vadd.f32 %v4476_v2, %v5595_v29 }
0x3c9b   :  { %v4840_v32 = vmul.f32 -1.442695, %v4480_v10  ;;  %v6839_v10 = vld [vmem:[#allocation8_spill] sm:$0xff] }
0x3c9d   :  { %5116 = vpow2.f32 %v4840_v32 }
0x3ca3   :  { %v5117_v63 = vpop.eup %5116 }
0x3ca4   :  { %v4488_v38 = vadd.f32 1.0, %v5117_v63  ;;  %v6840_v63 = vld [vmem:[#allocation9_spill] sm:$0xff] }
0x3ca6   :  { %5118 = vrcp.f32 %v4488_v38  ;;  %v4501_v49 = vand.u32 2147483648, %v4488_v38  ;;  %v4499_v42 = vand.u32 2147483647, %v4488_v38  ;;  %vm4495_vm14 = vweird.f32 %v4488_v38 }
0x3ca8   :  { %v4502_v54 = vor.u32 1.1754944e-38, %v4501_v49  ;;  %vm4500_vm3 = vcmp.eq.f32.partialorder %v4499_v42, 8.507059e+37  ;;  %v6843_v49 = vld [vmem:[#allocation12_spill] sm:$0xff] }
0x3cac   :  { %v5119_v1 = vpop.eup %5118 }
0x3cad   :  { %v4491_v6 = vmul.f32 %v5119_v1, %v4488_v38  ;;  %vm4496_vm0 = vweird.f32 %v5119_v1 }
0x3cae   :  { %vm4497_vm15 = vmor %vm4495_vm14, %vm4496_vm0 }
0x3caf   :  { %v4492_v39 = vsub.f32 1.0, %v4491_v6  ;;  %v6842_v6 = vld [vmem:[#allocation11_spill] sm:$0xff] }
0x3cb1   :  { %v4479_v36 = vpop.xlane.xlu2 %4478  ;;  %v4493_v53 = vmul.f32 %v5119_v1, %v4492_v39 }
0x3cb2   :  { %v4481_v13 = vadd.f32 %v4479_v36, %v5595_v29 }
0x3cb3   :  { %v4494_v16 = vadd.f32 %v5119_v1, %v4493_v53 }
0x3cb4   :  { %v4841_v57 = vmul.f32 -1.442695, %v4481_v13  ;;  %v6844_v13 = vld [vmem:[#allocation13_spill] sm:$0xff] }
0x3cb5   :  { %v4498_v18 = vsel %vm4497_vm15, %v5119_v1, %v4494_v16  ;;  %v6841_v1 = vld [vmem:[#allocation10_spill] sm:$0xff] }
0x3cb6   :  { %5120 = vpow2.f32 %v4841_v57  ;;  %v4503_v12 = vsel %vm4500_vm3, %v4502_v54, %v4498_v18  ;;  %vm4664_vm3 = vcmask 474112  }
0x3cb7   :  { %4538 = vperm.xlu1 %4853, %v4503_v12   ;;  %v4520_v17 = vsub.f32 1.0, %v4503_v12 }
0x3cb9   :  { %v4376_v58 = vpop.xlane.xlu2 %4375 }
0x3cba   :  { %v4378_v21 = vsub.f32 %v4369_v60, %v4376_v58 }
0x3cbc   :  { %v5121_v37 = vpop.eup %5120  ;;  %v4381_v35 = vmul.f32 1.442695, %v4378_v21 }
0x3cbd   :  { %v4489_v48 = vadd.f32 1.0, %v5121_v37 }
0x3cbe   :  { %5122 = vpow2.f32 %v4381_v35 }
0x3cbf   :  { %5124 = vrcp.f32 %v4489_v48  ;;  %v4516_v28 = vand.u32 2147483648, %v4489_v48  ;;  %v4514_v14 = vand.u32 2147483647, %v4489_v48  ;;  %vm4510_vm6 = vweird.f32 %v4489_v48 }
0x3cc1   :  { %v4517_v5 = vor.u32 1.1754944e-38, %v4516_v28  ;;  %vm4515_vm10 = vcmp.eq.f32.partialorder %v4514_v14, 8.507059e+37 }
0x3cc4   :  { %v6755_v50 = vpop.eup %5122 }
0x3cc5   :  { %v5125_v29 = vpop.eup %5124  ;;  %v4386_v62 = vsel %vm4370_vm13, %v6755_v50, 0.0 }
0x3cc6   :  { %4387 = vadd.xlane.f32.xlu0 %v4386_v62  ;;  %v4506_v41 = vmul.f32 %v5125_v29, %v4489_v48  ;;  %vm4511_vm4 = vweird.f32 %v5125_v29 }
0x3cc7   :  { %vm4512_vm11 = vmor %vm4510_vm6, %vm4511_vm4 }
0x3cc8   :  { %v4507_v23 = vsub.f32 1.0, %v4506_v41 }
0x3cca   :  { %v4508_v8 = vmul.f32 %v5125_v29, %v4507_v23 }
0x3ccc   :  { %v4509_v51 = vadd.f32 %v5125_v29, %v4508_v8 }
0x3cce   :  { %v4513_v24 = vsel %vm4512_vm11, %v5125_v29, %v4509_v51 }
0x3ccf   :  { %v4518_v27 = vsel %vm4515_vm10, %v4517_v5, %v4513_v24 }
0x3cd0   :  { %4542 = vperm.xlu2 %4854, %v4518_v27   ;;  %v4521_v52 = vsub.f32 1.0, %v4518_v27 }
0x3cd2   :  { %4529 = vperm.xlu1 %4853, %v4521_v52  }
0x3cda   :  { %4524 = vperm.xlu0 %4855, %v4520_v17  }
0x3d29   :  { %v4539_v7 = vpop.permute.xlu1 %4538 }
0x3d2a   :  { %v4544_v9 = vrot.slane %v4539_v7, 1  ;;  %v4545_v56 = vrot.slane %v4539_v7, 2  ;;  %v4546_v15 = vrot.slane %v4539_v7, 3  ;;  %v4574_v31 = vmul.f32 %v4539_v7, %v5586_v25  ;;  %v4543_v0 = vpop.permute.xlu2 %4542 }
0x3d2b   :  { %v4551_v46 = vrot.slane %v4543_v0, 1  ;;  %v4552_v47 = vrot.slane %v4543_v0, 2  ;;  %v4582_v4 = vmul.f32 %v4543_v0, %v6282_v61  ;;  %v4553_v60 = vrot.slane %v4543_v0, 3 }
0x3d2c   :  { %v4575_v3 = vmul.f32 %v4544_v9, %v6837_v44  ;;  %v4547_v20 = vrot.slane %v4539_v7, 4  ;;  %v4548_v40 = vrot.slane %v4539_v7, 5  ;;  %v4590_v26 = vadd.f32 1e-06, %v4574_v31 }
0x3d2d   :  { %v4598_v34 = vadd.f32 1e-06, %v4582_v4  ;;  %v4549_v19 = vrot.slane %v4539_v7, 6  ;;  %v4550_v2 = vrot.slane %v4539_v7, 7  ;;  %v4576_v25 = vmul.f32 %v4545_v56, %v6838_v22 }
0x3d2e   :  { %v4577_v32 = vmul.f32 %v4546_v15, %v6839_v10  ;;  %v4578_v38 = vmul.f32 %v4547_v20, %v6840_v63  ;;  %v4579_v61 = vmul.f32 %v4548_v40, %v6841_v1  ;;  %v4591_v53 = vadd.f32 1e-06, %v4575_v3  ;;  %v4385_v63 = vpop.xlane.xlu0 %4384 }
0x3d2f   :  { %v4580_v39 = vmul.f32 %v4549_v19, %v6842_v6  ;;  %v4581_v36 = vmul.f32 %v4550_v2, %v6843_v49  ;;  %v4554_v42 = vrot.slane %v4543_v0, 4  ;;  %v4583_v16 = vmul.f32 %v4551_v46, %v6844_v13 }
0x3d30   :  { %v4592_v57 = vadd.f32 1e-06, %v4576_v25  ;;  %v4593_v54 = vadd.f32 1e-06, %v4577_v32  ;;  %v4594_v18 = vadd.f32 1e-06, %v4578_v38  ;;  %v4584_v37 = vmul.f32 %v4552_v47, %v6402_v45 }
0x3d31   :  { %v4595_v12 = vadd.f32 1e-06, %v4579_v61  ;;  %v4596_v58 = vadd.f32 1e-06, %v4580_v39  ;;  %v4597_v21 = vadd.f32 1e-06, %v4581_v36  ;;  %v4585_v62 = vmul.f32 %v4553_v60, %v6405_v30 }
0x3d32   :  { %v4622_v35 = vrot.slane %v4591_v53, 7  ;;  %v4624_v48 = vrot.slane %v4592_v57, 6  ;;  %v4627_v29 = vrot.slane %v4593_v54, 5  ;;  %v4630_v41 = vrot.slane %v4594_v18, 4 }
0x3d33   :  { %v4633_v23 = vrot.slane %v4595_v12, 3  ;;  %v4636_v28 = vrot.slane %v4596_v58, 2  ;;  %v4555_v8 = vrot.slane %v4543_v0, 5  ;;  %v4556_v51 = vrot.slane %v4543_v0, 6 }
0x3d34   :  { %v4623_v14 = vsel %vm610_vm2, %v4622_v35, %v4590_v26  ;;  %v4557_v5 = vrot.slane %v4543_v0, 7  ;;  %v4586_v24 = vmul.f32 %v4554_v42, %v6553_v43  ;;  %v4599_v45 = vadd.f32 1e-06, %v4583_v16 }
0x3d35   :  { %v4626_v27 = vsel %vm4625_vm7, %v4624_v48, %v4623_v14  ;;  %v4587_v52 = vmul.f32 %v4555_v8, %v6576_v11  ;;  %v4600_v17 = vadd.f32 1e-06, %v4584_v37  ;;  %v4588_v30 = vmul.f32 %v4556_v51, %v6690_v55 }
0x3d36   :  { %v4629_v7 = vsel %vm4628_vm8, %v4627_v29, %v4626_v27  ;;  %v4589_v9 = vmul.f32 %v4557_v5, %v6693_v33  ;;  %v4601_v56 = vadd.f32 1e-06, %v4585_v62  ;;  %v4602_v31 = vadd.f32 1e-06, %v4586_v24 }
0x3d37   :  { %v4632_v15 = vsel %vm4631_vm5, %v4630_v41, %v4629_v7  ;;  %v4603_v46 = vadd.f32 1e-06, %v4587_v52  ;;  %v4642_v0 = vrot.slane %v4599_v45, 7  ;;  %v4639_v47 = vrot.slane %v4597_v21, 1 }
0x3d38   :  { %v4635_v43 = vsel %vm4634_vm1, %v4633_v23, %v4632_v15  ;;  %v4604_v4 = vadd.f32 1e-06, %v4588_v30  ;;  %v4644_v44 = vrot.slane %v4600_v17, 6  ;;  %v4605_v3 = vadd.f32 1e-06, %v4589_v9 }
0x3d39   :  { %v4638_v11 = vsel %vm4637_vm12, %v4636_v28, %v4635_v43  ;;  %v4643_v60 = vsel %vm610_vm2, %v4642_v0, %v4598_v34  ;;  %v4646_v20 = vrot.slane %v4601_v56, 5  ;;  %v4648_v40 = vrot.slane %v4602_v31, 4  ;;  %v4388_v49 = vpop.xlane.xlu0 %4387 }
0x3d3a   :  { %v4641_v55 = vsel %vm4640_vm9, %v4639_v47, %v4638_v11  ;;  %v4645_v33 = vsel %vm4625_vm7, %v4644_v44, %v4643_v60  ;;  %v4650_v19 = vrot.slane %v4603_v46, 3  ;;  %v4652_v22 = vrot.slane %v4604_v4, 2 }
0x3d3b   :  { %4656 = vrot.lane.b32.xlu2 %v4641_v55, %s5240_s6  ;;  %v4647_v26 = vsel %vm4628_vm8, %v4646_v20, %v4645_v33  ;;  %v4654_v10 = vrot.slane %v4605_v3, 1  ;;  %5126 = vrcp.f32 %v4385_v63  ;;  %v4400_v36 = vand.u32 2147483648, %v4385_v63 }
0x3d3c   :  { %v4649_v2 = vsel %vm4631_vm5, %v4648_v40, %v4647_v26  ;;  %vm4394_vm0 = vweird.f32 %v4385_v63  ;;  %v4398_v53 = vand.u32 2147483647, %v4385_v63  ;;  %5128 = vrcp.f32 %v4388_v49 }
0x3d3d   :  { %v4651_v25 = vsel %vm4634_vm1, %v4650_v19, %v4649_v2  ;;  %v4401_v13 = vor.u32 1.1754944e-38, %v4400_v36  ;;  %v4415_v8 = vand.u32 2147483648, %v4388_v49  ;;  %vm4409_vm6 = vweird.f32 %v4388_v49 }
0x3d3e   :  { %v4653_v32 = vsel %vm4637_vm12, %v4652_v22, %v4651_v25  ;;  %vm4399_vm15 = vcmp.eq.f32.partialorder %v4398_v53, 8.507059e+37 }
0x3d3f   :  { %v4655_v34 = vsel %vm4640_vm9, %v4654_v10, %v4653_v32  ;;  %v4416_v51 = vor.u32 1.1754944e-38, %v4415_v8 }
0x3d40   :  { %4658 = vrot.lane.b32.xlu1 %v4655_v34, %s5240_s6 }
0x3d41   :  { %v5127_v38 = vpop.eup %5126 }
0x3d42   :  { %v4390_v1 = vmul.f32 %v5127_v38, %v4385_v63  ;;  %vm4395_vm2 = vweird.f32 %v5127_v38  ;;  %v5129_v18 = vpop.eup %5128 }
0x3d43   :  { %vm4396_vm14 = vmor %vm4394_vm0, %vm4395_vm2  ;;  %v4405_v58 = vmul.f32 %v5129_v18, %v4388_v49  ;;  %vm4410_vm4 = vweird.f32 %v5129_v18 }
0x3d44   :  { %v4391_v61 = vsub.f32 1.0, %v4390_v1  ;;  %vm4411_vm11 = vmor %vm4409_vm6, %vm4410_vm4  ;;  %v4530_v27 = vpop.permute.xlu1 %4529 }
0x3d45   :  { %v4406_v48 = vsub.f32 1.0, %v4405_v58 }
0x3d46   :  { %v4392_v6 = vmul.f32 %v5127_v38, %v4391_v61 }
0x3d47   :  { %v4407_v62 = vmul.f32 %v5129_v18, %v4406_v48 }
0x3d48   :  { %v4393_v39 = vadd.f32 %v5127_v38, %v4392_v6 }
0x3d49   :  { %v4408_v23 = vadd.f32 %v5129_v18, %v4407_v62 }
0x3d4a   :  { %v4397_v42 = vsel %vm4396_vm14, %v5127_v38, %v4393_v39 }
0x3d4b   :  { %v4402_v16 = vsel %vm4399_vm15, %v4401_v13, %v4397_v42  ;;  %v4412_v14 = vsel %vm4411_vm11, %v5129_v18, %v4408_v23 }
0x3d4c   :  { %v4525_v57 = vpop.permute.xlu0 %4524  ;;  %v4403_v54 = vmul.f32 %v6749_v59, %v4402_v16  ;;  %v4413_v59 = vand.u32 2147483647, %v4388_v49 }
0x3d4e   :  { %v4532_v12 = vmul.f32 %v4525_v57, %v4403_v54  ;;  %vm4414_vm10 = vcmp.eq.f32.partialorder %v4413_v59, 8.507059e+37 }
0x3d4f   :  { %v4417_v5 = vsel %vm4414_vm10, %v4416_v51, %v4412_v14 }
0x3d50   :  { %v4534_v21 = vadd.f32 1e-06, %v4532_v12  ;;  %v4418_v24 = vmul.f32 %v6755_v50, %v4417_v5 }
0x3d52   :  { %v4533_v52 = vmul.f32 %v4530_v27, %v4418_v24 }
0x3d54   :  { %v4535_v45 = vadd.f32 1e-06, %v4533_v52 }
0x3d95   :  { %v4657_v37 = vpop.permute.xlu2 %4656 }
0x3d96   :  { %v4662_v35 = vsel %vm4370_vm13, %v4534_v21, %v4657_v37 }
0x3d97   :  { %v4665_v29 = vsel %vm4664_vm3, %v4662_v35, 1.0 }
0x3d98   :  { %5130 = vlog2.f32 %v4665_v29 }
0x3d9e   :  { %v5131_v41 = vpop.eup %5130 }
0x3d9f   :  { %v4668_v28 = vmul.f32 0.6931472, %v5131_v41 }
0x3da1   :  { %4671 = vst [vmem:[#allocation2] sm:$0xff] %v4668_v28 }
0x3db2   :  { %v4659_v17 = vpop.permute.xlu1 %4658 }
0x3db3   :  { %v4663_v7 = vsel %vm4370_vm13, %v4535_v45, %v4659_v17 }
0x3db4   :  { %v4666_v30 = vsel %vm4664_vm3, %v4663_v7, 1.0 }
0x3db5   :  { %5132 = vlog2.f32 %v4666_v30 }
0x3dbb   :  { %v5133_v9 = vpop.eup %5132 }
0x3dbc   :  { %v4670_v56 = vmul.f32 0.6931472, %v5133_v9 }
0x3dbe   :  { %4672 = vst [vmem:[#allocation2 + $0x8] sm:$0xff] %v4670_v56 }
0x3dbf   :  { %4685 = dma.vmem_to_hbm [thread:$0]  %s4678_s19, 256, %s4680_s0, [#allocation3], %s5242_s22, %s5242_s22, %s5243_s2  }
0x3dc0   :  { %5231 = dma.done.wait [#allocation3], 256  }
0x3dc1   :  { %5232 = vsyncadd [#allocation3], 4294967040 }
0x3dc2   :  { %4690 = vsyncpa [#allocation3], 1 }

</bundles_post_ra>
